<compile_context>
chip_gen: v6e
topology: v6e:2x2x1
jax: 0.10.0
libtpu: 0.0.40
codegen_flags: <defaults>
</compile_context>

<pallas_src>
import functools

import jax
import jax.numpy as jnp
from jax.experimental import pallas as pl
from jax.experimental.pallas import tpu as pltpu


def _cbam_kernel(x_ref, w1t_ref, w2t_ref, masks_ref, wsp_ref, o_ref, *, W, ks):
    """Fused CBAM (channel + spatial attention) for Bt independent batch rows.

    x_ref     : (Bt, C, HW)  VMEM  lane-dense input block (HW = H*W)
    w1t_ref   : (C, Crp)     VMEM  first 1x1-conv weight, transposed, zero-padded
    w2t_ref   : (Crp, C)     VMEM  second 1x1-conv weight, transposed, zero-padded
    masks_ref : (2*ks, HW)   VMEM  rows [0, ks): column-validity mask per kj
                                   rows [ks, 2ks): row-validity mask per ki
    wsp_ref   : (2*ks*ks,)   SMEM  flattened ks x ks spatial weights (avg ch first)
    o_ref     : (Bt, C, HW)  VMEM  lane-dense output block
    """
    Bt, C, HW = x_ref.shape
    P = (ks - 1) // 2
    Cc = min(8, C)
    f32 = jnp.float32

    # ---------- phase 1: channel attention (global avg/max pool + shared MLP)
    # Streamed over C in sublane-sized chunks so the full block is never a
    # live (Bt, C, HW) value (keeps vreg pressure low, lets Bt scale).
    sums, maxs = [], []
    for c0 in range(0, C, Cc):
        cc = min(Cc, C - c0)
        xc = x_ref[:, c0:c0 + cc, :].astype(f32)              # (Bt, cc, HW)
        sums.append(jnp.sum(xc, axis=2))                      # (Bt, cc)
        maxs.append(jnp.max(xc, axis=2))
    avg_c = jnp.concatenate(sums, axis=1) * (1.0 / HW)        # (Bt, C)
    max_c = jnp.concatenate(maxs, axis=1)                     # (Bt, C)

    # avg & max batched through one pair of MXU matmuls (lane-dense hidden dim)
    pooled = jnp.concatenate([avg_c, max_c], axis=0)          # (2*Bt, C)
    hid = jnp.maximum(
        jnp.dot(pooled, w1t_ref[...], preferred_element_type=f32), 0.0)
    logits = jnp.dot(hid, w2t_ref[...], preferred_element_type=f32)
    att_c = jax.nn.sigmoid(logits[:Bt] + logits[Bt:])         # (Bt, C)
    att_cb = att_c.reshape(Bt, C, 1)                          # per-channel scale

    # ---------- phase 2: spatial pooling of x * att_c (streamed over C) ------
    avg_s = jnp.zeros((Bt, HW), f32)
    max_s = jnp.full((Bt, HW), -jnp.inf, f32)
    for c0 in range(0, C, Cc):
        cc = min(Cc, C - c0)
        xc = x_ref[:, c0:c0 + cc, :].astype(f32) * att_cb[:, c0:c0 + cc, :]
        avg_s = avg_s + jnp.sum(xc, axis=1)
        max_s = jnp.maximum(max_s, jnp.max(xc, axis=1))
    avg_s = avg_s * (1.0 / C)

    # ---------- spatial attention: ks x ks conv via roll factoring -----------
    # Column taps: 2*ks rolls (avg & max), each masked once for column validity.
    ya, ym = [], []
    for kj in range(ks):
        dj = kj - P
        if dj == 0:
            ya.append(avg_s)
            ym.append(max_s)
        else:
            sh = (-dj) % HW
            cm = masks_ref[kj:kj + 1, :]                      # (1, HW)
            ya.append(pltpu.roll(avg_s, sh, 1) * cm)
            ym.append(pltpu.roll(max_s, sh, 1) * cm)

    # Row taps: per ki, a VPU-only weighted sum of the shifted maps, then ONE
    # row roll of ki*W and a row-validity mask.
    conv = jnp.zeros((Bt, HW), f32)
    for ki in range(ks):
        di = ki - P
        z = jnp.zeros((Bt, HW), f32)
        for kj in range(ks):
            wa = wsp_ref[ki * ks + kj]                        # avg-channel weight
            wm = wsp_ref[ks * ks + ki * ks + kj]              # max-channel weight
            z = z + wa * ya[kj] + wm * ym[kj]
        if di != 0:
            rm = masks_ref[ks + ki:ks + ki + 1, :]            # (1, HW)
            z = pltpu.roll(z, (-di * W) % HW, 1) * rm
        conv = conv + z
    att_s = jax.nn.sigmoid(conv)                              # (Bt, HW)

    # ---------- phase 3: out = x * att_c * att_s (streamed over C) -----------
    for c0 in range(0, C, Cc):
        cc = min(Cc, C - c0)
        xc = x_ref[:, c0:c0 + cc, :].astype(f32) * att_cb[:, c0:c0 + cc, :]
        o_ref[:, c0:c0 + cc, :] = (xc * att_s[:, None, :]).astype(o_ref.dtype)


def _round_up(x, m):
    return ((x + m - 1) // m) * m


def _pick_block(n, row_bytes, target=16, vmem_budget=12 << 20):
    """Rows per grid step: as big as the VMEM budget allows (up to `target`);
    for small batches prefer a divisor of n giving an even grid of >= 2 steps
    (keeps both v7x TensorCores busy); larger batches get padded to Bt."""
    cap = max(1, min(target, vmem_budget // max(4 * row_bytes, 1)))
    if n <= cap:
        best = n
        for d in range(1, n):
            if n % d == 0 and (n // d) % 2 == 0:
                best = d                                       # largest such d wins
        return best
    return cap


def cbam_forward_batched(x_flat, w1, w2, wsp, *, H, W, ks=7):
    """Apply CBAM with shared weights to every row of x_flat: (N, C, H*W)."""
    N, C, HW = x_flat.shape
    assert HW == H * W
    Cr = w1.shape[0]
    Crp = _round_up(max(Cr, 1), 128)            # lane-dense hidden dim

    itemsize = jnp.dtype(x_flat.dtype).itemsize
    row_bytes = C * HW * itemsize
    Bt = _pick_block(N, row_bytes)
    Np = _round_up(N, Bt)
    if Np != N:
        x_flat = jnp.concatenate(
            [x_flat, jnp.zeros((Np - N, C, HW), x_flat.dtype)], axis=0)
    grid = (Np // Bt,)

    # transposed + zero-padded MLP weights (exact through the ReLU)
    w1t = jnp.zeros((C, Crp), jnp.float32).at[:, :Cr].set(
        jnp.asarray(w1, jnp.float32).T)
    w2t = jnp.zeros((Crp, C), jnp.float32).at[:Cr, :].set(
        jnp.asarray(w2, jnp.float32).T)
    wsp_flat = jnp.asarray(wsp, jnp.float32).reshape(-1)      # (2*ks*ks,)

    # column / row validity masks for the roll-factored conv (replace padding)
    P = (ks - 1) // 2
    pos = jnp.arange(HW, dtype=jnp.int32)
    colp, rowp = pos % W, pos // W
    cmask = [(colp + (kj - P) >= 0) & (colp + (kj - P) < W) for kj in range(ks)]
    rmask = [(rowp + (ki - P) >= 0) & (rowp + (ki - P) < H) for ki in range(ks)]
    masks = jnp.stack(cmask + rmask).astype(jnp.float32)      # (2*ks, HW)

    block_bytes = Bt * row_bytes
    vmem_limit = int(min(max(6 * block_bytes + (2 << 20), 16 << 20), 48 << 20))

    kernel = functools.partial(_cbam_kernel, W=W, ks=ks)
    out = pl.pallas_call(
        kernel,
        out_shape=jax.ShapeDtypeStruct((Np, C, HW), x_flat.dtype),
        grid_spec=pltpu.PrefetchScalarGridSpec(
            num_scalar_prefetch=0,
            grid=grid,
            in_specs=[
                pl.BlockSpec((Bt, C, HW), lambda b: (b, 0, 0)),
                pl.BlockSpec((C, Crp), lambda b: (0, 0)),
                pl.BlockSpec((Crp, C), lambda b: (0, 0)),
                pl.BlockSpec((2 * ks, HW), lambda b: (0, 0)),
                pl.BlockSpec(memory_space=pltpu.MemorySpace.SMEM),
            ],
            out_specs=pl.BlockSpec((Bt, C, HW), lambda b: (b, 0, 0)),
        ),
        compiler_params=pltpu.CompilerParams(
            dimension_semantics=("parallel",),
            vmem_limit_bytes=vmem_limit),
    )(x_flat, w1t, w2t, masks, wsp_flat)
    return out[:N]


def cmwr_cbam_forward(rgb, depth, rgbd, params, *, ks=7):
    """cmWR_CBAM.forward: the same shared attention weights applied to all three
    inputs, fused into a single pallas_call over the stacked batch."""
    w1, w2, wsp = params
    B, C, H, W = rgb.shape
    x_all = jnp.concatenate([rgb, depth, rgbd], axis=0)       # (3B, C, H, W)
    x_all = x_all.reshape(3 * B, C, H * W)                    # lane-dense
    out = cbam_forward_batched(x_all, w1, w2, wsp, H=H, W=W, ks=ks)
    out = out.reshape(3 * B, C, H, W)
    return out[:B], out[B:2 * B], out[2 * B:]


# ---------------- pure-JAX reference (for verification) ----------------
def _cbam_ref(x, w1, w2, wsp, ks=7):
    P = (ks - 1) // 2
    avg = jnp.mean(x, axis=(2, 3), keepdims=True)             # (B,C,1,1)
    mx = jnp.max(x, axis=(2, 3), keepdims=True)

    def fc(v):
        h = jnp.maximum(jnp.einsum('oc,bcxy->boxy', w1, v), 0.0)
        return jnp.einsum('co,boxy->bcxy', w2, h)

    att_c = jax.nn.sigmoid(fc(avg) + fc(mx))
    x = x * att_c
    avg_s = jnp.mean(x, axis=1, keepdims=True)
    max_s = jnp.max(x, axis=1, keepdims=True)
    s = jnp.concatenate([avg_s, max_s], axis=1)               # (B,2,H,W)
    conv = jax.lax.conv_general_dilated(
        s, wsp[None], window_strides=(1, 1), padding=[(P, P), (P, P)],
        dimension_numbers=('NCHW', 'OIHW', 'NCHW'))
    att_s = jax.nn.sigmoid(conv)                              # (B,1,H,W)
    return x * att_s


if __name__ == "__main__":
    B, C, H, W = 2, 32, 16, 16
    reduction, ks = 16, 7
    Cr = C // reduction

    key = jax.random.PRNGKey(0)
    k_rgb, k_dep, k_rgbd, k_w1, k_w2, k_wsp = jax.random.split(key, 6)

    rgb = jax.random.normal(k_rgb, (B, C, H, W), jnp.float32)
    depth = jax.random.normal(k_dep, (B, C, H, W), jnp.float32)
    rgbd = jax.random.normal(k_rgbd, (B, C, H, W), jnp.float32)

    # deterministic synthetic parameters (shapes per nn.Conv2d in __init__)
    w1 = 0.1 * jax.random.normal(k_w1, (Cr, C), jnp.float32)        # Conv2d(C, C/r, 1).weight[:, :, 0, 0]
    w2 = 0.1 * jax.random.normal(k_w2, (C, Cr), jnp.float32)        # Conv2d(C/r, C, 1).weight[:, :, 0, 0]
    wsp = 0.1 * jax.random.normal(k_wsp, (2, ks, ks), jnp.float32)  # Conv2d(2, 1, 7).weight[0]

    outs = cmwr_cbam_forward(rgb, depth, rgbd, (w1, w2, wsp), ks=ks)
    outs = jax.block_until_ready(outs)

    # verify against pure-JAX reference
    refs = (_cbam_ref(rgb, w1, w2, wsp, ks),
            _cbam_ref(depth, w1, w2, wsp, ks),
            _cbam_ref(rgbd, w1, w2, wsp, ks))
    for got, ref in zip(outs, refs):
        assert got.shape == (B, C, H, W)
        err = float(jnp.max(jnp.abs(got - ref)))
        assert err < 1e-3, f"mismatch vs reference: {err}"

    print("KERNEL_OK")
</pallas_src>

<mosaic_0001>
module attributes {stable_mosaic.version = 11 : i64} {
  func.func @_cbam_kernel(%arg0: i32, %arg1: memref<3x32x256xf32, #tpu.memory_space<vmem>>, %arg2: memref<32x128xf32, #tpu.memory_space<vmem>>, %arg3: memref<128x32xf32, #tpu.memory_space<vmem>>, %arg4: memref<14x256xf32, #tpu.memory_space<vmem>>, %arg5: memref<98xf32, #tpu.memory_space<smem>>, %arg6: memref<3x32x256xf32, #tpu.memory_space<vmem>>) attributes {dimension_semantics = [#tpu.dimension_semantics<parallel>], iteration_bounds = array<i64: 2>, scalar_prefetch = 0 : i64, scratch_operands = 0 : i64, tpu.core_type = #tpu.core_type<tc>, window_params = [{transform_indices = @transform_0, window_bounds = array<i64: 3, 32, 256>}, {pipeline_mode = #tpu.pipeline_mode<synchronous>, transform_indices = @transform_1, window_bounds = array<i64: 32, 128>}, {pipeline_mode = #tpu.pipeline_mode<synchronous>, transform_indices = @transform_2, window_bounds = array<i64: 128, 32>}, {pipeline_mode = #tpu.pipeline_mode<synchronous>, transform_indices = @transform_3, window_bounds = array<i64: 14, 256>}, {transform_indices = @transform_4, window_bounds = array<i64: 98>}, {transform_indices = @transform_5, window_bounds = array<i64: 3, 32, 256>}]} {
    %c0 = arith.constant 0 : index
    %c0_0 = arith.constant 0 : index
    %c0_1 = arith.constant 0 : index
    %0 = vector.load %arg1[%c0, %c0_0, %c0_1] : memref<3x32x256xf32, #tpu.memory_space<vmem>>, vector<3x8x256xf32>
    %cst = arith.constant dense<0.000000e+00> : vector<3x8xf32>
    %1 = vector.multi_reduction <add>, %0, %cst [2] : vector<3x8x256xf32> to vector<3x8xf32>
    %cst_2 = arith.constant dense<0xFF800000> : vector<3x8xf32>
    %2 = vector.multi_reduction <maximumf>, %0, %cst_2 [2] : vector<3x8x256xf32> to vector<3x8xf32>
    %c0_3 = arith.constant 0 : index
    %c8 = arith.constant 8 : index
    %c0_4 = arith.constant 0 : index
    %3 = vector.load %arg1[%c0_3, %c8, %c0_4] : memref<3x32x256xf32, #tpu.memory_space<vmem>>, vector<3x8x256xf32>
    %cst_5 = arith.constant dense<0.000000e+00> : vector<3x8xf32>
    %4 = vector.multi_reduction <add>, %3, %cst_5 [2] : vector<3x8x256xf32> to vector<3x8xf32>
    %cst_6 = arith.constant dense<0xFF800000> : vector<3x8xf32>
    %5 = vector.multi_reduction <maximumf>, %3, %cst_6 [2] : vector<3x8x256xf32> to vector<3x8xf32>
    %c0_7 = arith.constant 0 : index
    %c16 = arith.constant 16 : index
    %c0_8 = arith.constant 0 : index
    %6 = vector.load %arg1[%c0_7, %c16, %c0_8] : memref<3x32x256xf32, #tpu.memory_space<vmem>>, vector<3x8x256xf32>
    %cst_9 = arith.constant dense<0.000000e+00> : vector<3x8xf32>
    %7 = vector.multi_reduction <add>, %6, %cst_9 [2] : vector<3x8x256xf32> to vector<3x8xf32>
    %cst_10 = arith.constant dense<0xFF800000> : vector<3x8xf32>
    %8 = vector.multi_reduction <maximumf>, %6, %cst_10 [2] : vector<3x8x256xf32> to vector<3x8xf32>
    %c0_11 = arith.constant 0 : index
    %c24 = arith.constant 24 : index
    %c0_12 = arith.constant 0 : index
    %9 = vector.load %arg1[%c0_11, %c24, %c0_12] : memref<3x32x256xf32, #tpu.memory_space<vmem>>, vector<3x8x256xf32>
    %cst_13 = arith.constant dense<0.000000e+00> : vector<3x8xf32>
    %10 = vector.multi_reduction <add>, %9, %cst_13 [2] : vector<3x8x256xf32> to vector<3x8xf32>
    %cst_14 = arith.constant dense<0xFF800000> : vector<3x8xf32>
    %11 = vector.multi_reduction <maximumf>, %9, %cst_14 [2] : vector<3x8x256xf32> to vector<3x8xf32>
    %12 = tpu.concatenate %1, %4, %7, %10 in 1 : vector<3x8xf32>, vector<3x8xf32>, vector<3x8xf32>, vector<3x8xf32> -> vector<3x32xf32>
    %cst_15 = arith.constant 3.906250e-03 : f32
    %13 = vector.broadcast %cst_15 : f32 to vector<3x32xf32>
    %14 = arith.mulf %12, %13 : vector<3x32xf32>
    %15 = tpu.concatenate %2, %5, %8, %11 in 1 : vector<3x8xf32>, vector<3x8xf32>, vector<3x8xf32>, vector<3x8xf32> -> vector<3x32xf32>
    %16 = tpu.concatenate %14, %15 in 0 : vector<3x32xf32>, vector<3x32xf32> -> vector<6x32xf32>
    %c0_16 = arith.constant 0 : index
    %c0_17 = arith.constant 0 : index
    %17 = vector.load %arg2[%c0_16, %c0_17] : memref<32x128xf32, #tpu.memory_space<vmem>>, vector<32x128xf32>
    %cst_18 = arith.constant dense<0.000000e+00> : vector<6x128xf32>
    %18 = tpu.matmul %16, %17, %cst_18 {dimension_numbers = #tpu.dot_dimension_numbers<[1], [0], [0], [1], [0, 0, 1, 1], [], []>} : vector<6x32xf32>, vector<32x128xf32>, vector<6x128xf32> -> vector<6x128xf32>
    %cst_19 = arith.constant 0.000000e+00 : f32
    %19 = vector.broadcast %cst_19 : f32 to vector<6x128xf32>
    %20 = arith.maximumf %18, %19 : vector<6x128xf32>
    %c0_20 = arith.constant 0 : index
    %c0_21 = arith.constant 0 : index
    %21 = vector.load %arg3[%c0_20, %c0_21] : memref<128x32xf32, #tpu.memory_space<vmem>>, vector<128x32xf32>
    %cst_22 = arith.constant dense<0.000000e+00> : vector<6x32xf32>
    %22 = tpu.matmul %20, %21, %cst_22 {dimension_numbers = #tpu.dot_dimension_numbers<[1], [0], [0], [1], [0, 0, 1, 1], [], []>} : vector<6x128xf32>, vector<128x32xf32>, vector<6x32xf32> -> vector<6x32xf32>
    %23 = vector.extract_strided_slice %22 {offsets = [0, 0], sizes = [3, 32], strides = [1, 1]} : vector<6x32xf32> to vector<3x32xf32>
    %24 = vector.extract_strided_slice %22 {offsets = [3, 0], sizes = [3, 32], strides = [1, 1]} : vector<6x32xf32> to vector<3x32xf32>
    %25 = arith.addf %23, %24 : vector<3x32xf32>
    %26 = arith.negf %25 : vector<3x32xf32>
    %27 = math.exp %26 : vector<3x32xf32>
    %cst_23 = arith.constant 1.000000e+00 : f32
    %28 = vector.broadcast %cst_23 : f32 to vector<3x32xf32>
    %29 = arith.addf %28, %27 : vector<3x32xf32>
    %30 = arith.divf %28, %29 : vector<3x32xf32>
    %31 = vector.shape_cast %30 : vector<3x32xf32> to vector<3x32x1xf32>
    %cst_24 = arith.constant 0.000000e+00 : f32
    %32 = vector.broadcast %cst_24 : f32 to vector<3x256xf32>
    %cst_25 = arith.constant 0xFF800000 : f32
    %33 = vector.broadcast %cst_25 : f32 to vector<3x256xf32>
    %c0_26 = arith.constant 0 : index
    %c0_27 = arith.constant 0 : index
    %c0_28 = arith.constant 0 : index
    %34 = vector.load %arg1[%c0_26, %c0_27, %c0_28] : memref<3x32x256xf32, #tpu.memory_space<vmem>>, vector<3x8x256xf32>
    %35 = vector.extract_strided_slice %31 {offsets = [0, 0, 0], sizes = [3, 8, 1], strides = [1, 1, 1]} : vector<3x32x1xf32> to vector<3x8x1xf32>
    %36 = vector.broadcast %35 : vector<3x8x1xf32> to vector<3x8x256xf32>
    %37 = arith.mulf %34, %36 : vector<3x8x256xf32>
    %cst_29 = arith.constant dense<0.000000e+00> : vector<3x256xf32>
    %38 = vector.multi_reduction <add>, %37, %cst_29 [1] : vector<3x8x256xf32> to vector<3x256xf32>
    %39 = arith.addf %32, %38 : vector<3x256xf32>
    %cst_30 = arith.constant dense<0xFF800000> : vector<3x256xf32>
    %40 = vector.multi_reduction <maximumf>, %37, %cst_30 [1] : vector<3x8x256xf32> to vector<3x256xf32>
    %41 = arith.maximumf %33, %40 : vector<3x256xf32>
    %c0_31 = arith.constant 0 : index
    %c8_32 = arith.constant 8 : index
    %c0_33 = arith.constant 0 : index
    %42 = vector.load %arg1[%c0_31, %c8_32, %c0_33] : memref<3x32x256xf32, #tpu.memory_space<vmem>>, vector<3x8x256xf32>
    %43 = vector.extract_strided_slice %31 {offsets = [0, 8, 0], sizes = [3, 8, 1], strides = [1, 1, 1]} : vector<3x32x1xf32> to vector<3x8x1xf32>
    %44 = vector.broadcast %43 : vector<3x8x1xf32> to vector<3x8x256xf32>
    %45 = arith.mulf %42, %44 : vector<3x8x256xf32>
    %cst_34 = arith.constant dense<0.000000e+00> : vector<3x256xf32>
    %46 = vector.multi_reduction <add>, %45, %cst_34 [1] : vector<3x8x256xf32> to vector<3x256xf32>
    %47 = arith.addf %39, %46 : vector<3x256xf32>
    %cst_35 = arith.constant dense<0xFF800000> : vector<3x256xf32>
    %48 = vector.multi_reduction <maximumf>, %45, %cst_35 [1] : vector<3x8x256xf32> to vector<3x256xf32>
    %49 = arith.maximumf %41, %48 : vector<3x256xf32>
    %c0_36 = arith.constant 0 : index
    %c16_37 = arith.constant 16 : index
    %c0_38 = arith.constant 0 : index
    %50 = vector.load %arg1[%c0_36, %c16_37, %c0_38] : memref<3x32x256xf32, #tpu.memory_space<vmem>>, vector<3x8x256xf32>
    %51 = vector.extract_strided_slice %31 {offsets = [0, 16, 0], sizes = [3, 8, 1], strides = [1, 1, 1]} : vector<3x32x1xf32> to vector<3x8x1xf32>
    %52 = vector.broadcast %51 : vector<3x8x1xf32> to vector<3x8x256xf32>
    %53 = arith.mulf %50, %52 : vector<3x8x256xf32>
    %cst_39 = arith.constant dense<0.000000e+00> : vector<3x256xf32>
    %54 = vector.multi_reduction <add>, %53, %cst_39 [1] : vector<3x8x256xf32> to vector<3x256xf32>
    %55 = arith.addf %47, %54 : vector<3x256xf32>
    %cst_40 = arith.constant dense<0xFF800000> : vector<3x256xf32>
    %56 = vector.multi_reduction <maximumf>, %53, %cst_40 [1] : vector<3x8x256xf32> to vector<3x256xf32>
    %57 = arith.maximumf %49, %56 : vector<3x256xf32>
    %c0_41 = arith.constant 0 : index
    %c24_42 = arith.constant 24 : index
    %c0_43 = arith.constant 0 : index
    %58 = vector.load %arg1[%c0_41, %c24_42, %c0_43] : memref<3x32x256xf32, #tpu.memory_space<vmem>>, vector<3x8x256xf32>
    %59 = vector.extract_strided_slice %31 {offsets = [0, 24, 0], sizes = [3, 8, 1], strides = [1, 1, 1]} : vector<3x32x1xf32> to vector<3x8x1xf32>
    %60 = vector.broadcast %59 : vector<3x8x1xf32> to vector<3x8x256xf32>
    %61 = arith.mulf %58, %60 : vector<3x8x256xf32>
    %cst_44 = arith.constant dense<0.000000e+00> : vector<3x256xf32>
    %62 = vector.multi_reduction <add>, %61, %cst_44 [1] : vector<3x8x256xf32> to vector<3x256xf32>
    %63 = arith.addf %55, %62 : vector<3x256xf32>
    %cst_45 = arith.constant dense<0xFF800000> : vector<3x256xf32>
    %64 = vector.multi_reduction <maximumf>, %61, %cst_45 [1] : vector<3x8x256xf32> to vector<3x256xf32>
    %65 = arith.maximumf %57, %64 : vector<3x256xf32>
    %cst_46 = arith.constant 3.125000e-02 : f32
    %66 = vector.broadcast %cst_46 : f32 to vector<3x256xf32>
    %67 = arith.mulf %63, %66 : vector<3x256xf32>
    %c0_47 = arith.constant 0 : index
    %c0_48 = arith.constant 0 : index
    %68 = vector.load %arg4[%c0_47, %c0_48] : memref<14x256xf32, #tpu.memory_space<vmem>>, vector<1x256xf32>
    %c3_i32 = arith.constant 3 : i32
    %69 = tpu.dynamic_rotate %67 by %c3_i32 dim 1 : vector<3x256xf32>, i32 -> vector<3x256xf32>
    %70 = vector.broadcast %68 : vector<1x256xf32> to vector<3x256xf32>
    %71 = arith.mulf %69, %70 : vector<3x256xf32>
    %c3_i32_49 = arith.constant 3 : i32
    %72 = tpu.dynamic_rotate %65 by %c3_i32_49 dim 1 : vector<3x256xf32>, i32 -> vector<3x256xf32>
    %73 = vector.broadcast %68 : vector<1x256xf32> to vector<3x256xf32>
    %74 = arith.mulf %72, %73 : vector<3x256xf32>
    %c1 = arith.constant 1 : index
    %c0_50 = arith.constant 0 : index
    %75 = vector.load %arg4[%c1, %c0_50] : memref<14x256xf32, #tpu.memory_space<vmem>>, vector<1x256xf32>
    %c2_i32 = arith.constant 2 : i32
    %76 = tpu.dynamic_rotate %67 by %c2_i32 dim 1 : vector<3x256xf32>, i32 -> vector<3x256xf32>
    %77 = vector.broadcast %75 : vector<1x256xf32> to vector<3x256xf32>
    %78 = arith.mulf %76, %77 : vector<3x256xf32>
    %c2_i32_51 = arith.constant 2 : i32
    %79 = tpu.dynamic_rotate %65 by %c2_i32_51 dim 1 : vector<3x256xf32>, i32 -> vector<3x256xf32>
    %80 = vector.broadcast %75 : vector<1x256xf32> to vector<3x256xf32>
    %81 = arith.mulf %79, %80 : vector<3x256xf32>
    %c2 = arith.constant 2 : index
    %c0_52 = arith.constant 0 : index
    %82 = vector.load %arg4[%c2, %c0_52] : memref<14x256xf32, #tpu.memory_space<vmem>>, vector<1x256xf32>
    %c1_i32 = arith.constant 1 : i32
    %83 = tpu.dynamic_rotate %67 by %c1_i32 dim 1 : vector<3x256xf32>, i32 -> vector<3x256xf32>
    %84 = vector.broadcast %82 : vector<1x256xf32> to vector<3x256xf32>
    %85 = arith.mulf %83, %84 : vector<3x256xf32>
    %c1_i32_53 = arith.constant 1 : i32
    %86 = tpu.dynamic_rotate %65 by %c1_i32_53 dim 1 : vector<3x256xf32>, i32 -> vector<3x256xf32>
    %87 = vector.broadcast %82 : vector<1x256xf32> to vector<3x256xf32>
    %88 = arith.mulf %86, %87 : vector<3x256xf32>
    %c4 = arith.constant 4 : index
    %c0_54 = arith.constant 0 : index
    %89 = vector.load %arg4[%c4, %c0_54] : memref<14x256xf32, #tpu.memory_space<vmem>>, vector<1x256xf32>
    %c255_i32 = arith.constant 255 : i32
    %90 = tpu.dynamic_rotate %67 by %c255_i32 dim 1 : vector<3x256xf32>, i32 -> vector<3x256xf32>
    %91 = vector.broadcast %89 : vector<1x256xf32> to vector<3x256xf32>
    %92 = arith.mulf %90, %91 : vector<3x256xf32>
    %c255_i32_55 = arith.constant 255 : i32
    %93 = tpu.dynamic_rotate %65 by %c255_i32_55 dim 1 : vector<3x256xf32>, i32 -> vector<3x256xf32>
    %94 = vector.broadcast %89 : vector<1x256xf32> to vector<3x256xf32>
    %95 = arith.mulf %93, %94 : vector<3x256xf32>
    %c5 = arith.constant 5 : index
    %c0_56 = arith.constant 0 : index
    %96 = vector.load %arg4[%c5, %c0_56] : memref<14x256xf32, #tpu.memory_space<vmem>>, vector<1x256xf32>
    %c254_i32 = arith.constant 254 : i32
    %97 = tpu.dynamic_rotate %67 by %c254_i32 dim 1 : vector<3x256xf32>, i32 -> vector<3x256xf32>
    %98 = vector.broadcast %96 : vector<1x256xf32> to vector<3x256xf32>
    %99 = arith.mulf %97, %98 : vector<3x256xf32>
    %c254_i32_57 = arith.constant 254 : i32
    %100 = tpu.dynamic_rotate %65 by %c254_i32_57 dim 1 : vector<3x256xf32>, i32 -> vector<3x256xf32>
    %101 = vector.broadcast %96 : vector<1x256xf32> to vector<3x256xf32>
    %102 = arith.mulf %100, %101 : vector<3x256xf32>
    %c6 = arith.constant 6 : index
    %c0_58 = arith.constant 0 : index
    %103 = vector.load %arg4[%c6, %c0_58] : memref<14x256xf32, #tpu.memory_space<vmem>>, vector<1x256xf32>
    %c253_i32 = arith.constant 253 : i32
    %104 = tpu.dynamic_rotate %67 by %c253_i32 dim 1 : vector<3x256xf32>, i32 -> vector<3x256xf32>
    %105 = vector.broadcast %103 : vector<1x256xf32> to vector<3x256xf32>
    %106 = arith.mulf %104, %105 : vector<3x256xf32>
    %c253_i32_59 = arith.constant 253 : i32
    %107 = tpu.dynamic_rotate %65 by %c253_i32_59 dim 1 : vector<3x256xf32>, i32 -> vector<3x256xf32>
    %108 = vector.broadcast %103 : vector<1x256xf32> to vector<3x256xf32>
    %109 = arith.mulf %107, %108 : vector<3x256xf32>
    %cst_60 = arith.constant 0.000000e+00 : f32
    %110 = vector.broadcast %cst_60 : f32 to vector<3x256xf32>
    %cst_61 = arith.constant 0.000000e+00 : f32
    %111 = vector.broadcast %cst_61 : f32 to vector<3x256xf32>
    %c0_62 = arith.constant 0 : index
    %112 = memref.load %arg5[%c0_62] : memref<98xf32, #tpu.memory_space<smem>>
    %c49 = arith.constant 49 : index
    %113 = memref.load %arg5[%c49] : memref<98xf32, #tpu.memory_space<smem>>
    %114 = vector.broadcast %112 : f32 to vector<3x256xf32>
    %115 = arith.mulf %114, %71 : vector<3x256xf32>
    %116 = arith.addf %111, %115 : vector<3x256xf32>
    %117 = vector.broadcast %113 : f32 to vector<3x256xf32>
    %118 = arith.mulf %117, %74 : vector<3x256xf32>
    %119 = arith.addf %116, %118 : vector<3x256xf32>
    %c1_63 = arith.constant 1 : index
    %120 = memref.load %arg5[%c1_63] : memref<98xf32, #tpu.memory_space<smem>>
    %c50 = arith.constant 50 : index
    %121 = memref.load %arg5[%c50] : memref<98xf32, #tpu.memory_space<smem>>
    %122 = vector.broadcast %120 : f32 to vector<3x256xf32>
    %123 = arith.mulf %122, %78 : vector<3x256xf32>
    %124 = arith.addf %119, %123 : vector<3x256xf32>
    %125 = vector.broadcast %121 : f32 to vector<3x256xf32>
    %126 = arith.mulf %125, %81 : vector<3x256xf32>
    %127 = arith.addf %124, %126 : vector<3x256xf32>
    %c2_64 = arith.constant 2 : index
    %128 = memref.load %arg5[%c2_64] : memref<98xf32, #tpu.memory_space<smem>>
    %c51 = arith.constant 51 : index
    %129 = memref.load %arg5[%c51] : memref<98xf32, #tpu.memory_space<smem>>
    %130 = vector.broadcast %128 : f32 to vector<3x256xf32>
    %131 = arith.mulf %130, %85 : vector<3x256xf32>
    %132 = arith.addf %127, %131 : vector<3x256xf32>
    %133 = vector.broadcast %129 : f32 to vector<3x256xf32>
    %134 = arith.mulf %133, %88 : vector<3x256xf32>
    %135 = arith.addf %132, %134 : vector<3x256xf32>
    %c3 = arith.constant 3 : index
    %136 = memref.load %arg5[%c3] : memref<98xf32, #tpu.memory_space<smem>>
    %c52 = arith.constant 52 : index
    %137 = memref.load %arg5[%c52] : memref<98xf32, #tpu.memory_space<smem>>
    %138 = vector.broadcast %136 : f32 to vector<3x256xf32>
    %139 = arith.mulf %138, %67 : vector<3x256xf32>
    %140 = arith.addf %135, %139 : vector<3x256xf32>
    %141 = vector.broadcast %137 : f32 to vector<3x256xf32>
    %142 = arith.mulf %141, %65 : vector<3x256xf32>
    %143 = arith.addf %140, %142 : vector<3x256xf32>
    %c4_65 = arith.constant 4 : index
    %144 = memref.load %arg5[%c4_65] : memref<98xf32, #tpu.memory_space<smem>>
    %c53 = arith.constant 53 : index
    %145 = memref.load %arg5[%c53] : memref<98xf32, #tpu.memory_space<smem>>
    %146 = vector.broadcast %144 : f32 to vector<3x256xf32>
    %147 = arith.mulf %146, %92 : vector<3x256xf32>
    %148 = arith.addf %143, %147 : vector<3x256xf32>
    %149 = vector.broadcast %145 : f32 to vector<3x256xf32>
    %150 = arith.mulf %149, %95 : vector<3x256xf32>
    %151 = arith.addf %148, %150 : vector<3x256xf32>
    %c5_66 = arith.constant 5 : index
    %152 = memref.load %arg5[%c5_66] : memref<98xf32, #tpu.memory_space<smem>>
    %c54 = arith.constant 54 : index
    %153 = memref.load %arg5[%c54] : memref<98xf32, #tpu.memory_space<smem>>
    %154 = vector.broadcast %152 : f32 to vector<3x256xf32>
    %155 = arith.mulf %154, %99 : vector<3x256xf32>
    %156 = arith.addf %151, %155 : vector<3x256xf32>
    %157 = vector.broadcast %153 : f32 to vector<3x256xf32>
    %158 = arith.mulf %157, %102 : vector<3x256xf32>
    %159 = arith.addf %156, %158 : vector<3x256xf32>
    %c6_67 = arith.constant 6 : index
    %160 = memref.load %arg5[%c6_67] : memref<98xf32, #tpu.memory_space<smem>>
    %c55 = arith.constant 55 : index
    %161 = memref.load %arg5[%c55] : memref<98xf32, #tpu.memory_space<smem>>
    %162 = vector.broadcast %160 : f32 to vector<3x256xf32>
    %163 = arith.mulf %162, %106 : vector<3x256xf32>
    %164 = arith.addf %159, %163 : vector<3x256xf32>
    %165 = vector.broadcast %161 : f32 to vector<3x256xf32>
    %166 = arith.mulf %165, %109 : vector<3x256xf32>
    %167 = arith.addf %164, %166 : vector<3x256xf32>
    %c7 = arith.constant 7 : index
    %c0_68 = arith.constant 0 : index
    %168 = vector.load %arg4[%c7, %c0_68] : memref<14x256xf32, #tpu.memory_space<vmem>>, vector<1x256xf32>
    %c48_i32 = arith.constant 48 : i32
    %169 = tpu.dynamic_rotate %167 by %c48_i32 dim 1 : vector<3x256xf32>, i32 -> vector<3x256xf32>
    %170 = vector.broadcast %168 : vector<1x256xf32> to vector<3x256xf32>
    %171 = arith.mulf %169, %170 : vector<3x256xf32>
    %172 = arith.addf %110, %171 : vector<3x256xf32>
    %cst_69 = arith.constant 0.000000e+00 : f32
    %173 = vector.broadcast %cst_69 : f32 to vector<3x256xf32>
    %c7_70 = arith.constant 7 : index
    %174 = memref.load %arg5[%c7_70] : memref<98xf32, #tpu.memory_space<smem>>
    %c56 = arith.constant 56 : index
    %175 = memref.load %arg5[%c56] : memref<98xf32, #tpu.memory_space<smem>>
    %176 = vector.broadcast %174 : f32 to vector<3x256xf32>
    %177 = arith.mulf %176, %71 : vector<3x256xf32>
    %178 = arith.addf %173, %177 : vector<3x256xf32>
    %179 = vector.broadcast %175 : f32 to vector<3x256xf32>
    %180 = arith.mulf %179, %74 : vector<3x256xf32>
    %181 = arith.addf %178, %180 : vector<3x256xf32>
    %c8_71 = arith.constant 8 : index
    %182 = memref.load %arg5[%c8_71] : memref<98xf32, #tpu.memory_space<smem>>
    %c57 = arith.constant 57 : index
    %183 = memref.load %arg5[%c57] : memref<98xf32, #tpu.memory_space<smem>>
    %184 = vector.broadcast %182 : f32 to vector<3x256xf32>
    %185 = arith.mulf %184, %78 : vector<3x256xf32>
    %186 = arith.addf %181, %185 : vector<3x256xf32>
    %187 = vector.broadcast %183 : f32 to vector<3x256xf32>
    %188 = arith.mulf %187, %81 : vector<3x256xf32>
    %189 = arith.addf %186, %188 : vector<3x256xf32>
    %c9 = arith.constant 9 : index
    %190 = memref.load %arg5[%c9] : memref<98xf32, #tpu.memory_space<smem>>
    %c58 = arith.constant 58 : index
    %191 = memref.load %arg5[%c58] : memref<98xf32, #tpu.memory_space<smem>>
    %192 = vector.broadcast %190 : f32 to vector<3x256xf32>
    %193 = arith.mulf %192, %85 : vector<3x256xf32>
    %194 = arith.addf %189, %193 : vector<3x256xf32>
    %195 = vector.broadcast %191 : f32 to vector<3x256xf32>
    %196 = arith.mulf %195, %88 : vector<3x256xf32>
    %197 = arith.addf %194, %196 : vector<3x256xf32>
    %c10 = arith.constant 10 : index
    %198 = memref.load %arg5[%c10] : memref<98xf32, #tpu.memory_space<smem>>
    %c59 = arith.constant 59 : index
    %199 = memref.load %arg5[%c59] : memref<98xf32, #tpu.memory_space<smem>>
    %200 = vector.broadcast %198 : f32 to vector<3x256xf32>
    %201 = arith.mulf %200, %67 : vector<3x256xf32>
    %202 = arith.addf %197, %201 : vector<3x256xf32>
    %203 = vector.broadcast %199 : f32 to vector<3x256xf32>
    %204 = arith.mulf %203, %65 : vector<3x256xf32>
    %205 = arith.addf %202, %204 : vector<3x256xf32>
    %c11 = arith.constant 11 : index
    %206 = memref.load %arg5[%c11] : memref<98xf32, #tpu.memory_space<smem>>
    %c60 = arith.constant 60 : index
    %207 = memref.load %arg5[%c60] : memref<98xf32, #tpu.memory_space<smem>>
    %208 = vector.broadcast %206 : f32 to vector<3x256xf32>
    %209 = arith.mulf %208, %92 : vector<3x256xf32>
    %210 = arith.addf %205, %209 : vector<3x256xf32>
    %211 = vector.broadcast %207 : f32 to vector<3x256xf32>
    %212 = arith.mulf %211, %95 : vector<3x256xf32>
    %213 = arith.addf %210, %212 : vector<3x256xf32>
    %c12 = arith.constant 12 : index
    %214 = memref.load %arg5[%c12] : memref<98xf32, #tpu.memory_space<smem>>
    %c61 = arith.constant 61 : index
    %215 = memref.load %arg5[%c61] : memref<98xf32, #tpu.memory_space<smem>>
    %216 = vector.broadcast %214 : f32 to vector<3x256xf32>
    %217 = arith.mulf %216, %99 : vector<3x256xf32>
    %218 = arith.addf %213, %217 : vector<3x256xf32>
    %219 = vector.broadcast %215 : f32 to vector<3x256xf32>
    %220 = arith.mulf %219, %102 : vector<3x256xf32>
    %221 = arith.addf %218, %220 : vector<3x256xf32>
    %c13 = arith.constant 13 : index
    %222 = memref.load %arg5[%c13] : memref<98xf32, #tpu.memory_space<smem>>
    %c62 = arith.constant 62 : index
    %223 = memref.load %arg5[%c62] : memref<98xf32, #tpu.memory_space<smem>>
    %224 = vector.broadcast %222 : f32 to vector<3x256xf32>
    %225 = arith.mulf %224, %106 : vector<3x256xf32>
    %226 = arith.addf %221, %225 : vector<3x256xf32>
    %227 = vector.broadcast %223 : f32 to vector<3x256xf32>
    %228 = arith.mulf %227, %109 : vector<3x256xf32>
    %229 = arith.addf %226, %228 : vector<3x256xf32>
    %c8_72 = arith.constant 8 : index
    %c0_73 = arith.constant 0 : index
    %230 = vector.load %arg4[%c8_72, %c0_73] : memref<14x256xf32, #tpu.memory_space<vmem>>, vector<1x256xf32>
    %c32_i32 = arith.constant 32 : i32
    %231 = tpu.dynamic_rotate %229 by %c32_i32 dim 1 : vector<3x256xf32>, i32 -> vector<3x256xf32>
    %232 = vector.broadcast %230 : vector<1x256xf32> to vector<3x256xf32>
    %233 = arith.mulf %231, %232 : vector<3x256xf32>
    %234 = arith.addf %172, %233 : vector<3x256xf32>
    %cst_74 = arith.constant 0.000000e+00 : f32
    %235 = vector.broadcast %cst_74 : f32 to vector<3x256xf32>
    %c14 = arith.constant 14 : index
    %236 = memref.load %arg5[%c14] : memref<98xf32, #tpu.memory_space<smem>>
    %c63 = arith.constant 63 : index
    %237 = memref.load %arg5[%c63] : memref<98xf32, #tpu.memory_space<smem>>
    %238 = vector.broadcast %236 : f32 to vector<3x256xf32>
    %239 = arith.mulf %238, %71 : vector<3x256xf32>
    %240 = arith.addf %235, %239 : vector<3x256xf32>
    %241 = vector.broadcast %237 : f32 to vector<3x256xf32>
    %242 = arith.mulf %241, %74 : vector<3x256xf32>
    %243 = arith.addf %240, %242 : vector<3x256xf32>
    %c15 = arith.constant 15 : index
    %244 = memref.load %arg5[%c15] : memref<98xf32, #tpu.memory_space<smem>>
    %c64 = arith.constant 64 : index
    %245 = memref.load %arg5[%c64] : memref<98xf32, #tpu.memory_space<smem>>
    %246 = vector.broadcast %244 : f32 to vector<3x256xf32>
    %247 = arith.mulf %246, %78 : vector<3x256xf32>
    %248 = arith.addf %243, %247 : vector<3x256xf32>
    %249 = vector.broadcast %245 : f32 to vector<3x256xf32>
    %250 = arith.mulf %249, %81 : vector<3x256xf32>
    %251 = arith.addf %248, %250 : vector<3x256xf32>
    %c16_75 = arith.constant 16 : index
    %252 = memref.load %arg5[%c16_75] : memref<98xf32, #tpu.memory_space<smem>>
    %c65 = arith.constant 65 : index
    %253 = memref.load %arg5[%c65] : memref<98xf32, #tpu.memory_space<smem>>
    %254 = vector.broadcast %252 : f32 to vector<3x256xf32>
    %255 = arith.mulf %254, %85 : vector<3x256xf32>
    %256 = arith.addf %251, %255 : vector<3x256xf32>
    %257 = vector.broadcast %253 : f32 to vector<3x256xf32>
    %258 = arith.mulf %257, %88 : vector<3x256xf32>
    %259 = arith.addf %256, %258 : vector<3x256xf32>
    %c17 = arith.constant 17 : index
    %260 = memref.load %arg5[%c17] : memref<98xf32, #tpu.memory_space<smem>>
    %c66 = arith.constant 66 : index
    %261 = memref.load %arg5[%c66] : memref<98xf32, #tpu.memory_space<smem>>
    %262 = vector.broadcast %260 : f32 to vector<3x256xf32>
    %263 = arith.mulf %262, %67 : vector<3x256xf32>
    %264 = arith.addf %259, %263 : vector<3x256xf32>
    %265 = vector.broadcast %261 : f32 to vector<3x256xf32>
    %266 = arith.mulf %265, %65 : vector<3x256xf32>
    %267 = arith.addf %264, %266 : vector<3x256xf32>
    %c18 = arith.constant 18 : index
    %268 = memref.load %arg5[%c18] : memref<98xf32, #tpu.memory_space<smem>>
    %c67 = arith.constant 67 : index
    %269 = memref.load %arg5[%c67] : memref<98xf32, #tpu.memory_space<smem>>
    %270 = vector.broadcast %268 : f32 to vector<3x256xf32>
    %271 = arith.mulf %270, %92 : vector<3x256xf32>
    %272 = arith.addf %267, %271 : vector<3x256xf32>
    %273 = vector.broadcast %269 : f32 to vector<3x256xf32>
    %274 = arith.mulf %273, %95 : vector<3x256xf32>
    %275 = arith.addf %272, %274 : vector<3x256xf32>
    %c19 = arith.constant 19 : index
    %276 = memref.load %arg5[%c19] : memref<98xf32, #tpu.memory_space<smem>>
    %c68 = arith.constant 68 : index
    %277 = memref.load %arg5[%c68] : memref<98xf32, #tpu.memory_space<smem>>
    %278 = vector.broadcast %276 : f32 to vector<3x256xf32>
    %279 = arith.mulf %278, %99 : vector<3x256xf32>
    %280 = arith.addf %275, %279 : vector<3x256xf32>
    %281 = vector.broadcast %277 : f32 to vector<3x256xf32>
    %282 = arith.mulf %281, %102 : vector<3x256xf32>
    %283 = arith.addf %280, %282 : vector<3x256xf32>
    %c20 = arith.constant 20 : index
    %284 = memref.load %arg5[%c20] : memref<98xf32, #tpu.memory_space<smem>>
    %c69 = arith.constant 69 : index
    %285 = memref.load %arg5[%c69] : memref<98xf32, #tpu.memory_space<smem>>
    %286 = vector.broadcast %284 : f32 to vector<3x256xf32>
    %287 = arith.mulf %286, %106 : vector<3x256xf32>
    %288 = arith.addf %283, %287 : vector<3x256xf32>
    %289 = vector.broadcast %285 : f32 to vector<3x256xf32>
    %290 = arith.mulf %289, %109 : vector<3x256xf32>
    %291 = arith.addf %288, %290 : vector<3x256xf32>
    %c9_76 = arith.constant 9 : index
    %c0_77 = arith.constant 0 : index
    %292 = vector.load %arg4[%c9_76, %c0_77] : memref<14x256xf32, #tpu.memory_space<vmem>>, vector<1x256xf32>
    %c16_i32 = arith.constant 16 : i32
    %293 = tpu.dynamic_rotate %291 by %c16_i32 dim 1 : vector<3x256xf32>, i32 -> vector<3x256xf32>
    %294 = vector.broadcast %292 : vector<1x256xf32> to vector<3x256xf32>
    %295 = arith.mulf %293, %294 : vector<3x256xf32>
    %296 = arith.addf %234, %295 : vector<3x256xf32>
    %cst_78 = arith.constant 0.000000e+00 : f32
    %297 = vector.broadcast %cst_78 : f32 to vector<3x256xf32>
    %c21 = arith.constant 21 : index
    %298 = memref.load %arg5[%c21] : memref<98xf32, #tpu.memory_space<smem>>
    %c70 = arith.constant 70 : index
    %299 = memref.load %arg5[%c70] : memref<98xf32, #tpu.memory_space<smem>>
    %300 = vector.broadcast %298 : f32 to vector<3x256xf32>
    %301 = arith.mulf %300, %71 : vector<3x256xf32>
    %302 = arith.addf %297, %301 : vector<3x256xf32>
    %303 = vector.broadcast %299 : f32 to vector<3x256xf32>
    %304 = arith.mulf %303, %74 : vector<3x256xf32>
    %305 = arith.addf %302, %304 : vector<3x256xf32>
    %c22 = arith.constant 22 : index
    %306 = memref.load %arg5[%c22] : memref<98xf32, #tpu.memory_space<smem>>
    %c71 = arith.constant 71 : index
    %307 = memref.load %arg5[%c71] : memref<98xf32, #tpu.memory_space<smem>>
    %308 = vector.broadcast %306 : f32 to vector<3x256xf32>
    %309 = arith.mulf %308, %78 : vector<3x256xf32>
    %310 = arith.addf %305, %309 : vector<3x256xf32>
    %311 = vector.broadcast %307 : f32 to vector<3x256xf32>
    %312 = arith.mulf %311, %81 : vector<3x256xf32>
    %313 = arith.addf %310, %312 : vector<3x256xf32>
    %c23 = arith.constant 23 : index
    %314 = memref.load %arg5[%c23] : memref<98xf32, #tpu.memory_space<smem>>
    %c72 = arith.constant 72 : index
    %315 = memref.load %arg5[%c72] : memref<98xf32, #tpu.memory_space<smem>>
    %316 = vector.broadcast %314 : f32 to vector<3x256xf32>
    %317 = arith.mulf %316, %85 : vector<3x256xf32>
    %318 = arith.addf %313, %317 : vector<3x256xf32>
    %319 = vector.broadcast %315 : f32 to vector<3x256xf32>
    %320 = arith.mulf %319, %88 : vector<3x256xf32>
    %321 = arith.addf %318, %320 : vector<3x256xf32>
    %c24_79 = arith.constant 24 : index
    %322 = memref.load %arg5[%c24_79] : memref<98xf32, #tpu.memory_space<smem>>
    %c73 = arith.constant 73 : index
    %323 = memref.load %arg5[%c73] : memref<98xf32, #tpu.memory_space<smem>>
    %324 = vector.broadcast %322 : f32 to vector<3x256xf32>
    %325 = arith.mulf %324, %67 : vector<3x256xf32>
    %326 = arith.addf %321, %325 : vector<3x256xf32>
    %327 = vector.broadcast %323 : f32 to vector<3x256xf32>
    %328 = arith.mulf %327, %65 : vector<3x256xf32>
    %329 = arith.addf %326, %328 : vector<3x256xf32>
    %c25 = arith.constant 25 : index
    %330 = memref.load %arg5[%c25] : memref<98xf32, #tpu.memory_space<smem>>
    %c74 = arith.constant 74 : index
    %331 = memref.load %arg5[%c74] : memref<98xf32, #tpu.memory_space<smem>>
    %332 = vector.broadcast %330 : f32 to vector<3x256xf32>
    %333 = arith.mulf %332, %92 : vector<3x256xf32>
    %334 = arith.addf %329, %333 : vector<3x256xf32>
    %335 = vector.broadcast %331 : f32 to vector<3x256xf32>
    %336 = arith.mulf %335, %95 : vector<3x256xf32>
    %337 = arith.addf %334, %336 : vector<3x256xf32>
    %c26 = arith.constant 26 : index
    %338 = memref.load %arg5[%c26] : memref<98xf32, #tpu.memory_space<smem>>
    %c75 = arith.constant 75 : index
    %339 = memref.load %arg5[%c75] : memref<98xf32, #tpu.memory_space<smem>>
    %340 = vector.broadcast %338 : f32 to vector<3x256xf32>
    %341 = arith.mulf %340, %99 : vector<3x256xf32>
    %342 = arith.addf %337, %341 : vector<3x256xf32>
    %343 = vector.broadcast %339 : f32 to vector<3x256xf32>
    %344 = arith.mulf %343, %102 : vector<3x256xf32>
    %345 = arith.addf %342, %344 : vector<3x256xf32>
    %c27 = arith.constant 27 : index
    %346 = memref.load %arg5[%c27] : memref<98xf32, #tpu.memory_space<smem>>
    %c76 = arith.constant 76 : index
    %347 = memref.load %arg5[%c76] : memref<98xf32, #tpu.memory_space<smem>>
    %348 = vector.broadcast %346 : f32 to vector<3x256xf32>
    %349 = arith.mulf %348, %106 : vector<3x256xf32>
    %350 = arith.addf %345, %349 : vector<3x256xf32>
    %351 = vector.broadcast %347 : f32 to vector<3x256xf32>
    %352 = arith.mulf %351, %109 : vector<3x256xf32>
    %353 = arith.addf %350, %352 : vector<3x256xf32>
    %354 = arith.addf %296, %353 : vector<3x256xf32>
    %cst_80 = arith.constant 0.000000e+00 : f32
    %355 = vector.broadcast %cst_80 : f32 to vector<3x256xf32>
    %c28 = arith.constant 28 : index
    %356 = memref.load %arg5[%c28] : memref<98xf32, #tpu.memory_space<smem>>
    %c77 = arith.constant 77 : index
    %357 = memref.load %arg5[%c77] : memref<98xf32, #tpu.memory_space<smem>>
    %358 = vector.broadcast %356 : f32 to vector<3x256xf32>
    %359 = arith.mulf %358, %71 : vector<3x256xf32>
    %360 = arith.addf %355, %359 : vector<3x256xf32>
    %361 = vector.broadcast %357 : f32 to vector<3x256xf32>
    %362 = arith.mulf %361, %74 : vector<3x256xf32>
    %363 = arith.addf %360, %362 : vector<3x256xf32>
    %c29 = arith.constant 29 : index
    %364 = memref.load %arg5[%c29] : memref<98xf32, #tpu.memory_space<smem>>
    %c78 = arith.constant 78 : index
    %365 = memref.load %arg5[%c78] : memref<98xf32, #tpu.memory_space<smem>>
    %366 = vector.broadcast %364 : f32 to vector<3x256xf32>
    %367 = arith.mulf %366, %78 : vector<3x256xf32>
    %368 = arith.addf %363, %367 : vector<3x256xf32>
    %369 = vector.broadcast %365 : f32 to vector<3x256xf32>
    %370 = arith.mulf %369, %81 : vector<3x256xf32>
    %371 = arith.addf %368, %370 : vector<3x256xf32>
    %c30 = arith.constant 30 : index
    %372 = memref.load %arg5[%c30] : memref<98xf32, #tpu.memory_space<smem>>
    %c79 = arith.constant 79 : index
    %373 = memref.load %arg5[%c79] : memref<98xf32, #tpu.memory_space<smem>>
    %374 = vector.broadcast %372 : f32 to vector<3x256xf32>
    %375 = arith.mulf %374, %85 : vector<3x256xf32>
    %376 = arith.addf %371, %375 : vector<3x256xf32>
    %377 = vector.broadcast %373 : f32 to vector<3x256xf32>
    %378 = arith.mulf %377, %88 : vector<3x256xf32>
    %379 = arith.addf %376, %378 : vector<3x256xf32>
    %c31 = arith.constant 31 : index
    %380 = memref.load %arg5[%c31] : memref<98xf32, #tpu.memory_space<smem>>
    %c80 = arith.constant 80 : index
    %381 = memref.load %arg5[%c80] : memref<98xf32, #tpu.memory_space<smem>>
    %382 = vector.broadcast %380 : f32 to vector<3x256xf32>
    %383 = arith.mulf %382, %67 : vector<3x256xf32>
    %384 = arith.addf %379, %383 : vector<3x256xf32>
    %385 = vector.broadcast %381 : f32 to vector<3x256xf32>
    %386 = arith.mulf %385, %65 : vector<3x256xf32>
    %387 = arith.addf %384, %386 : vector<3x256xf32>
    %c32 = arith.constant 32 : index
    %388 = memref.load %arg5[%c32] : memref<98xf32, #tpu.memory_space<smem>>
    %c81 = arith.constant 81 : index
    %389 = memref.load %arg5[%c81] : memref<98xf32, #tpu.memory_space<smem>>
    %390 = vector.broadcast %388 : f32 to vector<3x256xf32>
    %391 = arith.mulf %390, %92 : vector<3x256xf32>
    %392 = arith.addf %387, %391 : vector<3x256xf32>
    %393 = vector.broadcast %389 : f32 to vector<3x256xf32>
    %394 = arith.mulf %393, %95 : vector<3x256xf32>
    %395 = arith.addf %392, %394 : vector<3x256xf32>
    %c33 = arith.constant 33 : index
    %396 = memref.load %arg5[%c33] : memref<98xf32, #tpu.memory_space<smem>>
    %c82 = arith.constant 82 : index
    %397 = memref.load %arg5[%c82] : memref<98xf32, #tpu.memory_space<smem>>
    %398 = vector.broadcast %396 : f32 to vector<3x256xf32>
    %399 = arith.mulf %398, %99 : vector<3x256xf32>
    %400 = arith.addf %395, %399 : vector<3x256xf32>
    %401 = vector.broadcast %397 : f32 to vector<3x256xf32>
    %402 = arith.mulf %401, %102 : vector<3x256xf32>
    %403 = arith.addf %400, %402 : vector<3x256xf32>
    %c34 = arith.constant 34 : index
    %404 = memref.load %arg5[%c34] : memref<98xf32, #tpu.memory_space<smem>>
    %c83 = arith.constant 83 : index
    %405 = memref.load %arg5[%c83] : memref<98xf32, #tpu.memory_space<smem>>
    %406 = vector.broadcast %404 : f32 to vector<3x256xf32>
    %407 = arith.mulf %406, %106 : vector<3x256xf32>
    %408 = arith.addf %403, %407 : vector<3x256xf32>
    %409 = vector.broadcast %405 : f32 to vector<3x256xf32>
    %410 = arith.mulf %409, %109 : vector<3x256xf32>
    %411 = arith.addf %408, %410 : vector<3x256xf32>
    %c11_81 = arith.constant 11 : index
    %c0_82 = arith.constant 0 : index
    %412 = vector.load %arg4[%c11_81, %c0_82] : memref<14x256xf32, #tpu.memory_space<vmem>>, vector<1x256xf32>
    %c240_i32 = arith.constant 240 : i32
    %413 = tpu.dynamic_rotate %411 by %c240_i32 dim 1 : vector<3x256xf32>, i32 -> vector<3x256xf32>
    %414 = vector.broadcast %412 : vector<1x256xf32> to vector<3x256xf32>
    %415 = arith.mulf %413, %414 : vector<3x256xf32>
    %416 = arith.addf %354, %415 : vector<3x256xf32>
    %cst_83 = arith.constant 0.000000e+00 : f32
    %417 = vector.broadcast %cst_83 : f32 to vector<3x256xf32>
    %c35 = arith.constant 35 : index
    %418 = memref.load %arg5[%c35] : memref<98xf32, #tpu.memory_space<smem>>
    %c84 = arith.constant 84 : index
    %419 = memref.load %arg5[%c84] : memref<98xf32, #tpu.memory_space<smem>>
    %420 = vector.broadcast %418 : f32 to vector<3x256xf32>
    %421 = arith.mulf %420, %71 : vector<3x256xf32>
    %422 = arith.addf %417, %421 : vector<3x256xf32>
    %423 = vector.broadcast %419 : f32 to vector<3x256xf32>
    %424 = arith.mulf %423, %74 : vector<3x256xf32>
    %425 = arith.addf %422, %424 : vector<3x256xf32>
    %c36 = arith.constant 36 : index
    %426 = memref.load %arg5[%c36] : memref<98xf32, #tpu.memory_space<smem>>
    %c85 = arith.constant 85 : index
    %427 = memref.load %arg5[%c85] : memref<98xf32, #tpu.memory_space<smem>>
    %428 = vector.broadcast %426 : f32 to vector<3x256xf32>
    %429 = arith.mulf %428, %78 : vector<3x256xf32>
    %430 = arith.addf %425, %429 : vector<3x256xf32>
    %431 = vector.broadcast %427 : f32 to vector<3x256xf32>
    %432 = arith.mulf %431, %81 : vector<3x256xf32>
    %433 = arith.addf %430, %432 : vector<3x256xf32>
    %c37 = arith.constant 37 : index
    %434 = memref.load %arg5[%c37] : memref<98xf32, #tpu.memory_space<smem>>
    %c86 = arith.constant 86 : index
    %435 = memref.load %arg5[%c86] : memref<98xf32, #tpu.memory_space<smem>>
    %436 = vector.broadcast %434 : f32 to vector<3x256xf32>
    %437 = arith.mulf %436, %85 : vector<3x256xf32>
    %438 = arith.addf %433, %437 : vector<3x256xf32>
    %439 = vector.broadcast %435 : f32 to vector<3x256xf32>
    %440 = arith.mulf %439, %88 : vector<3x256xf32>
    %441 = arith.addf %438, %440 : vector<3x256xf32>
    %c38 = arith.constant 38 : index
    %442 = memref.load %arg5[%c38] : memref<98xf32, #tpu.memory_space<smem>>
    %c87 = arith.constant 87 : index
    %443 = memref.load %arg5[%c87] : memref<98xf32, #tpu.memory_space<smem>>
    %444 = vector.broadcast %442 : f32 to vector<3x256xf32>
    %445 = arith.mulf %444, %67 : vector<3x256xf32>
    %446 = arith.addf %441, %445 : vector<3x256xf32>
    %447 = vector.broadcast %443 : f32 to vector<3x256xf32>
    %448 = arith.mulf %447, %65 : vector<3x256xf32>
    %449 = arith.addf %446, %448 : vector<3x256xf32>
    %c39 = arith.constant 39 : index
    %450 = memref.load %arg5[%c39] : memref<98xf32, #tpu.memory_space<smem>>
    %c88 = arith.constant 88 : index
    %451 = memref.load %arg5[%c88] : memref<98xf32, #tpu.memory_space<smem>>
    %452 = vector.broadcast %450 : f32 to vector<3x256xf32>
    %453 = arith.mulf %452, %92 : vector<3x256xf32>
    %454 = arith.addf %449, %453 : vector<3x256xf32>
    %455 = vector.broadcast %451 : f32 to vector<3x256xf32>
    %456 = arith.mulf %455, %95 : vector<3x256xf32>
    %457 = arith.addf %454, %456 : vector<3x256xf32>
    %c40 = arith.constant 40 : index
    %458 = memref.load %arg5[%c40] : memref<98xf32, #tpu.memory_space<smem>>
    %c89 = arith.constant 89 : index
    %459 = memref.load %arg5[%c89] : memref<98xf32, #tpu.memory_space<smem>>
    %460 = vector.broadcast %458 : f32 to vector<3x256xf32>
    %461 = arith.mulf %460, %99 : vector<3x256xf32>
    %462 = arith.addf %457, %461 : vector<3x256xf32>
    %463 = vector.broadcast %459 : f32 to vector<3x256xf32>
    %464 = arith.mulf %463, %102 : vector<3x256xf32>
    %465 = arith.addf %462, %464 : vector<3x256xf32>
    %c41 = arith.constant 41 : index
    %466 = memref.load %arg5[%c41] : memref<98xf32, #tpu.memory_space<smem>>
    %c90 = arith.constant 90 : index
    %467 = memref.load %arg5[%c90] : memref<98xf32, #tpu.memory_space<smem>>
    %468 = vector.broadcast %466 : f32 to vector<3x256xf32>
    %469 = arith.mulf %468, %106 : vector<3x256xf32>
    %470 = arith.addf %465, %469 : vector<3x256xf32>
    %471 = vector.broadcast %467 : f32 to vector<3x256xf32>
    %472 = arith.mulf %471, %109 : vector<3x256xf32>
    %473 = arith.addf %470, %472 : vector<3x256xf32>
    %c12_84 = arith.constant 12 : index
    %c0_85 = arith.constant 0 : index
    %474 = vector.load %arg4[%c12_84, %c0_85] : memref<14x256xf32, #tpu.memory_space<vmem>>, vector<1x256xf32>
    %c224_i32 = arith.constant 224 : i32
    %475 = tpu.dynamic_rotate %473 by %c224_i32 dim 1 : vector<3x256xf32>, i32 -> vector<3x256xf32>
    %476 = vector.broadcast %474 : vector<1x256xf32> to vector<3x256xf32>
    %477 = arith.mulf %475, %476 : vector<3x256xf32>
    %478 = arith.addf %416, %477 : vector<3x256xf32>
    %cst_86 = arith.constant 0.000000e+00 : f32
    %479 = vector.broadcast %cst_86 : f32 to vector<3x256xf32>
    %c42 = arith.constant 42 : index
    %480 = memref.load %arg5[%c42] : memref<98xf32, #tpu.memory_space<smem>>
    %c91 = arith.constant 91 : index
    %481 = memref.load %arg5[%c91] : memref<98xf32, #tpu.memory_space<smem>>
    %482 = vector.broadcast %480 : f32 to vector<3x256xf32>
    %483 = arith.mulf %482, %71 : vector<3x256xf32>
    %484 = arith.addf %479, %483 : vector<3x256xf32>
    %485 = vector.broadcast %481 : f32 to vector<3x256xf32>
    %486 = arith.mulf %485, %74 : vector<3x256xf32>
    %487 = arith.addf %484, %486 : vector<3x256xf32>
    %c43 = arith.constant 43 : index
    %488 = memref.load %arg5[%c43] : memref<98xf32, #tpu.memory_space<smem>>
    %c92 = arith.constant 92 : index
    %489 = memref.load %arg5[%c92] : memref<98xf32, #tpu.memory_space<smem>>
    %490 = vector.broadcast %488 : f32 to vector<3x256xf32>
    %491 = arith.mulf %490, %78 : vector<3x256xf32>
    %492 = arith.addf %487, %491 : vector<3x256xf32>
    %493 = vector.broadcast %489 : f32 to vector<3x256xf32>
    %494 = arith.mulf %493, %81 : vector<3x256xf32>
    %495 = arith.addf %492, %494 : vector<3x256xf32>
    %c44 = arith.constant 44 : index
    %496 = memref.load %arg5[%c44] : memref<98xf32, #tpu.memory_space<smem>>
    %c93 = arith.constant 93 : index
    %497 = memref.load %arg5[%c93] : memref<98xf32, #tpu.memory_space<smem>>
    %498 = vector.broadcast %496 : f32 to vector<3x256xf32>
    %499 = arith.mulf %498, %85 : vector<3x256xf32>
    %500 = arith.addf %495, %499 : vector<3x256xf32>
    %501 = vector.broadcast %497 : f32 to vector<3x256xf32>
    %502 = arith.mulf %501, %88 : vector<3x256xf32>
    %503 = arith.addf %500, %502 : vector<3x256xf32>
    %c45 = arith.constant 45 : index
    %504 = memref.load %arg5[%c45] : memref<98xf32, #tpu.memory_space<smem>>
    %c94 = arith.constant 94 : index
    %505 = memref.load %arg5[%c94] : memref<98xf32, #tpu.memory_space<smem>>
    %506 = vector.broadcast %504 : f32 to vector<3x256xf32>
    %507 = arith.mulf %506, %67 : vector<3x256xf32>
    %508 = arith.addf %503, %507 : vector<3x256xf32>
    %509 = vector.broadcast %505 : f32 to vector<3x256xf32>
    %510 = arith.mulf %509, %65 : vector<3x256xf32>
    %511 = arith.addf %508, %510 : vector<3x256xf32>
    %c46 = arith.constant 46 : index
    %512 = memref.load %arg5[%c46] : memref<98xf32, #tpu.memory_space<smem>>
    %c95 = arith.constant 95 : index
    %513 = memref.load %arg5[%c95] : memref<98xf32, #tpu.memory_space<smem>>
    %514 = vector.broadcast %512 : f32 to vector<3x256xf32>
    %515 = arith.mulf %514, %92 : vector<3x256xf32>
    %516 = arith.addf %511, %515 : vector<3x256xf32>
    %517 = vector.broadcast %513 : f32 to vector<3x256xf32>
    %518 = arith.mulf %517, %95 : vector<3x256xf32>
    %519 = arith.addf %516, %518 : vector<3x256xf32>
    %c47 = arith.constant 47 : index
    %520 = memref.load %arg5[%c47] : memref<98xf32, #tpu.memory_space<smem>>
    %c96 = arith.constant 96 : index
    %521 = memref.load %arg5[%c96] : memref<98xf32, #tpu.memory_space<smem>>
    %522 = vector.broadcast %520 : f32 to vector<3x256xf32>
    %523 = arith.mulf %522, %99 : vector<3x256xf32>
    %524 = arith.addf %519, %523 : vector<3x256xf32>
    %525 = vector.broadcast %521 : f32 to vector<3x256xf32>
    %526 = arith.mulf %525, %102 : vector<3x256xf32>
    %527 = arith.addf %524, %526 : vector<3x256xf32>
    %c48 = arith.constant 48 : index
    %528 = memref.load %arg5[%c48] : memref<98xf32, #tpu.memory_space<smem>>
    %c97 = arith.constant 97 : index
    %529 = memref.load %arg5[%c97] : memref<98xf32, #tpu.memory_space<smem>>
    %530 = vector.broadcast %528 : f32 to vector<3x256xf32>
    %531 = arith.mulf %530, %106 : vector<3x256xf32>
    %532 = arith.addf %527, %531 : vector<3x256xf32>
    %533 = vector.broadcast %529 : f32 to vector<3x256xf32>
    %534 = arith.mulf %533, %109 : vector<3x256xf32>
    %535 = arith.addf %532, %534 : vector<3x256xf32>
    %c13_87 = arith.constant 13 : index
    %c0_88 = arith.constant 0 : index
    %536 = vector.load %arg4[%c13_87, %c0_88] : memref<14x256xf32, #tpu.memory_space<vmem>>, vector<1x256xf32>
    %c208_i32 = arith.constant 208 : i32
    %537 = tpu.dynamic_rotate %535 by %c208_i32 dim 1 : vector<3x256xf32>, i32 -> vector<3x256xf32>
    %538 = vector.broadcast %536 : vector<1x256xf32> to vector<3x256xf32>
    %539 = arith.mulf %537, %538 : vector<3x256xf32>
    %540 = arith.addf %478, %539 : vector<3x256xf32>
    %541 = arith.negf %540 : vector<3x256xf32>
    %542 = math.exp %541 : vector<3x256xf32>
    %cst_89 = arith.constant 1.000000e+00 : f32
    %543 = vector.broadcast %cst_89 : f32 to vector<3x256xf32>
    %544 = arith.addf %543, %542 : vector<3x256xf32>
    %545 = arith.divf %543, %544 : vector<3x256xf32>
    %c0_90 = arith.constant 0 : index
    %c0_91 = arith.constant 0 : index
    %c0_92 = arith.constant 0 : index
    %546 = vector.load %arg1[%c0_90, %c0_91, %c0_92] : memref<3x32x256xf32, #tpu.memory_space<vmem>>, vector<3x8x256xf32>
    %547 = vector.extract_strided_slice %31 {offsets = [0, 0, 0], sizes = [3, 8, 1], strides = [1, 1, 1]} : vector<3x32x1xf32> to vector<3x8x1xf32>
    %548 = vector.broadcast %547 : vector<3x8x1xf32> to vector<3x8x256xf32>
    %549 = arith.mulf %546, %548 : vector<3x8x256xf32>
    %550 = vector.shape_cast %545 : vector<3x256xf32> to vector<3x1x256xf32>
    %551 = vector.broadcast %550 : vector<3x1x256xf32> to vector<3x8x256xf32>
    %552 = arith.mulf %549, %551 : vector<3x8x256xf32>
    %c0_93 = arith.constant 0 : index
    %c0_94 = arith.constant 0 : index
    %c0_95 = arith.constant 0 : index
    %553 = vector.load %arg6[%c0_93, %c0_94, %c0_95] : memref<3x32x256xf32, #tpu.memory_space<vmem>>, vector<3x8x256xf32>
    tpu.vector_store %arg6[%c0_93, %c0_94, %c0_95], %552 {strides = array<i32>} : memref<3x32x256xf32, #tpu.memory_space<vmem>>, vector<3x8x256xf32>,
    %c0_96 = arith.constant 0 : index
    %c8_97 = arith.constant 8 : index
    %c0_98 = arith.constant 0 : index
    %554 = vector.load %arg1[%c0_96, %c8_97, %c0_98] : memref<3x32x256xf32, #tpu.memory_space<vmem>>, vector<3x8x256xf32>
    %555 = vector.extract_strided_slice %31 {offsets = [0, 8, 0], sizes = [3, 8, 1], strides = [1, 1, 1]} : vector<3x32x1xf32> to vector<3x8x1xf32>
    %556 = vector.broadcast %555 : vector<3x8x1xf32> to vector<3x8x256xf32>
    %557 = arith.mulf %554, %556 : vector<3x8x256xf32>
    %558 = vector.shape_cast %545 : vector<3x256xf32> to vector<3x1x256xf32>
    %559 = vector.broadcast %558 : vector<3x1x256xf32> to vector<3x8x256xf32>
    %560 = arith.mulf %557, %559 : vector<3x8x256xf32>
    %c0_99 = arith.constant 0 : index
    %c8_100 = arith.constant 8 : index
    %c0_101 = arith.constant 0 : index
    %561 = vector.load %arg6[%c0_99, %c8_100, %c0_101] : memref<3x32x256xf32, #tpu.memory_space<vmem>>, vector<3x8x256xf32>
    tpu.vector_store %arg6[%c0_99, %c8_100, %c0_101], %560 {strides = array<i32>} : memref<3x32x256xf32, #tpu.memory_space<vmem>>, vector<3x8x256xf32>,
    %c0_102 = arith.constant 0 : index
    %c16_103 = arith.constant 16 : index
    %c0_104 = arith.constant 0 : index
    %562 = vector.load %arg1[%c0_102, %c16_103, %c0_104] : memref<3x32x256xf32, #tpu.memory_space<vmem>>, vector<3x8x256xf32>
    %563 = vector.extract_strided_slice %31 {offsets = [0, 16, 0], sizes = [3, 8, 1], strides = [1, 1, 1]} : vector<3x32x1xf32> to vector<3x8x1xf32>
    %564 = vector.broadcast %563 : vector<3x8x1xf32> to vector<3x8x256xf32>
    %565 = arith.mulf %562, %564 : vector<3x8x256xf32>
    %566 = vector.shape_cast %545 : vector<3x256xf32> to vector<3x1x256xf32>
    %567 = vector.broadcast %566 : vector<3x1x256xf32> to vector<3x8x256xf32>
    %568 = arith.mulf %565, %567 : vector<3x8x256xf32>
    %c0_105 = arith.constant 0 : index
    %c16_106 = arith.constant 16 : index
    %c0_107 = arith.constant 0 : index
    %569 = vector.load %arg6[%c0_105, %c16_106, %c0_107] : memref<3x32x256xf32, #tpu.memory_space<vmem>>, vector<3x8x256xf32>
    tpu.vector_store %arg6[%c0_105, %c16_106, %c0_107], %568 {strides = array<i32>} : memref<3x32x256xf32, #tpu.memory_space<vmem>>, vector<3x8x256xf32>,
    %c0_108 = arith.constant 0 : index
    %c24_109 = arith.constant 24 : index
    %c0_110 = arith.constant 0 : index
    %570 = vector.load %arg1[%c0_108, %c24_109, %c0_110] : memref<3x32x256xf32, #tpu.memory_space<vmem>>, vector<3x8x256xf32>
    %571 = vector.extract_strided_slice %31 {offsets = [0, 24, 0], sizes = [3, 8, 1], strides = [1, 1, 1]} : vector<3x32x1xf32> to vector<3x8x1xf32>
    %572 = vector.broadcast %571 : vector<3x8x1xf32> to vector<3x8x256xf32>
    %573 = arith.mulf %570, %572 : vector<3x8x256xf32>
    %574 = vector.shape_cast %545 : vector<3x256xf32> to vector<3x1x256xf32>
    %575 = vector.broadcast %574 : vector<3x1x256xf32> to vector<3x8x256xf32>
    %576 = arith.mulf %573, %575 : vector<3x8x256xf32>
    %c0_111 = arith.constant 0 : index
    %c24_112 = arith.constant 24 : index
    %c0_113 = arith.constant 0 : index
    %577 = vector.load %arg6[%c0_111, %c24_112, %c0_113] : memref<3x32x256xf32, #tpu.memory_space<vmem>>, vector<3x8x256xf32>
    tpu.vector_store %arg6[%c0_111, %c24_112, %c0_113], %576 {strides = array<i32>} : memref<3x32x256xf32, #tpu.memory_space<vmem>>, vector<3x8x256xf32>,
    return
  }
  func.func @transform_0(%arg0: i32) -> (i32, i32, i32) {
    %c0_i32 = arith.constant 0 : i32
    %c0_i32_0 = arith.constant 0 : i32
    %c0_i32_1 = arith.constant 0 : i32
    return %arg0, %c0_i32, %c0_i32_0 : i32, i32, i32
  }
  func.func @transform_1(%arg0: i32) -> (i32, i32) {
    %c0_i32 = arith.constant 0 : i32
    %c0_i32_0 = arith.constant 0 : i32
    %c0_i32_1 = arith.constant 0 : i32
    return %c0_i32, %c0_i32_0 : i32, i32
  }
  func.func @transform_2(%arg0: i32) -> (i32, i32) {
    %c0_i32 = arith.constant 0 : i32
    %c0_i32_0 = arith.constant 0 : i32
    %c0_i32_1 = arith.constant 0 : i32
    return %c0_i32, %c0_i32_0 : i32, i32
  }
  func.func @transform_3(%arg0: i32) -> (i32, i32) {
    %c0_i32 = arith.constant 0 : i32
    %c0_i32_0 = arith.constant 0 : i32
    %c0_i32_1 = arith.constant 0 : i32
    return %c0_i32, %c0_i32_0 : i32, i32
  }
  func.func @transform_4(%arg0: i32) -> i32 {
    %c0_i32 = arith.constant 0 : i32
    %c0_i32_0 = arith.constant 0 : i32
    return %c0_i32 : i32
  }
  func.func @transform_5(%arg0: i32) -> (i32, i32, i32) {
    %c0_i32 = arith.constant 0 : i32
    %c0_i32_0 = arith.constant 0 : i32
    %c0_i32_1 = arith.constant 0 : i32
    return %arg0, %c0_i32, %c0_i32_0 : i32, i32, i32
  }
}

</mosaic_0001>

<bundles_post_ra>
// kernel: tpu_custom_call.1
= control target key start
LH: loop header
LB: loop body
LE: loop exit
PB: predicated region body
PF: predicated region fallthrough
CT: control target
= control target key end

     0   :  { %s5136_s0 = inlined_call_operand.hbm [shape: f32[6,32,256], index: 0, kind: input, shape index: {}]   ;;  %s5137_s1 = inlined_call_operand.vmem [shape: f32[32,128], index: 1, kind: input, shape index: {}]   ;;  %s5138_s2 = inlined_call_operand.vmem [shape: f32[128,32], index: 2, kind: input, shape index: {}]   ;;  %s5139_s3 = inlined_call_operand.vmem [shape: f32[14,256], index: 3, kind: input, shape index: {}]   ;;  %s5140_s4 = inlined_call_operand.vmem [shape: f32[98], index: 4, kind: input, shape index: {}]   ;;  %s5141_s5 = inlined_call_operand.hbm [shape: f32[6,32,256], index: 5, kind: output, shape index: {}]  }
   0x1   :  { %5304 = sst [smem:[#allocation156_spill]] %s5136_s0 }
   0x2   :  { %5305 = sst [smem:[#allocation157_spill]] %s5137_s1 }
   0x3   :  { %5306 = sst [smem:[#allocation158_spill]] %s5138_s2 }
   0x4   :  { %5307 = sst [smem:[#allocation159_spill]] %s5139_s3 }
   0x5   :  { %5308 = sst [smem:[#allocation160_spill]] %s5140_s4 }
   0x6   :  { %5309 = sst [smem:[#allocation161_spill]] %s5141_s5 }
   0x7   :  { %10 = vsyncpa [#allocation3], 0 }
   0x8   :  { %12 = vsyncpa [#allocation3 + $0x1], 0 }
   0x9   :  { %13 = vsyncpa [#allocation5], 0 }
   0xa   :  { %14 = vsyncpa [#allocation4], 0 }
   0xb   :  { %16 = vsyncpa [#allocation4 + $0x1], 0  ;;  %s2994_s18 = smov 0   ;;  %s2996_s19 = smov 0  }
   0xc   :  { %s2998_s20 = smov 0   ;;  %s3000_s21 = smov 0  }
   0xd LB: > { %5310 = sst [smem:[#allocation11_spill]] %s2929_s18  ;;  %s3015_s22 = sadd.s32 4294967295, %s2941_s21   ;;  %s2941_s21 = sphi %s3000_s21, %s5824_s21   ;;  %s2937_s20 = sphi %s2998_s20, %s5827_s20   ;;  %s2933_s19 = sphi %s2996_s19, %s5826_s19   ;;  %s2929_s18 = sphi %s2994_s18, %s5825_s18  }
   0xe   : > { %5311 = sst [smem:[#allocation12_spill]] %s2933_s19  ;;  %s2527_s23 = sadd.s32 4294967294, %s2941_s21  }
   0xf   : > { %5312 = sst [smem:[#allocation13_spill]] %s2937_s20  ;;  %s3019_s24 = sadd.s32 1, %s2941_s21  }
  0x10   : > { %5313 = sst [smem:[#allocation14_spill]] %s2941_s21  ;;  %s29_s25 = sadd.s32 1, %s2937_s20 }
  0x11   : > { %5314 = sst [smem:[#allocation15_spill]] %s3015_s22  ;;  %s26_s26 = ssub.s32 %s2941_s21, %s3019_s24 }
  0x12   : > { %5315 = sst [smem:[#allocation16_spill]] %s3019_s24  ;;  %p36_p0 = scmp.ne.s32.totalorder %s2937_s20, %s2933_s19 }
  0x13   : > { %p27_p1 = scmp.eq.s32.totalorder %s26_s26, 0  ;;  %p37_p2 = scmp.eq.s32.totalorder %s2941_s21, 0 }
  0x14   : > { %p42_p3 = scmp.ne.s32.totalorder %s2933_s19, %s2929_s18  ;;  %p5143_p4 = scmp.eq.s32.totalorder %s3015_s22, 0 }
  0x15   : > { %s3031_s27 = scalar_select %p27_p1, %s2937_s20, %s29_s25  }
  0x16   : > { %p3033_p5 = por %p37_p2, %p36_p0  ;;  %p3039_p6 = por %p5143_p4, %p42_p3 }
  0x17   : > { %5316 = sst [smem:[#allocation17_spill]] %s3031_s27  ;;  %p150_p7 = scmp.eq.s32.totalorder %s3015_s22, 1 }
  0x18   : > { %s5318_s29 = scalar_select %p3039_p6, 1, 0 }
  0x19   : > { %p156_p8 = scmp.eq.s32.totalorder %s2527_s23, 1  ;;  %p2528_p9 = scmp.ge.s32.totalorder %s2941_s21, 1 }
  0x1a   : > { %p163_p10 = scmp.lt.s32.totalorder %s2941_s21, 3  ;;  %p3046_p11 = por %p150_p7, %p36_p0 }
  0x1b   : > { %p3050_p12 = por %p156_p8, %p42_p3  ;;  %s5324_s4 = sld [smem:[#allocation160_spill]] }
  0x1c   : > { %s5319_s30 = scalar_select %p3046_p11, 1, 0 }
  0x1d   : > { %s5321_s6 = scalar_select %p3050_p12, 1, 0 }
  0x1e   : > { %5320 = sst [smem:[#allocation18_spill]] %s5319_s30  ;;  %p3054_p13 = pnand %p2528_p9, %p163_p10 }
  0x1f   : > { %5322 = sst [smem:[#allocation19_spill]] %s5321_s6  ;;  %p2748_p2 = scmp.lt.s32.totalorder %s2941_s21, 2 }
  0x20   : > { %s5323_s7 = scalar_select %p3054_p13, 1, 0 }
  0x21   : > { %s185_s10 = sshll.u32 %s5324_s4, 4  ;;  %p2735_p1 = pneg %p3054_p13  ;;  %s186_s10 = int_to_ptr.vmem [resolvable:$true] %s185_s10 }
  0x22   : > { %s196_s12 = sand.u32 1, %s2937_s20   ;;  %p3074_p3 = pnand %p2748_p2, %p3033_p5 }
  0x23   : > { %p3067_p7 = pnand %p2735_p1, %p5143_p4  ;;  %s2725_s14 = smul.u32 192, %s196_s12 }
  0x24   : > { %s2830_s15 = scalar_lea.vmem %s186_s10, 16  ;;  %p2838_p12 = scmp.lt.s32.totalorder %s186_s10, %s186_s10 }
  0x25   : > { %p2831_p8 = scmp.ne.s32.totalorder %s186_s10, %s2830_s15  ;;  %p2832_p9 = pneg %p3067_p7 }
  0x26   : > { %p2839_p11 = scmp.lt.s32.totalorder %s2830_s15, %s2830_s15 }
  0x27   : > { %p2833_p10 = pnand %p2832_p9, %p2831_p8 }
  0x28   : > { %p2840_p1 = por %p2839_p11, %p2838_p12 }
  0x29   : > { %p2834_p0 = pneg %p2833_p10 }
  0x2b   : > { %p2841_p4 = pnand %p2840_p1, %p2834_p0 }
  0x2d   : > { %2844 = shalt.err (!%p2841_p4)
}
  0x2e   : > { %s2943_s16 = smov [#allocation6]   ;;  %s2655_s17 = smul.u32 3072, %s2941_s21 }
  0x2f   : > { %2738 = dma.vmem_to_smem (!%p3067_p7), %s186_s10, 16, %s2943_s16, [#allocation5]  }
  0x30   : > { %s200_s23 = scalar_lea.vmem [#allocation2], %s2725_s14  ;;  %s5327_s0 = sld [smem:[#allocation156_spill]] }
  0x31   : > { %s208_s25 = sshll.u32 %s200_s23, 4  ;;  %s3090_s9 = scalar_lea.sflag [#allocation3], %s196_s12  ;;  %s3083_s25 = int_to_ptr.vmem [resolvable:$true] %s208_s25 }
  0x32   : > { %p2847_p5 = pneg %p3074_p3 }
  0x36   : > { %s3088_s8 = scalar_lea.hbm %s5327_s0, %s2655_s17  ;;  %s2850_s14 = scalar_lea.hbm %s5327_s0, 6144 }
  0x37   : > { %s2845_s15 = scalar_lea.hbm %s3088_s8, 3072  ;;  %p2851_p0 = scmp.lt.s32.totalorder %s3088_s8, %s5327_s0 }
  0x38   : > { %p2846_p4 = scmp.ne.s32.totalorder %s3088_s8, %s2845_s15  ;;  %p2852_p2 = scmp.lt.s32.totalorder %s2850_s14, %s2845_s15 }
  0x3a   : > { %p2848_p11 = pnand %p2847_p5, %p2846_p4  ;;  %p2853_p7 = por %p2852_p2, %p2851_p0 }
  0x3c   : > { %p2849_p12 = pneg %p2848_p11 }
  0x3e   : > { %p2854_p8 = pnand %p2853_p7, %p2849_p12 }
  0x40   : > { %2857 = shalt.err (!%p2854_p8)
}
  0x41   : > { %s2858_s12 = scalar_lea.vmem %s3083_s25, 3072  ;;  %s2944_s17 = smov [#allocation2]  }
  0x42   : > { %p2859_p9 = scmp.ne.s32.totalorder %s3083_s25, %s2858_s12  ;;  %s2863_s26 = sshll.u32 %s2944_s17, 4  ;;  %s2864_s26 = int_to_ptr.vmem [resolvable:$false] %s2863_s26 }
  0x43   : > { %s2865_s28 = scalar_lea.vmem %s2864_s26, 6144  ;;  %p2866_p4 = scmp.lt.s32.totalorder %s3083_s25, %s2864_s26 }
  0x44   : > { %p2861_p10 = pnand %p2859_p9, %p2847_p5  ;;  %p2867_p11 = scmp.lt.s32.totalorder %s2865_s28, %s2858_s12 }
  0x46   : > { %p2862_p1 = pneg %p2861_p10  ;;  %p2868_p6 = por %p2867_p11, %p2866_p4 }
  0x48   : > { %p2869_p13 = pnand %p2868_p6, %p2862_p1 }
  0x4a   : > { %2872 = shalt.err (!%p2869_p13)
}
  0x4b   : > { %s2945_s15 = smov 256   ;;  %s2946_s10 = smov 16  }
  0x4c   : > { %2742 = dma.hbm_to_vmem [thread:$0]  (!%p3074_p3), %s3088_s8, 3072, %s3083_s25, %s3090_s9, %s2945_s15, %s2945_s15, %s2946_s10  }
  0x4d   : > { %p5328_p5 = scmp.ne.s32.totalorder %s5323_s7, 0 }
  0x4f   : > { %220 = sbr.rel (%p5328_p5) target bundleno = 1359 (0x54f), region = 40 }
  0x54   : > { %s3114_s11 = sand.u32 1, %s2933_s19   ;;  %p5331_p6 = scmp.ne.s32.totalorder %s5318_s29, 0 }
  0x55   : > { %5329 = sst [smem:[#allocation20_spill]] %s3114_s11  ;;  %s5169_s14 = smul.u32 192, %s3114_s11 }
  0x56   : > { %s223_s16 = scalar_lea.sflag [#allocation3], %s3114_s11 }
  0x57   : > { %s3120_s23 = scalar_lea.vmem [#allocation2], %s5169_s14 }
  0x58   : > { %5330 = sst [smem:[#allocation21_spill]] %s3120_s23 }
  0x59   : > { %2916 = dma.done.wait (%p5331_p6), %s223_s16, 3072  }
  0x5a   : > { %2918 = vsyncadd (%p5331_p6), %s223_s16, 4294964224  ;;  %p5332_p13 = scmp.eq.s32.totalorder %s3015_s22, 0 }
  0x5c   : > { %2920 = dma.done.wait (%p5332_p13), [#allocation5], 16   ;;  %p5333_p3 = pmov %p5332_p13 }
  0x5e   : > { %2922 = vsyncadd (%p5333_p3), [#allocation5], 4294967280 }
  0x5f   : > { %235 = sfence }
  0x60   : > { %v3131_v0 = vld [vmem:[%s3120_s23] sm:$0xff]  ;;  %v3134_v1 = vld [vmem:[%s3120_s23 + $0x8] sm:$0xff]  ;;  %v3151_v8 = vld [vmem:[%s3120_s23 + $0x50] sm:$0xff]  ;;  %v5146_v48 = vmov 0.0   ;;  %s5335_s1 = sld [smem:[#allocation157_spill]]  ;;  %vm2948_vm0 = vmmov 0  }
  0x61   : > { %v3137_v2 = vld [vmem:[%s3120_s23 + $0x40] sm:$0xff]  ;;  %v275_v3 = vmax.f32 %v3131_v0, %v3134_v1  ;;  %v266_v4 = vadd.f32 %v3134_v1, %v3131_v0  ;;  %v3144_v5 = vld [vmem:[%s3120_s23 + $0x48] sm:$0xff]  ;;  %v3154_v9 = vld [vmem:[%s3120_s23 + $0x58] sm:$0xff]  ;;  %2679 = vmatprep.subr.mxu0 %v5146_v48  ;;  %2690 = vmatprep.subr.mxu1 %v5146_v48  ;;  %s5336_s2 = sld [smem:[#allocation158_spill]]  ;;  %vm373_vm1 = vcmask 1041409   ;;  %vm375_vm2 = vcmask 1042434  }
  0x62   : > { %v278_v6 = vmax.f32 %v3137_v2, %v3144_v5  ;;  %v269_v7 = vadd.f32 %v3144_v5, %v3137_v2  ;;  %v3157_v10 = vld [vmem:[%s3120_s23 + $0x10] sm:$0xff]  ;;  %v3160_v11 = vld [vmem:[%s3120_s23 + $0x18] sm:$0xff]  ;;  %v293_v12 = vadd.f32 %v3154_v9, %v3151_v8  ;;  %v302_v14 = vmax.f32 %v3151_v8, %v3154_v9  ;;  %v3171_v16 = vld [vmem:[%s3120_s23 + $0x80] sm:$0xff]  ;;  %2687 = vmatprep.mubr.msk.f32.mxu0 %vm2948_vm0, %v5146_v48  ;;  %s3574_s7 = sld [smem:[#allocation6 + $0x3]]  ;;  %s2949_s25 = smov 3  }
  0x63   : > { %276 = vmax.xlane.f32.xlu1 %v275_v3  ;;  %267 = vadd.xlane.f32.xlu0 %v266_v4  ;;  %v290_v13 = vadd.f32 %v3160_v11, %v3157_v10  ;;  %v299_v15 = vmax.f32 %v3157_v10, %v3160_v11  ;;  %v3174_v17 = vld [vmem:[%s3120_s23 + $0x88] sm:$0xff]  ;;  %v3181_v20 = vld [vmem:[%s3120_s23 + $0x90] sm:$0xff]  ;;  %v3184_v21 = vld [vmem:[%s3120_s23 + $0x98] sm:$0xff]  ;;  %vm435_vm3 = vcmask 64512   ;;  %vm437_vm4 = vcmask 130048   ;;  %s2548_s13 = sld [smem:[#allocation6 + $0x34]] }
  0x64   : > { %v281_v18 = vmax.f32 %v3171_v16, %v3174_v17  ;;  %v272_v19 = vadd.f32 %v3174_v17, %v3171_v16  ;;  %v305_v22 = vmax.f32 %v3181_v20, %v3184_v21  ;;  %v296_v23 = vadd.f32 %v3184_v21, %v3181_v20  ;;  %v3191_v24 = vld [vmem:[%s3120_s23 + $0x60] sm:$0xff]  ;;  %v3194_v25 = vld [vmem:[%s3120_s23 + $0x68] sm:$0xff]  ;;  %v3221_v36 = vld [vmem:[%s3120_s23 + $0x70] sm:$0xff]  ;;  %2722 = vmatprep.mubr.msk.f32.mxu1 %vm2948_vm0, %v5146_v48  ;;  %s2562_s8 = sld [smem:[#allocation6 + $0xa]]  ;;  %s2950_s12 = smov 2  }
  0x65   : > { %v3197_v26 = vld [vmem:[%s3120_s23 + $0x20] sm:$0xff]  ;;  %v3200_v27 = vld [vmem:[%s3120_s23 + $0x28] sm:$0xff]  ;;  %v317_v28 = vadd.f32 %v3194_v25, %v3191_v24  ;;  %v326_v30 = vmax.f32 %v3191_v24, %v3194_v25  ;;  %v3224_v37 = vld [vmem:[%s3120_s23 + $0x78] sm:$0xff]  ;;  %vm439_vm5 = vcmask 195584   ;;  %vm520_vm6 = vcmask 1042432   ;;  %s2563_s9 = sld [smem:[#allocation6 + $0x3b]] }
  0x66   : > { %v314_v29 = vadd.f32 %v3200_v27, %v3197_v26  ;;  %v323_v31 = vmax.f32 %v3197_v26, %v3200_v27  ;;  %v3211_v32 = vld [vmem:[%s3120_s23 + $0xa0] sm:$0xff]  ;;  %v3214_v33 = vld [vmem:[%s3120_s23 + $0xa8] sm:$0xff]  ;;  %v3227_v38 = vld [vmem:[%s3120_s23 + $0x30] sm:$0xff]  ;;  %v341_v40 = vadd.f32 %v3224_v37, %v3221_v36  ;;  %v350_v42 = vmax.f32 %v3221_v36, %v3224_v37  ;;  %s2951_s17 = smov 1   ;;  %s3647_s26 = sld [smem:[#allocation6 + $0x11]] }
  0x67   : > { %279 = vmax.xlane.f32.xlu1 %v278_v6  ;;  %270 = vadd.xlane.f32.xlu0 %v269_v7  ;;  %v329_v34 = vmax.f32 %v3211_v32, %v3214_v33  ;;  %v320_v35 = vadd.f32 %v3214_v33, %v3211_v32  ;;  %v3230_v39 = vld [vmem:[%s3120_s23 + $0x38] sm:$0xff]  ;;  %v3241_v44 = vld [vmem:[%s3120_s23 + $0xb0] sm:$0xff]  ;;  %v523_v51 = vld [vmem:[%s5335_s1 + $0x8] sm:$0xff]  ;;  %vm526_vm7 = vcmask 261120   ;;  %s3654_s28 = sld [smem:[#allocation6 + $0x42]]  ;;  %s2952_s15 = smov 127  }
  0x68   : > { %v338_v41 = vadd.f32 %v3230_v39, %v3227_v38  ;;  %v347_v43 = vmax.f32 %v3227_v38, %v3230_v39  ;;  %v3244_v45 = vld [vmem:[%s3120_s23 + $0xb8] sm:$0xff]  ;;  %v524_v50 = vld [vmem:[%s5335_s1 + $0x10] sm:$0xff]  ;;  %v522_v52 = vld [vmem:[%s5335_s1] sm:$0xff]  ;;  %s2606_s10 = sld [smem:[#allocation6 + $0x1f]] }
  0x69   : > { %5334 = vst [vmem:[#allocation22_spill] sm:$0xff] %v3244_v45  ;;  %v353_v46 = vmax.f32 %v3241_v44, %v3244_v45  ;;  %v344_v47 = vadd.f32 %v3244_v45, %v3241_v44  ;;  %v525_v49 = vld [vmem:[%s5335_s1 + $0x18] sm:$0xff]  ;;  %v615_v54 = vld [vmem:[%s5336_s2 + $0x70] sm:$0xff]  ;;  %v614_v55 = vld [vmem:[%s5336_s2 + $0x68] sm:$0xff]  ;;  %s2607_s16 = sld [smem:[#allocation6 + $0x50]] }
  0x6a   : > { %2680 = vmatpush3.msra.mxu0 %v525_v49  ;;  %v616_v53 = vld [vmem:[%s5336_s2 + $0x78] sm:$0xff]  ;;  %v613_v56 = vld [vmem:[%s5336_s2 + $0x60] sm:$0xff]  ;;  %v611_v58 = vld [vmem:[%s5336_s2 + $0x50] sm:$0xff]  ;;  %s2621_s29 = sld [smem:[#allocation6 + $0x26]] }
  0x6b   : > { %294 = vadd.xlane.f32.xlu1 %v293_v12  ;;  %291 = vadd.xlane.f32.xlu0 %v290_v13  ;;  %v612_v57 = vld [vmem:[%s5336_s2 + $0x58] sm:$0xff]  ;;  %v610_v59 = vld [vmem:[%s5336_s2 + $0x48] sm:$0xff]  ;;  %v609_v60 = vld [vmem:[%s5336_s2 + $0x40] sm:$0xff]  ;;  %s3889_s14 = sld [smem:[#allocation6 + $0xe]] }
  0x6c   : > { %2681 = vmatprep.subr.mxu0 %v5146_v48  ;;  %2691 = vmatpush3.msra.mxu1 %v616_v53  ;;  %v608_v61 = vld [vmem:[%s5336_s2 + $0x38] sm:$0xff]  ;;  %v607_v62 = vld [vmem:[%s5336_s2 + $0x30] sm:$0xff]  ;;  %v606_v63 = vld [vmem:[%s5336_s2 + $0x28] sm:$0xff]  ;;  %s3898_s0 = sld [smem:[#allocation6 + $0x1c]] }
  0x6d   : > { %2682 = vmatpush3.msra.mxu0 %v524_v50  ;;  %2692 = vmatprep.subr.mxu1 %v5146_v48  ;;  %v605_v3 = vld [vmem:[%s5336_s2 + $0x20] sm:$0xff]  ;;  %v604_v4 = vld [vmem:[%s5336_s2 + $0x18] sm:$0xff]  ;;  %v603_v6 = vld [vmem:[%s5336_s2 + $0x10] sm:$0xff]  ;;  %s3905_s1 = sld [smem:[#allocation6 + $0x23]] }
  0x6e   : > { %2683 = vmatprep.subr.mxu0 %v5146_v48  ;;  %2693 = vmatpush3.msra.mxu1 %v615_v54  ;;  %s3920_s4 = sld [smem:[#allocation6 + $0x8]] }
  0x6f   : > { %303 = vmax.xlane.f32.xlu1 %v302_v14  ;;  %300 = vmax.xlane.f32.xlu0 %v299_v15  ;;  %s3926_s27 = sld [smem:[#allocation6 + $0xf]] }
  0x70   : > { %2684 = vmatpush3.msra.mxu0 %v523_v51  ;;  %2694 = vmatprep.subr.mxu1 %v5146_v48  ;;  %s3931_s20 = sld [smem:[#allocation6 + $0x16]] }
  0x71   : > { %2685 = vmatprep.subr.mxu0 %v5146_v48  ;;  %2695 = vmatpush3.msra.mxu1 %v614_v55  ;;  %5387 = sst [smem:[#allocation68_spill]] %s3889_s14 }
  0x72   : > { %2686 = vmatpush3.msra.mxu0 %v522_v52  ;;  %2696 = vmatprep.subr.mxu1 %v5146_v48  ;;  %5389 = sst [smem:[#allocation70_spill]] %s3898_s0 }
  0x73   : > { %282 = vmax.xlane.f32.xlu1 %v281_v18  ;;  %273 = vadd.xlane.f32.xlu0 %v272_v19  ;;  %5391 = sst [smem:[#allocation72_spill]] %s3905_s1 }
  0x74   : > { %2697 = vmatpush3.msra.mxu1 %v613_v56  ;;  %5395 = sst [smem:[#allocation76_spill]] %s3920_s4 }
  0x75   : > { %2698 = vmatprep.subr.mxu1 %v5146_v48  ;;  %5397 = sst [smem:[#allocation78_spill]] %s3926_s27 }
  0x76   : > { %2699 = vmatpush3.msra.mxu1 %v612_v57  ;;  %5399 = sst [smem:[#allocation80_spill]] %s3931_s20 }
  0x77   : > { %306 = vmax.xlane.f32.xlu1 %v305_v22  ;;  %297 = vadd.xlane.f32.xlu0 %v296_v23  ;;  %s3933_s19 = sld [smem:[#allocation6 + $0x1d]] }
  0x78   : > { %2700 = vmatprep.subr.mxu1 %v5146_v48  ;;  %s3935_s24 = sld [smem:[#allocation6 + $0x24]] }
  0x79   : > { %2701 = vmatpush3.msra.mxu1 %v611_v58  ;;  %s3937_s21 = sld [smem:[#allocation6 + $0x2b]] }
  0x7a   : > { %2702 = vmatprep.subr.mxu1 %v5146_v48  ;;  %s3939_s6 = sld [smem:[#allocation6 + $0x17]] }
  0x7b   : > { %318 = vadd.xlane.f32.xlu1 %v317_v28  ;;  %315 = vadd.xlane.f32.xlu0 %v314_v29  ;;  %s3941_s18 = sld [smem:[#allocation6 + $0x33]] }
  0x7c   : > { %2703 = vmatpush3.msra.mxu1 %v610_v59  ;;  %s3943_s5 = sld [smem:[#allocation6 + $0x35]] }
  0x7d   : > { %2704 = vmatprep.subr.mxu1 %v5146_v48  ;;  %5400 = sst [smem:[#allocation81_spill]] %s3933_s19 }
  0x7e   : > { %2705 = vmatpush3.msra.mxu1 %v609_v60  ;;  %5401 = sst [smem:[#allocation82_spill]] %s3935_s24 }
  0x7f   : > { %327 = vmax.xlane.f32.xlu1 %v326_v30  ;;  %324 = vmax.xlane.f32.xlu0 %v323_v31  ;;  %v359_v31 = vlaneseq  ;;  %5402 = sst [smem:[#allocation83_spill]] %s3937_s21 }
  0x80   : > { %2706 = vmatprep.subr.mxu1 %v5146_v48  ;;  %5403 = sst [smem:[#allocation84_spill]] %s3939_s6 }
  0x81   : > { %2707 = vmatpush3.msra.mxu1 %v608_v61  ;;  %5404 = sst [smem:[#allocation85_spill]] %s3941_s18 }
  0x82   : > { %2708 = vmatprep.subr.mxu1 %v5146_v48  ;;  %5405 = sst [smem:[#allocation86_spill]] %s3943_s5 }
  0x83   : > { %330 = vmax.xlane.f32.xlu1 %v329_v34  ;;  %321 = vadd.xlane.f32.xlu0 %v320_v35  ;;  %s3945_s30 = sld [smem:[#allocation6 + $0x39]] }
  0x84   : > { %2709 = vmatpush3.msra.mxu1 %v607_v62  ;;  %s3947_s11 = sld [smem:[#allocation6 + $0x2]] }
  0x85   : > { %2710 = vmatprep.subr.mxu1 %v5146_v48  ;;  %s3949_s22 = sld [smem:[#allocation6 + $0x3a]] }
  0x86   : > { %2711 = vmatpush3.msra.mxu1 %v606_v63  ;;  %s3951_s23 = sld [smem:[#allocation6 + $0x3c]] }
  0x87   : > { %342 = vadd.xlane.f32.xlu1 %v341_v40  ;;  %339 = vadd.xlane.f32.xlu0 %v338_v41  ;;  %v3337_v40 = vand.u32 127, %v359_v31  ;;  %s3953_s20 = sld [smem:[#allocation6 + $0x40]] }
  0x88   : > { %2712 = vmatprep.subr.mxu1 %v5146_v48  ;;  %s3955_s19 = sld [smem:[#allocation6 + $0x36]] }
  0x89   : > { %2713 = vmatpush3.msra.mxu1 %v605_v3  ;;  %5337 = vst [vmem:[#allocation23_spill] sm:$0xff] %v3337_v40  ;;  %v419_v51 = vadd.s32 4294967272, %v3337_v40  ;;  %5406 = sst [smem:[#allocation87_spill]] %s3945_s30 }
  0x8a   : > { %2714 = vmatprep.subr.mxu1 %v5146_v48  ;;  %5407 = sst [smem:[#allocation88_spill]] %s3947_s11 }
  0x8b   : > { %351 = vmax.xlane.f32.xlu1 %v350_v42  ;;  %348 = vmax.xlane.f32.xlu0 %v347_v43  ;;  %v381_v43 = vadd.s32 4294967288, %v3337_v40  ;;  %5408 = sst [smem:[#allocation89_spill]] %s3949_s22 }
  0x8c   : > { %2715 = vmatpush3.msra.mxu1 %v604_v4  ;;  %5409 = sst [smem:[#allocation90_spill]] %s3951_s23 }
  0x8d   : > { %2716 = vmatprep.subr.mxu1 %v5146_v48  ;;  %5410 = sst [smem:[#allocation91_spill]] %s3953_s20 }
  0x8e   : > { %2717 = vmatpush3.msra.mxu1 %v603_v6  ;;  %5411 = sst [smem:[#allocation92_spill]] %s3955_s19 }
  0x8f   : > { %354 = vmax.xlane.f32.xlu1 %v353_v46  ;;  %345 = vadd.xlane.f32.xlu0 %v344_v47  ;;  %v3340_v46 = vshrl.u32 %v359_v31, 7  ;;  %v400_v47 = vadd.s32 4294967280, %v3337_v40  ;;  %s3957_s24 = sld [smem:[#allocation6 + $0x9]] }
  0x90   : > { %2718 = vmatprep.subr.mxu1 %v5146_v48  ;;  %s3959_s21 = sld [smem:[#allocation6 + $0x41]] }
  0x91   : > { %5338 = vst [vmem:[#allocation24_spill] sm:$0xff] %v3340_v46  ;;  %v384_v52 = vsub.s32 %v381_v43, %v3340_v46  ;;  %v363_v53 = vsub.s32 %v3337_v40, %v3340_v46  ;;  %v403_v54 = vsub.s32 %v400_v47, %v3340_v46  ;;  %v422_v55 = vsub.s32 %v419_v51, %v3340_v46  ;;  %s3961_s6 = sld [smem:[#allocation6 + $0x43]] }
  0x92   : > { %s3963_s18 = sld [smem:[#allocation6 + $0x4]] }
  0x93   : > { %s3965_s5 = sld [smem:[#allocation6 + $0x4e]] }
  0x94   : > { %s3967_s30 = sld [smem:[#allocation6 + $0x3d]] }
  0x95   : > { %5412 = sst [smem:[#allocation93_spill]] %s3957_s24 }
  0x96   : > { %5413 = sst [smem:[#allocation94_spill]] %s3959_s21 }
  0x97   : > { %5414 = sst [smem:[#allocation95_spill]] %s3961_s6 }
  0x98   : > { %5415 = sst [smem:[#allocation96_spill]] %s3963_s18 }
  0x99   : > { %5416 = sst [smem:[#allocation97_spill]] %s3965_s5 }
  0x9a   : > { %5417 = sst [smem:[#allocation98_spill]] %s3967_s30 }
  0x9b   : > { %s3969_s11 = sld [smem:[#allocation6 + $0x4f]] }
  0x9c   : > { %s3971_s22 = sld [smem:[#allocation6 + $0x5]] }
  0x9d   : > { %s3973_s23 = sld [smem:[#allocation6 + $0x51]] }
  0x9e   : > { %s3975_s20 = sld [smem:[#allocation6 + $0xb]] }
  0x9f   : > { %s3977_s19 = sld [smem:[#allocation6 + $0x10]] }
  0xa0   : > { %s3979_s24 = sld [smem:[#allocation6 + $0x6]] }
  0xa1   : > { %5418 = sst [smem:[#allocation99_spill]] %s3969_s11 }
  0xa2   : > { %5419 = sst [smem:[#allocation100_spill]] %s3971_s22 }
  0xa3   : > { %5420 = sst [smem:[#allocation101_spill]] %s3973_s23 }
  0xa4   : > { %s3981_s21 = sld [smem:[#allocation6 + $0x37]] }
  0xa5   : > { %5421 = sst [smem:[#allocation102_spill]] %s3977_s19 }
  0xa6   : > { %5422 = sst [smem:[#allocation103_spill]] %s3979_s24 }
  0xa7   : > { %s3983_s6 = sld [smem:[#allocation6 + $0xc]] }
  0xa8   : > { %s3985_s18 = sld [smem:[#allocation6 + $0x44]] }
  0xa9   : > { %s3987_s5 = sld [smem:[#allocation6 + $0x55]] }
  0xaa   : > { %5423 = sst [smem:[#allocation104_spill]] %s3981_s21 }
  0xab   : > { %s3989_s30 = sld [smem:[#allocation6 + $0x56]] }
  0xac   : > { %s3991_s11 = sld [smem:[#allocation6 + $0xd]] }
  0xad   : > { %5424 = sst [smem:[#allocation105_spill]] %s3983_s6 }
  0xae   : > { %5425 = sst [smem:[#allocation106_spill]] %s3985_s18 }
  0xaf   : > { %5426 = sst [smem:[#allocation107_spill]] %s3987_s5 }
  0xb0   : > { %s3993_s22 = sld [smem:[#allocation6 + $0x3e]] }
  0xb1   : > { %5427 = sst [smem:[#allocation108_spill]] %s3989_s30 }
  0xb2   : > { %5428 = sst [smem:[#allocation109_spill]] %s3991_s11 }
  0xb3   : > { %s3995_s23 = sld [smem:[#allocation6 + $0x12]] }
  0xb4   : > { %s3997_s19 = sld [smem:[#allocation6 + $0x1e]] }
  0xb5   : > { %s3999_s24 = sld [smem:[#allocation6 + $0x58]] }
  0xb6   : > { %5429 = sst [smem:[#allocation110_spill]] %s3993_s22 }
  0xb7   : > { %s4001_s21 = sld [smem:[#allocation6 + $0x13]] }
  0xb8   : > { %s4003_s18 = sld [smem:[#allocation6 + $0x52]] }
  0xb9   : > { %5430 = sst [smem:[#allocation111_spill]] %s3995_s23 }
  0xba   : > { %5431 = sst [smem:[#allocation112_spill]] %s3997_s19 }
  0xbb   : > { %5432 = sst [smem:[#allocation113_spill]] %s3999_s24 }
  0xbc   : > { %s4005_s5 = sld [smem:[#allocation6 + $0x5c]] }
  0xbd   : > { %5433 = sst [smem:[#allocation114_spill]] %s4001_s21 }
  0xbe   : > { %5434 = sst [smem:[#allocation115_spill]] %s4003_s18 }
  0xbf   : > { %s4007_s30 = sld [smem:[#allocation6 + $0x25]] }
  0xc0   : > { %s5436_s3 = sld [smem:[#allocation159_spill]] }
  0xc1   : > { %s4012_s19 = sld [smem:[#allocation6 + $0x14]] }
  0xc2   : > { %5435 = sst [smem:[#allocation116_spill]] %s4005_s5 }
  0xc3   : > { %s4017_s21 = sld [smem:[#allocation6 + $0x20]] }
  0xc4   : > { %s4022_s5 = sld [smem:[#allocation6 + $0x59]] }
  0xc5   : > { %s4034_s11 = sld [smem:[#allocation6 + $0x45]] }
  0xc6   : > { %s4040_s18 = sld [smem:[#allocation6 + $0x21]] }
  0xc7   : > { %s4050_s6 = sld [smem:[#allocation6 + $0x27]] }
  0xc8   : > { %s4060_s23 = sld [smem:[#allocation6 + $0x22]] }
  0xc9   : > { %s4099_s4 = sld [smem:[#allocation6 + $0x5f]] }
  0xca   : > { %5437 = sst [smem:[#allocation117_spill]] %s4022_s5 }
  0xcb   : > { %s4105_s22 = sld [smem:[#allocation6 + $0x29]] }
  0xcc   : > { %s5470_s24 = sld [smem:[#allocation103_spill]] }
  0xcd   : > { %5440 = sst [smem:[#allocation118_spill]] %s4050_s6 }
  0xce   : > { %s5479_s27 = sld [smem:[#allocation108_spill]] }
  0xcf   : > { %5455 = sst [smem:[#allocation120_spill]] %s4099_s4 }
  0xd0   : > { %s4147_s4 = sld [smem:[#allocation6 + $0x2f]] }
  0xd1   : > { %5460 = sst [smem:[#allocation121_spill]] %s4105_s22 }
  0xd2   : > { %s4159_s22 = sld [smem:[#allocation6 + $0x61]] }
  0xd3   : > { %s5491_s14 = sld [smem:[#allocation120_spill]] }
  0xd8   : > { %5488 = sst [smem:[#allocation108_spill]] %s4159_s22 }
  0xd9   : > { %s5515_s22 = sld [smem:[#allocation87_spill]] }
  0xec   : > { %v3325_v7 = vpop.xlane.xlu1 %276  ;;  %v3327_v12 = vpop.xlane.xlu0 %267 }
  0xed   : > { %v448_v62 = vrot.slane %v3325_v7, %v363_v53  ;;  %v364_v63 = vrot.slane %v3327_v12, %v363_v53 }
  0xf0   : > { %v3329_v13 = vpop.xlane.xlu1 %279  ;;  %v3331_v14 = vpop.xlane.xlu0 %270 }
  0xf1   : > { %v452_v48 = vrot.slane %v3329_v13, %v363_v53  ;;  %v368_v51 = vrot.slane %v3331_v14, %v363_v53 }
  0xf4   : > { %v295_v15 = vpop.xlane.xlu1 %294  ;;  %v292_v18 = vpop.xlane.xlu0 %291 }
  0xf5   : > { %v389_v58 = vrot.slane %v295_v15, %v384_v52  ;;  %v385_v59 = vrot.slane %v292_v18, %v384_v52 }
  0xf8   : > { %v304_v19 = vpop.xlane.xlu1 %303  ;;  %v301_v22 = vpop.xlane.xlu0 %300 }
  0xf9   : > { %v470_v60 = vrot.slane %v304_v19, %v384_v52  ;;  %v466_v61 = vrot.slane %v301_v22, %v384_v52  ;;  %v394_v22 = vsel %vm373_vm1, %v389_v58, %v385_v59 }
  0xfb   : > { %v475_v7 = vsel %vm373_vm1, %v470_v60, %v466_v61 }
  0xfc   : > { %v3333_v23 = vpop.xlane.xlu1 %282  ;;  %v3335_v28 = vpop.xlane.xlu0 %273 }
  0xfd   : > { %v456_v12 = vrot.slane %v3333_v23, %v363_v53 }
 0x100   : > { %v307_v29 = vpop.xlane.xlu1 %306  ;;  %v298_v30 = vpop.xlane.xlu0 %297 }
 0x101   : > { %v474_v3 = vrot.slane %v307_v29, %v384_v52  ;;  %v393_v4 = vrot.slane %v298_v30, %v384_v52  ;;  %v372_v29 = vrot.slane %v3335_v28, %v363_v53  ;;  %v374_v52 = vsel %vm373_vm1, %v368_v51, %v364_v63  ;;  %v602_v51 = vld [vmem:[%s5336_s2 + $0x8] sm:$0xff] }
 0x102   : > { %2719 = vmatpush3.msra.mxu1 %v602_v51 }
 0x103   : > { %v476_v13 = vsel %vm375_vm2, %v474_v3, %v475_v7  ;;  %v395_v14 = vsel %vm375_vm2, %v393_v4, %v394_v22 }
 0x104   : > { %v319_v34 = vpop.xlane.xlu1 %318  ;;  %v316_v35 = vpop.xlane.xlu0 %315 }
 0x105   : > { %v408_v6 = vrot.slane %v319_v34, %v403_v54  ;;  %v404_v31 = vrot.slane %v316_v35, %v403_v54 }
 0x108   : > { %v328_v41 = vpop.xlane.xlu1 %327  ;;  %v325_v42 = vpop.xlane.xlu0 %324 }
 0x109   : > { %v488_v43 = vrot.slane %v328_v41, %v403_v54  ;;  %v484_v47 = vrot.slane %v325_v42, %v403_v54  ;;  %v413_v42 = vsel %vm373_vm1, %v408_v6, %v404_v31 }
 0x10c   : > { %v331_v49 = vpop.xlane.xlu1 %330  ;;  %v322_v50 = vpop.xlane.xlu0 %321 }
 0x10d   : > { %v492_v40 = vrot.slane %v331_v49, %v403_v54  ;;  %v412_v15 = vrot.slane %v322_v50, %v403_v54  ;;  %v493_v49 = vsel %vm373_vm1, %v488_v43, %v484_v47  ;;  %v457_v50 = vsel %vm373_vm1, %v452_v48, %v448_v62 }
 0x10f   : > { %v494_v23 = vsel %vm375_vm2, %v492_v40, %v493_v49  ;;  %v414_v28 = vsel %vm375_vm2, %v412_v15, %v413_v42  ;;  %v5339_v15 = vmov 0.0   ;;  %v3388_v49 = vsub.s32 1, %v3340_v46 }
 0x110   : > { %v343_v56 = vpop.xlane.xlu1 %342  ;;  %v340_v57 = vpop.xlane.xlu0 %339  ;;  %2720 = vmatprep.subr.mxu1 %v5339_v15 }
 0x111   : > { %v427_v30 = vrot.slane %v343_v56, %v422_v55  ;;  %v423_v34 = vrot.slane %v340_v57, %v422_v55  ;;  %v458_v56 = vsel %vm375_vm2, %v456_v12, %v457_v50  ;;  %v376_v57 = vsel %vm375_vm2, %v372_v29, %v374_v52  ;;  %5341 = vst [vmem:[#allocation26_spill] sm:$0xff] %v3388_v49 }
 0x112   : > { %v514_v60 = vsel %vm435_vm3, %v458_v56, %v476_v13  ;;  %v436_v61 = vsel %vm435_vm3, %v376_v57, %v395_v14  ;;  %v3385_v14 = vsub.s32 0, %v3340_v46  ;;  %v737_v52 = vsub.s32 2, %v3340_v46 }
 0x113   : > { %v432_v48 = vsel %vm373_vm1, %v427_v30, %v423_v34  ;;  %v515_v40 = vsel %vm437_vm4, %v514_v60, %v494_v23  ;;  %v438_v63 = vsel %vm437_vm4, %v436_v61, %v414_v28 }
 0x114   : > { %v352_v18 = vpop.xlane.xlu1 %351  ;;  %v349_v19 = vpop.xlane.xlu0 %348  ;;  %5340 = vst [vmem:[#allocation25_spill] sm:$0xff] %v3385_v14 }
 0x115   : > { %v506_v35 = vrot.slane %v352_v18, %v422_v55  ;;  %v502_v41 = vrot.slane %v349_v19, %v422_v55  ;;  %v601_v18 = vld [vmem:[%s5336_s2] sm:$0xff]  ;;  %s3912_s2 = sld [smem:[#allocation6 + $0x2a]] }
 0x116   : > { %2721 = vmatpush3.msra.mxu1 %v601_v18 }
 0x117   : > { %v511_v62 = vsel %vm373_vm1, %v506_v35, %v502_v41 }
 0x118   : > { %v355_v53 = vpop.xlane.xlu1 %354  ;;  %v346_v54 = vpop.xlane.xlu0 %345 }
 0x119   : > { %v510_v58 = vrot.slane %v355_v53, %v422_v55  ;;  %v431_v59 = vrot.slane %v346_v54, %v422_v55 }
 0x11b   : > { %v512_v3 = vsel %vm375_vm2, %v510_v58, %v511_v62  ;;  %v433_v4 = vsel %vm375_vm2, %v431_v59, %v432_v48  ;;  %5393 = sst [smem:[#allocation74_spill]] %s3912_s2 }
 0x11c   : > { %v516_v6 = vsel %vm439_vm5, %v515_v40, %v512_v3  ;;  %v440_v55 = vsel %vm439_vm5, %v438_v63, %v433_v4  ;;  %s4089_s2 = sld [smem:[#allocation6 + $0x53]] }
 0x11d   : > { %v518_v31 = vrot.slane %v516_v6, 5  ;;  %v441_v43 = vmul.f32 0.00390625, %v440_v55 }
 0x11f   : > { %v521_v47 = vsel %vm520_vm6, %v441_v43, %v518_v31 }
 0x120   : > { %2688 = vmatmul.mubr.msk.f32.vlgmr.msra.gmra.mxu0 %vm526_vm7, %v521_v47 }
 0x1e0   : > { %v596_v19 = vpop.f32.mrf.mxu0 }
 0x1e1   : > { %v600_v22 = vmax.f32 %v596_v19, 0.0 }
 0x1e2   : > { %v2689_v7 = vpop.f32.mrf.mxu0 }
 0x1e3   : > { %2723 = vmatmul.mubr.f32.vlgmr.msra.gmra.mxu1 %v600_v22 }
 0x2a3   : > { %v683_v12 = vpop.f32.mrf.mxu1 }
 0x2a4   : > { %v688_v29 = vrot.slane %v683_v12, 3 }
 0x2a5   : > { %v2724_v30 = vpop.f32.mrf.mxu1 }
 0x2a6   : > { %v690_v34 = vadd.f32 %v688_v29, %v683_v12 }
 0x2a8   : > { %v2536_v35 = vmul.f32 -1.442695, %v690_v34 }
 0x2aa   : > { %2802 = vpow2.f32 %v2536_v35 }
 0x2b7   : > { %v2803_v41 = vpop.eup %2802 }
 0x2b8   : > { %v694_v13 = vadd.f32 1.0, %v2803_v41 }
 0x2ba   : > { %2804 = vrcp.f32 %v694_v13 }
 0x2c7   : > { %v2805_v42 = vpop.eup %2804 }
 0x2c8   : > { %v700_v50 = vrot.slane %v2805_v42, %v3385_v14  ;;  %v719_v23 = vrot.slane %v2805_v42, %v3388_v49  ;;  %v738_v28 = vrot.slane %v2805_v42, %v737_v52 }
 0x2ca   : > { %706 = vbcast.lane.b32.xlu1 %v700_v50, 264  ;;  %702 = vbcast.lane.b32.xlu0 %v700_v50, 256 }
 0x2ce   : > { %721 = vbcast.lane.b32.xlu1 %v719_v23, 256  ;;  %740 = vbcast.lane.b32.xlu0 %v738_v28, 256 }
 0x2d2   : > { %725 = vbcast.lane.b32.xlu1 %v719_v23, 264  ;;  %710 = vbcast.lane.b32.xlu0 %v700_v50, 272 }
 0x2d6   : > { %744 = vbcast.lane.b32.xlu1 %v738_v28, 264  ;;  %748 = vbcast.lane.b32.xlu0 %v738_v28, 272 }
 0x2da   : > { %729 = vbcast.lane.b32.xlu1 %v719_v23, 272  ;;  %733 = vbcast.lane.b32.xlu0 %v719_v23, 280 }
 0x2de   : > { %714 = vbcast.lane.b32.xlu1 %v700_v50, 280 }
 0x2e2   : > { %752 = vbcast.lane.b32.xlu1 %v738_v28, 280 }
 0x33c   : > { %v3393_v53 = vpop.permute.xlu1 %706  ;;  %v703_v54 = vpop.permute.xlu0 %702 }
 0x33d   : > { %5342 = vst [vmem:[#allocation27_spill] sm:$0xff] %v3393_v53  ;;  %v838_v56 = vmul.f32 %v3393_v53, %v3157_v10  ;;  %v839_v57 = vmul.f32 %v3393_v53, %v3160_v11  ;;  %v3400_v58 = vmul.f32 %v703_v54, %v3131_v0  ;;  %v3403_v59 = vmul.f32 %v703_v54, %v3134_v1 }
 0x33f   : > { %5343 = vst [vmem:[#allocation28_spill] sm:$0xff] %v3400_v58  ;;  %5344 = vst [vmem:[#allocation29_spill] sm:$0xff] %v3403_v59  ;;  %v844_v60 = vrot.slane %v838_v56, 4  ;;  %v850_v61 = vrot.slane %v839_v57, 4  ;;  %v760_v48 = vrot.slane %v3400_v58, 4  ;;  %v766_v62 = vrot.slane %v3403_v59, 4 }
 0x340   : > { %v722_v19 = vpop.permute.xlu1 %721  ;;  %v741_v22 = vpop.permute.xlu0 %740 }
 0x341   : > { %v845_v40 = vadd.f32 %v844_v60, %v838_v56  ;;  %v851_v63 = vadd.f32 %v850_v61, %v839_v57  ;;  %v887_v3 = vmax.f32 %v838_v56, %v844_v60  ;;  %v761_v10 = vadd.f32 %v760_v48, %v3400_v58 }
 0x342   : > { %v767_v4 = vadd.f32 %v766_v62, %v3403_v59  ;;  %v893_v11 = vmax.f32 %v839_v57, %v850_v61  ;;  %v803_v0 = vmax.f32 %v3400_v58, %v760_v48  ;;  %v809_v6 = vmax.f32 %v3403_v59, %v766_v62 }
 0x343   : > { %v846_v1 = vrot.slane %v845_v40, 2  ;;  %v852_v55 = vrot.slane %v851_v63, 2  ;;  %v888_v31 = vrot.slane %v887_v3, 2  ;;  %v762_v43 = vrot.slane %v761_v10, 2 }
 0x344   : > { %v768_v47 = vrot.slane %v767_v4, 2  ;;  %v894_v51 = vrot.slane %v893_v11, 2  ;;  %v804_v15 = vrot.slane %v803_v0, 2  ;;  %v810_v18 = vrot.slane %v809_v6, 2 }
 0x345   : > { %v847_v7 = vadd.f32 %v846_v1, %v845_v40  ;;  %v853_v12 = vadd.f32 %v852_v55, %v851_v63  ;;  %v889_v29 = vmax.f32 %v887_v3, %v888_v31  ;;  %v763_v30 = vadd.f32 %v762_v43, %v761_v10  ;;  %v3434_v1 = vpop.permute.xlu1 %725 }
 0x346   : > { %v769_v34 = vadd.f32 %v768_v47, %v767_v4  ;;  %v3412_v35 = vmul.f32 %v722_v19, %v3137_v2  ;;  %v3415_v41 = vmul.f32 %v722_v19, %v3144_v5  ;;  %v3418_v13 = vmul.f32 %v741_v22, %v3171_v16  ;;  %5349 = vst [vmem:[#allocation34_spill] sm:$0xff] %v3434_v1 }
 0x347   : > { %v3421_v42 = vmul.f32 %v741_v22, %v3174_v17  ;;  %v895_v50 = vmax.f32 %v893_v11, %v894_v51  ;;  %v805_v52 = vmax.f32 %v803_v0, %v804_v15  ;;  %v811_v23 = vmax.f32 %v809_v6, %v810_v18 }
 0x348   : > { %5345 = vst [vmem:[#allocation30_spill] sm:$0xff] %v3412_v35  ;;  %5346 = vst [vmem:[#allocation31_spill] sm:$0xff] %v3415_v41  ;;  %v848_v28 = vrot.slane %v847_v7, 1  ;;  %v854_v54 = vrot.slane %v853_v12, 1  ;;  %v772_v56 = vrot.slane %v3412_v35, 4  ;;  %v778_v57 = vrot.slane %v3415_v41, 4 }
 0x349   : > { %5347 = vst [vmem:[#allocation32_spill] sm:$0xff] %v3418_v13  ;;  %5348 = vst [vmem:[#allocation33_spill] sm:$0xff] %v3421_v42  ;;  %v890_v2 = vrot.slane %v889_v29, 1  ;;  %v784_v60 = vrot.slane %v3418_v13, 4  ;;  %v764_v5 = vrot.slane %v763_v30, 1  ;;  %v770_v61 = vrot.slane %v769_v34, 1 }
 0x34a   : > { %v790_v16 = vrot.slane %v3421_v42, 4  ;;  %v806_v48 = vrot.slane %v805_v52, 1  ;;  %v773_v17 = vadd.f32 %v772_v56, %v3412_v35  ;;  %v779_v62 = vadd.f32 %v778_v57, %v3415_v41 }
 0x34b   : > { %v849_v40 = vadd.f32 %v848_v28, %v847_v7  ;;  %v855_v63 = vadd.f32 %v854_v54, %v853_v12  ;;  %v896_v3 = vrot.slane %v895_v50, 1  ;;  %v812_v10 = vrot.slane %v811_v23, 1  ;;  %v3449_v54 = vpop.permute.xlu0 %710 }
 0x34c   : > { %v3429_v4 = vmax.f32 %v889_v29, %v890_v2  ;;  %v815_v11 = vmax.f32 %v3412_v35, %v772_v56  ;;  %v821_v0 = vmax.f32 %v3415_v41, %v778_v57  ;;  %v785_v6 = vadd.f32 %v784_v60, %v3418_v13  ;;  %5350 = vst [vmem:[#allocation35_spill] sm:$0xff] %v3449_v54 }
 0x34d   : > { %v765_v55 = vadd.f32 %v764_v5, %v763_v30  ;;  %v771_v31 = vadd.f32 %v770_v61, %v769_v34  ;;  %v791_v43 = vadd.f32 %v790_v16, %v3421_v42  ;;  %v827_v47 = vmax.f32 %v3418_v13, %v784_v60 }
 0x34e   : > { %v3438_v51 = vmax.f32 %v805_v52, %v806_v48  ;;  %v774_v15 = vrot.slane %v773_v17, 2  ;;  %v780_v18 = vrot.slane %v779_v62, 2  ;;  %v833_v19 = vmax.f32 %v3421_v42, %v790_v16  ;;  %v3463_v42 = vpop.permute.xlu1 %744 }
 0x34f   : > { %v3441_v22 = vmax.f32 %v895_v50, %v896_v3  ;;  %v840_v7 = vmul.f32 %v3434_v1, %v3151_v8  ;;  %v841_v12 = vmul.f32 %v3434_v1, %v3154_v9  ;;  %v3447_v29 = vmax.f32 %v811_v23, %v812_v10  ;;  %5351 = vst [vmem:[#allocation36_spill] sm:$0xff] %v3463_v42 }
 0x350   : > { %v816_v30 = vrot.slane %v815_v11, 2  ;;  %v822_v34 = vrot.slane %v821_v0, 2  ;;  %v786_v28 = vrot.slane %v785_v6, 2  ;;  %v3451_v52 = vadd.f32 %v849_v40, %v765_v55 }
 0x351   : > { %v3453_v56 = vadd.f32 %v855_v63, %v771_v31  ;;  %v792_v57 = vrot.slane %v791_v43, 2  ;;  %v828_v50 = vrot.slane %v827_v47, 2  ;;  %v775_v8 = vadd.f32 %v774_v15, %v773_v17 }
 0x352   : > { %v781_v60 = vadd.f32 %v780_v18, %v779_v62  ;;  %v834_v5 = vrot.slane %v833_v19, 2  ;;  %v856_v9 = vrot.slane %v840_v7, 4  ;;  %v862_v23 = vrot.slane %v841_v12, 4 }
 0x353   : > { %v928_v61 = vmul.f32 %v3449_v54, %v3197_v26  ;;  %v929_v16 = vmul.f32 %v3449_v54, %v3200_v27  ;;  %v817_v40 = vmax.f32 %v815_v11, %v816_v30  ;;  %v823_v63 = vmax.f32 %v821_v0, %v822_v34 }
 0x354   : > { %v787_v3 = vadd.f32 %v786_v28, %v785_v6  ;;  %v793_v10 = vadd.f32 %v792_v57, %v791_v43  ;;  %v829_v55 = vmax.f32 %v827_v47, %v828_v50  ;;  %v857_v31 = vadd.f32 %v856_v9, %v840_v7 }
 0x355   : > { %v863_v17 = vadd.f32 %v862_v23, %v841_v12  ;;  %v835_v62 = vmax.f32 %v833_v19, %v834_v5  ;;  %v899_v15 = vmax.f32 %v840_v7, %v856_v9  ;;  %v934_v18 = vrot.slane %v928_v61, 4 }
 0x356   : > { %v940_v2 = vrot.slane %v929_v16, 4  ;;  %v776_v26 = vrot.slane %v775_v8, 1  ;;  %v782_v13 = vrot.slane %v781_v60, 1  ;;  %v858_v41 = vrot.slane %v857_v31, 2 }
 0x357   : > { %v905_v27 = vmax.f32 %v841_v12, %v862_v23  ;;  %v864_v35 = vrot.slane %v863_v17, 2  ;;  %v935_v59 = vadd.f32 %v934_v18, %v928_v61  ;;  %v977_v11 = vmax.f32 %v928_v61, %v934_v18 }
 0x358   : > { %v941_v48 = vadd.f32 %v940_v2, %v929_v16  ;;  %v818_v0 = vrot.slane %v817_v40, 1  ;;  %v983_v6 = vmax.f32 %v929_v16, %v940_v2  ;;  %v842_v43 = vmul.f32 %v3463_v42, %v3181_v20 }
 0x359   : > { %v843_v47 = vmul.f32 %v3463_v42, %v3184_v21  ;;  %v824_v19 = vrot.slane %v823_v63, 1  ;;  %v788_v7 = vrot.slane %v787_v3, 1  ;;  %v794_v30 = vrot.slane %v793_v10, 1 }
 0x35a   : > { %v900_v34 = vrot.slane %v899_v15, 2  ;;  %v830_v28 = vrot.slane %v829_v55, 1  ;;  %v836_v57 = vrot.slane %v835_v62, 1  ;;  %v859_v50 = vadd.f32 %v858_v41, %v857_v31 }
 0x35b   : > { %v906_v12 = vrot.slane %v905_v27, 2  ;;  %v865_v5 = vadd.f32 %v864_v35, %v863_v17  ;;  %v936_v9 = vrot.slane %v935_v59, 2  ;;  %v942_v23 = vrot.slane %v941_v48, 2 }
 0x35c   : > { %v978_v61 = vrot.slane %v977_v11, 2  ;;  %v777_v18 = vadd.f32 %v776_v26, %v775_v8  ;;  %v984_v2 = vrot.slane %v983_v6, 2  ;;  %v868_v16 = vrot.slane %v842_v43, 4 }
 0x35d   : > { %v874_v58 = vrot.slane %v843_v47, 4  ;;  %v783_v20 = vadd.f32 %v782_v13, %v781_v60  ;;  %v3469_v54 = vmax.f32 %v817_v40, %v818_v0  ;;  %v3471_v21 = vmax.f32 %v823_v63, %v824_v19  ;;  %v3477_v13 = vpop.permute.xlu0 %748 }
 0x35e   : > { %v901_v42 = vmax.f32 %v899_v15, %v900_v34  ;;  %v3473_v1 = vadd.f32 %v788_v7, %v787_v3  ;;  %v3475_v53 = vadd.f32 %v794_v30, %v793_v10  ;;  %v860_v41 = vrot.slane %v859_v50, 1  ;;  %5352 = vst [vmem:[#allocation37_spill] sm:$0xff] %v3477_v13 }
 0x35f   : > { %v907_v31 = vmax.f32 %v905_v27, %v906_v12  ;;  %v866_v35 = vrot.slane %v865_v5, 1  ;;  %v937_v17 = vadd.f32 %v936_v9, %v935_v59  ;;  %v943_v46 = vadd.f32 %v942_v23, %v941_v48 }
 0x360   : > { %v979_v49 = vmax.f32 %v977_v11, %v978_v61  ;;  %v985_v8 = vmax.f32 %v983_v6, %v984_v2  ;;  %v869_v26 = vadd.f32 %v868_v16, %v842_v43  ;;  %v875_v14 = vadd.f32 %v874_v58, %v843_v47 }
 0x361   : > { %v911_v45 = vmax.f32 %v842_v43, %v868_v16  ;;  %v3479_v60 = vmax.f32 %v829_v55, %v830_v28  ;;  %v3481_v40 = vmax.f32 %v835_v62, %v836_v57  ;;  %v902_v63 = vrot.slane %v901_v42, 1 }
 0x362   : > { %v917_v3 = vmax.f32 %v843_v47, %v874_v58  ;;  %v908_v10 = vrot.slane %v907_v31, 1  ;;  %v870_v15 = vrot.slane %v869_v26, 2  ;;  %v876_v0 = vrot.slane %v875_v14, 2 }
 0x363   : > { %v912_v27 = vrot.slane %v911_v45, 2  ;;  %v938_v19 = vrot.slane %v937_v17, 1  ;;  %v944_v59 = vrot.slane %v943_v46, 1  ;;  %v932_v48 = vmul.f32 %v3477_v13, %v3211_v32 }
 0x364   : > { %v933_v11 = vmul.f32 %v3477_v13, %v3214_v33  ;;  %v861_v6 = vadd.f32 %v860_v41, %v859_v50  ;;  %v867_v43 = vadd.f32 %v866_v35, %v865_v5  ;;  %v980_v55 = vrot.slane %v979_v49, 1 }
 0x365   : > { %v986_v7 = vrot.slane %v985_v8, 1  ;;  %v877_v62 = vadd.f32 %v876_v0, %v875_v14  ;;  %v918_v30 = vrot.slane %v917_v3, 2  ;;  %v958_v34 = vrot.slane %v932_v48, 4 }
 0x366   : > { %v964_v58 = vrot.slane %v933_v11, 4  ;;  %v3487_v47 = vmax.f32 %v901_v42, %v902_v63  ;;  %v3489_v28 = vmax.f32 %v907_v31, %v908_v10  ;;  %v871_v57 = vadd.f32 %v870_v15, %v869_v26  ;;  %v3495_v42 = vpop.permute.xlu1 %729 }
 0x367   : > { %v913_v12 = vmax.f32 %v911_v45, %v912_v27  ;;  %v939_v9 = vadd.f32 %v938_v19, %v937_v17  ;;  %v945_v23 = vadd.f32 %v944_v59, %v943_v46  ;;  %v959_v32 = vadd.f32 %v958_v34, %v932_v48  ;;  %5353 = vst [vmem:[#allocation38_spill] sm:$0xff] %v3495_v42 }
 0x368   : > { %v965_v61 = vadd.f32 %v964_v58, %v933_v11  ;;  %v3491_v2 = vadd.f32 %v861_v6, %v777_v18  ;;  %v3493_v33 = vadd.f32 %v867_v43, %v783_v20  ;;  %v981_v50 = vmax.f32 %v979_v49, %v980_v55 }
 0x369   : > { %v987_v5 = vmax.f32 %v985_v8, %v986_v7  ;;  %v878_v14 = vrot.slane %v877_v62, 1  ;;  %v919_v16 = vmax.f32 %v917_v3, %v918_v30  ;;  %v1001_v41 = vmax.f32 %v932_v48, %v958_v34 }
 0x36a   : > { %v1007_v35 = vmax.f32 %v933_v11, %v964_v58  ;;  %v924_v31 = vmax.f32 %v3469_v54, %v3487_v47  ;;  %v925_v45 = vmax.f32 %v3471_v21, %v3489_v28  ;;  %v872_v46 = vrot.slane %v871_v57, 1 }
 0x36b   : > { %v914_v17 = vrot.slane %v913_v12, 1  ;;  %v3502_v18 = vadd.f32 %v939_v9, %v3451_v52  ;;  %v3505_v49 = vadd.f32 %v945_v23, %v3453_v56  ;;  %v960_v20 = vrot.slane %v959_v32, 2  ;;  %v3521_v56 = vpop.permute.xlu0 %733 }
 0x36c   : > { %v966_v8 = vrot.slane %v965_v61, 2  ;;  %v5354_v26 = vmax.f32 %v3438_v51, %v3429_v4  ;;  %v5355_v3 = vmax.f32 %v3447_v29, %v3441_v22  ;;  %v930_v15 = vmul.f32 %v3495_v42, %v3191_v24  ;;  %5356 = vst [vmem:[#allocation39_spill] sm:$0xff] %v3521_v56 }
 0x36d   : > { %v931_v52 = vmul.f32 %v3495_v42, %v3194_v25  ;;  %v879_v0 = vadd.f32 %v878_v14, %v877_v62  ;;  %v920_v27 = vrot.slane %v919_v16, 1  ;;  %v1002_v19 = vrot.slane %v1001_v41, 2 }
 0x36e   : > { %v3510_v63 = vmax.f32 %v5354_v26, %v981_v50  ;;  %v3515_v10 = vmax.f32 %v5355_v3, %v987_v5  ;;  %v1008_v59 = vrot.slane %v1007_v35, 2  ;;  %v873_v4 = vadd.f32 %v872_v46, %v871_v57 }
 0x36f   : > { %v915_v51 = vmax.f32 %v913_v12, %v914_v17  ;;  %v946_v48 = vrot.slane %v930_v15, 4  ;;  %v952_v11 = vrot.slane %v931_v52, 4  ;;  %v961_v6 = vadd.f32 %v960_v20, %v959_v32 }
 0x370   : > { %v967_v22 = vadd.f32 %v966_v8, %v965_v61  ;;  %v1020_v29 = vmul.f32 %v3521_v56, %v3221_v36  ;;  %v1021_v24 = vmul.f32 %v3521_v56, %v3224_v37  ;;  %v885_v62 = vadd.f32 %v879_v0, %v3475_v53  ;;  %v3528_v53 = vpop.permute.xlu1 %714 }
 0x371   : > { %v947_v43 = vadd.f32 %v946_v48, %v930_v15  ;;  %v953_v25 = vadd.f32 %v952_v11, %v931_v52  ;;  %v989_v55 = vmax.f32 %v930_v15, %v946_v48  ;;  %v995_v7 = vmax.f32 %v931_v52, %v952_v11  ;;  %5357 = vst [vmem:[#allocation40_spill] sm:$0xff] %v3528_v53 }
 0x372   : > { %v921_v30 = vmax.f32 %v919_v16, %v920_v27  ;;  %v1003_v34 = vmax.f32 %v1001_v41, %v1002_v19  ;;  %v1009_v58 = vmax.f32 %v1007_v35, %v1008_v59  ;;  %v962_v32 = vrot.slane %v961_v6, 1 }
 0x373   : > { %v948_v57 = vrot.slane %v947_v43, 2  ;;  %v954_v12 = vrot.slane %v953_v25, 2  ;;  %v990_v9 = vrot.slane %v989_v55, 2  ;;  %v996_v23 = vrot.slane %v995_v7, 2 }
 0x374   : > { %v968_v61 = vrot.slane %v967_v22, 1  ;;  %v1036_v50 = vrot.slane %v1020_v29, 4  ;;  %v1042_v36 = vrot.slane %v1021_v24, 4  ;;  %v1004_v16 = vrot.slane %v1003_v34, 1 }
 0x375   : > { %v949_v5 = vadd.f32 %v948_v57, %v947_v43  ;;  %v955_v14 = vadd.f32 %v954_v12, %v953_v25  ;;  %v991_v37 = vmax.f32 %v989_v55, %v990_v9  ;;  %v997_v46 = vmax.f32 %v995_v7, %v996_v23 }
 0x376   : > { %v1037_v17 = vadd.f32 %v1036_v50, %v1020_v29  ;;  %v1043_v20 = vadd.f32 %v1042_v36, %v1021_v24  ;;  %v1079_v8 = vmax.f32 %v1020_v29, %v1036_v50  ;;  %v1085_v26 = vmax.f32 %v1021_v24, %v1042_v36  ;;  %v5359_v36 = vld [vmem:[#allocation22_spill] sm:$0xff] }
 0x377   : > { %v1010_v41 = vrot.slane %v1009_v58, 1  ;;  %v950_v35 = vrot.slane %v949_v5, 1  ;;  %v956_v3 = vrot.slane %v955_v14, 1  ;;  %v992_v15 = vrot.slane %v991_v37, 1 }
 0x378   : > { %v998_v52 = vrot.slane %v997_v46, 1  ;;  %v1038_v0 = vrot.slane %v1037_v17, 2  ;;  %v1044_v27 = vrot.slane %v1043_v20, 2  ;;  %v3531_v19 = vadd.f32 %v873_v4, %v3473_v1  ;;  %v3541_v4 = vpop.permute.xlu1 %752 }
 0x379   : > { %v926_v59 = vmax.f32 %v3479_v60, %v915_v51  ;;  %v927_v48 = vmax.f32 %v3481_v40, %v921_v30  ;;  %v969_v11 = vadd.f32 %v968_v61, %v967_v22  ;;  %v951_v29 = vadd.f32 %v950_v35, %v949_v5  ;;  %5358 = vst [vmem:[#allocation41_spill] sm:$0xff] %v3541_v4 }
 0x37a   : > { %v957_v24 = vadd.f32 %v956_v3, %v955_v14  ;;  %v1080_v43 = vrot.slane %v1079_v8, 2  ;;  %v1086_v25 = vrot.slane %v1085_v26, 2  ;;  %v3535_v55 = vadd.f32 %v962_v32, %v961_v6 }
 0x37b   : > { %v3537_v7 = vadd.f32 %v969_v11, %v885_v62  ;;  %v1005_v57 = vmax.f32 %v1003_v34, %v1004_v16  ;;  %v1011_v12 = vmax.f32 %v1009_v58, %v1010_v41  ;;  %v993_v9 = vmax.f32 %v991_v37, %v992_v15 }
 0x37c   : > { %v999_v23 = vmax.f32 %v997_v46, %v998_v52  ;;  %v3539_v50 = vadd.f32 %v1038_v0, %v1037_v17  ;;  %v1045_v1 = vadd.f32 %v1044_v27, %v1043_v20  ;;  %v1018_v51 = vmul.f32 %v3528_v53, %v3227_v38 }
 0x37d   : > { %v3543_v60 = vmax.f32 %v926_v59, %v1005_v57  ;;  %v3545_v40 = vmax.f32 %v927_v48, %v1011_v12  ;;  %v1019_v6 = vmul.f32 %v3528_v53, %v3230_v39  ;;  %v3552_v22 = vadd.f32 %v951_v29, %v3491_v2 }
 0x37e   : > { %v3555_v62 = vadd.f32 %v957_v24, %v3493_v33  ;;  %v1081_v30 = vmax.f32 %v1079_v8, %v1080_v43  ;;  %v1087_v34 = vmax.f32 %v1085_v26, %v1086_v25  ;;  %v1024_v58 = vrot.slane %v1018_v51, 4 }
 0x37f   : > { %v1030_v32 = vrot.slane %v1019_v6, 4  ;;  %v1022_v61 = vmul.f32 %v3541_v4, %v3241_v44  ;;  %v1023_v5 = vmul.f32 %v3541_v4, %v5359_v36  ;;  %v1014_v38 = vmax.f32 %v924_v31, %v993_v9 }
 0x380   : > { %v1015_v39 = vmax.f32 %v925_v45, %v999_v23  ;;  %v1040_v2 = vrot.slane %v3539_v50, 1  ;;  %v1046_v33 = vrot.slane %v1045_v1, 1  ;;  %v1025_v14 = vadd.f32 %v1024_v58, %v1018_v51 }
 0x381   : > { %v1031_v37 = vadd.f32 %v1030_v32, %v1019_v6  ;;  %v1067_v46 = vmax.f32 %v1018_v51, %v1024_v58  ;;  %v1073_v17 = vmax.f32 %v1019_v6, %v1030_v32  ;;  %v1082_v20 = vrot.slane %v1081_v30, 1 }
 0x382   : > { %v1088_v44 = vrot.slane %v1087_v34, 1  ;;  %v1048_v8 = vrot.slane %v1022_v61, 4  ;;  %v1054_v26 = vrot.slane %v1023_v5, 4  ;;  %v1026_v16 = vrot.slane %v1025_v14, 2 }
 0x383   : > { %v1032_v41 = vrot.slane %v1031_v37, 2  ;;  %v1068_v35 = vrot.slane %v1067_v46, 2  ;;  %v1074_v54 = vrot.slane %v1073_v17, 2  ;;  %v1047_v23 = vadd.f32 %v1046_v33, %v1045_v1 }
 0x384   : > { %v1049_v47 = vadd.f32 %v1048_v8, %v1022_v61  ;;  %v1055_v31 = vadd.f32 %v1054_v26, %v1023_v5  ;;  %v1091_v3 = vmax.f32 %v1022_v61, %v1048_v8  ;;  %v1097_v21 = vmax.f32 %v1023_v5, %v1054_v26 }
 0x385   : > { %v1027_v28 = vadd.f32 %v1026_v16, %v1025_v14  ;;  %v1033_v45 = vadd.f32 %v1032_v41, %v1031_v37  ;;  %v1069_v15 = vmax.f32 %v1067_v46, %v1068_v35  ;;  %v1075_v52 = vmax.f32 %v1073_v17, %v1074_v54 }
 0x386   : > { %v1050_v0 = vrot.slane %v1049_v47, 2  ;;  %v1056_v27 = vrot.slane %v1055_v31, 2  ;;  %v1092_v59 = vrot.slane %v1091_v3, 2  ;;  %v1098_v48 = vrot.slane %v1097_v21, 2 }
 0x387   : > { %v1028_v11 = vrot.slane %v1027_v28, 1  ;;  %v1034_v29 = vrot.slane %v1033_v45, 1  ;;  %v1070_v24 = vrot.slane %v1069_v15, 1  ;;  %v1076_v43 = vrot.slane %v1075_v52, 1 }
 0x388   : > { %v1051_v25 = vadd.f32 %v1050_v0, %v1049_v47  ;;  %v1057_v57 = vadd.f32 %v1056_v27, %v1055_v31  ;;  %v1093_v12 = vmax.f32 %v1091_v3, %v1092_v59  ;;  %v1099_v9 = vmax.f32 %v1097_v21, %v1098_v48 }
 0x389   : > { %v1035_v51 = vadd.f32 %v1034_v29, %v1033_v45  ;;  %v1071_v6 = vmax.f32 %v1069_v15, %v1070_v24  ;;  %v1077_v58 = vmax.f32 %v1075_v52, %v1076_v43  ;;  %v1083_v14 = vmax.f32 %v1081_v30, %v1082_v20 }
 0x38a   : > { %v1052_v32 = vrot.slane %v1051_v25, 1  ;;  %v1058_v61 = vrot.slane %v1057_v57, 1  ;;  %v1094_v36 = vrot.slane %v1093_v12, 1  ;;  %v1100_v5 = vrot.slane %v1099_v9, 1 }
 0x38b   : > { %v1089_v37 = vmax.f32 %v1087_v34, %v1088_v44  ;;  %v3569_v46 = vmax.f32 %v3510_v63, %v1071_v6  ;;  %v3572_v17 = vmax.f32 %v3515_v10, %v1077_v58  ;;  %v1029_v8 = vadd.f32 %v1028_v11, %v1027_v28 }
 0x38c   : > { %v1059_v26 = vadd.f32 %v1058_v61, %v1057_v57  ;;  %v1095_v1 = vmax.f32 %v1093_v12, %v1094_v36  ;;  %v1101_v33 = vmax.f32 %v1099_v9, %v1100_v5  ;;  %v1041_v16 = vadd.f32 %v1040_v2, %v3539_v50 }
 0x38d   : > { %v3577_v41 = vmax.f32 %v1014_v38, %v1083_v14  ;;  %v3579_v35 = vmax.f32 %v1015_v39, %v1089_v37  ;;  %v1053_v30 = vadd.f32 %v1052_v32, %v1051_v25  ;;  %v1063_v63 = vadd.f32 %v1047_v23, %v3555_v62 }
 0x38e   : > { %v1061_v34 = vadd.f32 %v1035_v51, %v3505_v49  ;;  %v3584_v10 = vmax.f32 %v3543_v60, %v1095_v1  ;;  %v3587_v20 = vmax.f32 %v3545_v40, %v1101_v33  ;;  %v974_v44 = vadd.f32 %v3535_v55, %v3531_v19 }
 0x38f   : > { %v1065_v50 = vadd.f32 %v1059_v26, %v3537_v7  ;;  %v1155_v38 = vsel %vm373_vm1, %v3579_v35, %v3572_v17  ;;  %v1153_v49 = vsel %vm373_vm1, %v3577_v41, %v3569_v46  ;;  %v1062_v60 = vadd.f32 %v1041_v16, %v3552_v22 }
 0x390   : > { %v1060_v62 = vadd.f32 %v1029_v8, %v3502_v18  ;;  %v3602_v40 = vsel %vm375_vm2, %v3587_v20, %v1155_v38  ;;  %v3606_v19 = vsel %vm375_vm2, %v3584_v10, %v1153_v49  ;;  %v1064_v55 = vadd.f32 %v1053_v30, %v974_v44 }
 0x391   : > { %1161 = vrot.lane.b32.xlu1 %v3602_v40, %s2949_s25  ;;  %1159 = vrot.lane.b32.xlu0 %v3606_v19, %s2949_s25  ;;  %v3612_v7 = vmul.f32 0.03125, %v1063_v63  ;;  %v3614_v18 = vmul.f32 0.03125, %v1061_v34  ;;  %v3616_v22 = vmul.f32 0.03125, %v1065_v50  ;;  %v1355_v39 = vstv %s3574_s7  ;;  %s2622_s7 = sld [smem:[#allocation6 + $0x57]] }
 0x392   : > { %v3619_v2 = vmul.f32 0.03125, %v1062_v60  ;;  %v3621_v54 = vmul.f32 0.03125, %v1060_v62  ;;  %v1376_v47 = vstv %s2548_s13  ;;  %v3623_v31 = vmul.f32 0.03125, %v1064_v55  ;;  %s2953_s13 = smov 126  }
 0x393   : > { %v1357_v3 = vmul.f32 %v1355_v39, %v3614_v18  ;;  %v1359_v21 = vmul.f32 %v1355_v39, %v3612_v7  ;;  %v1361_v28 = vmul.f32 %v1355_v39, %v3616_v22  ;;  %v1378_v45 = vmul.f32 %v1376_v47, %v3572_v17 }
 0x394   : > { %v1380_v15 = vmul.f32 %v1376_v47, %v3579_v35  ;;  %v1382_v0 = vmul.f32 %v1376_v47, %v3587_v20  ;;  %v1356_v27 = vmul.f32 %v1355_v39, %v3621_v54  ;;  %v1358_v59 = vmul.f32 %v1355_v39, %v3619_v2 }
 0x395   : > { %1191 = vrot.lane.b32.xlu1 %v3602_v40, %s2950_s12  ;;  %1189 = vrot.lane.b32.xlu0 %v3606_v19, %s2950_s12  ;;  %v1370_v52 = vsel %vm373_vm1, %v1359_v21, %v1357_v3  ;;  %v1360_v29 = vmul.f32 %v1355_v39, %v3623_v31  ;;  %v1495_v24 = vstv %s2562_s8  ;;  %v1377_v57 = vmul.f32 %v1376_v47, %v3569_v46  ;;  %s3790_s8 = sld [smem:[#allocation6 + $0x5e]] }
 0x396   : > { %v3643_v48 = vsel %vm375_vm2, %v1361_v28, %v1370_v52  ;;  %v1391_v11 = vsel %vm373_vm1, %v1380_v15, %v1378_v45  ;;  %v1368_v25 = vsel %vm373_vm1, %v1358_v59, %v1356_v27  ;;  %v1516_v12 = vstv %s2563_s9  ;;  %s3809_s9 = sld [smem:[#allocation6 + $0x49]] }
 0x397   : > { %v3650_v43 = vsel %vm375_vm2, %v1382_v0, %v1391_v11  ;;  %v3657_v9 = vsel %vm375_vm2, %v1360_v29, %v1368_v25  ;;  %v1379_v23 = vmul.f32 %v1376_v47, %v3577_v41  ;;  %v1381_v51 = vmul.f32 %v1376_v47, %v3584_v10 }
 0x398   : > { %v1123_v6 = vsel %vm373_vm1, %v3612_v7, %v3614_v18  ;;  %v1497_v58 = vmul.f32 %v1495_v24, %v3614_v18  ;;  %v1499_v32 = vmul.f32 %v1495_v24, %v3612_v7  ;;  %v1501_v61 = vmul.f32 %v1495_v24, %v3616_v22 }
 0x399   : > { %1221 = vrot.lane.b32.xlu1 %v3602_v40, %s2951_s17  ;;  %1219 = vrot.lane.b32.xlu0 %v3606_v19, %s2951_s17  ;;  %v1389_v36 = vsel %vm373_vm1, %v1379_v23, %v1377_v57  ;;  %v1518_v5 = vmul.f32 %v1516_v12, %v3572_v17  ;;  %v1520_v14 = vmul.f32 %v1516_v12, %v3579_v35  ;;  %v1635_v62 = vstv %s3647_s26  ;;  %s3823_s26 = sld [smem:[#allocation6 + $0x38]] }
 0x39a   : > { %v1121_v37 = vsel %vm373_vm1, %v3619_v2, %v3621_v54  ;;  %v3678_v8 = vsel %vm375_vm2, %v1381_v51, %v1389_v36  ;;  %v1510_v26 = vsel %vm373_vm1, %v1499_v32, %v1497_v58  ;;  %v1522_v1 = vmul.f32 %v1516_v12, %v3587_v20 }
 0x39b   : > { %v3684_v33 = vsel %vm375_vm2, %v3616_v22, %v1123_v6  ;;  %v3687_v16 = vsel %vm375_vm2, %v1501_v61, %v1510_v26  ;;  %v1531_v30 = vsel %vm373_vm1, %v1520_v14, %v1518_v5  ;;  %v1496_v63 = vmul.f32 %v1495_v24, %v3621_v54 }
 0x39c   : > { %v3693_v34 = vsel %vm375_vm2, %v3623_v31, %v1121_v37  ;;  %v3696_v44 = vsel %vm375_vm2, %v1522_v1, %v1531_v30  ;;  %v1498_v50 = vmul.f32 %v1495_v24, %v3619_v2  ;;  %v1500_v38 = vmul.f32 %v1495_v24, %v3623_v31 }
 0x39d   : > { %1251 = vrot.lane.b32.xlu1 %v3602_v40, %s2952_s15  ;;  %1249 = vrot.lane.b32.xlu0 %v3606_v19, %s2952_s15  ;;  %v1517_v49 = vmul.f32 %v1516_v12, %v3569_v46  ;;  %v1521_v60 = vmul.f32 %v1516_v12, %v3584_v10  ;;  %v1519_v39 = vmul.f32 %v1516_v12, %v3577_v41  ;;  %v1656_v3 = vstv %s3654_s28  ;;  %s2954_s28 = smov 125  }
 0x39e   : > { %v1508_v55 = vsel %vm373_vm1, %v1498_v50, %v1496_v63  ;;  %v1637_v47 = vmul.f32 %v1635_v62, %v3614_v18  ;;  %v1639_v45 = vmul.f32 %v1635_v62, %v3612_v7  ;;  %v1641_v15 = vmul.f32 %v1635_v62, %v3616_v22 }
 0x39f   : > { %v3712_v21 = vsel %vm375_vm2, %v1500_v38, %v1508_v55  ;;  %v1529_v28 = vsel %vm373_vm1, %v1519_v39, %v1517_v49  ;;  %v1658_v0 = vmul.f32 %v1656_v3, %v3572_v17  ;;  %v1660_v27 = vmul.f32 %v1656_v3, %v3579_v35  ;;  %5371 = sst [smem:[#allocation52_spill]] %s3823_s26 }
 0x3a0   : > { %v3722_v52 = vsel %vm375_vm2, %v1521_v60, %v1529_v28  ;;  %v1650_v59 = vsel %vm373_vm1, %v1639_v45, %v1637_v47  ;;  %v1662_v11 = vmul.f32 %v1656_v3, %v3587_v20  ;;  %v1636_v29 = vmul.f32 %v1635_v62, %v3621_v54  ;;  %s5483_s26 = sld [smem:[#allocation113_spill]] }
 0x3a1   : > { %1129 = vrot.lane.b32.xlu1 %v3684_v33, %s2949_s25  ;;  %1127 = vrot.lane.b32.xlu0 %v3693_v34, %s2949_s25  ;;  %v3730_v24 = vsel %vm375_vm2, %v1641_v15, %v1650_v59  ;;  %v1671_v25 = vsel %vm373_vm1, %v1660_v27, %v1658_v0  ;;  %v1638_v57 = vmul.f32 %v1635_v62, %v3619_v2  ;;  %v1893_v6 = vstv %s2606_s10  ;;  %s3776_s25 = sld [smem:[#allocation6 + $0x2d]] }
 0x3a2   : > { %5360 = vst [vmem:[#allocation22_spill] sm:$0xff] %v3730_v24  ;;  %v3735_v12 = vsel %vm375_vm2, %v1662_v11, %v1671_v25  ;;  %v1640_v23 = vmul.f32 %v1635_v62, %v3623_v31  ;;  %v1657_v51 = vmul.f32 %v1656_v3, %v3569_v46  ;;  %v1659_v32 = vmul.f32 %v1656_v3, %v3577_v41  ;;  %s3837_s10 = sld [smem:[#allocation6 + $0x46]] }
 0x3a3   : > { %5361 = vst [vmem:[#allocation42_spill] sm:$0xff] %v3735_v12  ;;  %v1648_v58 = vsel %vm373_vm1, %v1638_v57, %v1636_v29  ;;  %v1661_v61 = vmul.f32 %v1656_v3, %v3584_v10  ;;  %v1895_v5 = vmul.f32 %v1893_v6, %v3614_v18  ;;  %v1914_v14 = vstv %s2607_s16  ;;  %s3844_s16 = sld [smem:[#allocation6 + $0x4d]] }
 0x3a4   : > { %v3747_v36 = vsel %vm375_vm2, %v1640_v23, %v1648_v58  ;;  %v1669_v37 = vsel %vm373_vm1, %v1659_v32, %v1657_v51  ;;  %v1897_v26 = vmul.f32 %v1893_v6, %v3612_v7  ;;  %v1899_v1 = vmul.f32 %v1893_v6, %v3616_v22  ;;  %s5496_s5 = sld [smem:[#allocation52_spill]] }
 0x3a5   : > { %1171 = vrot.lane.b32.xlu1 %v3684_v33, %s2950_s12  ;;  %1169 = vrot.lane.b32.xlu0 %v3693_v34, %s2950_s12  ;;  %5362 = vst [vmem:[#allocation43_spill] sm:$0xff] %v3747_v36  ;;  %v3754_v30 = vsel %vm375_vm2, %v1661_v61, %v1669_v37  ;;  %v1916_v50 = vmul.f32 %v1914_v14, %v3572_v17  ;;  %v2033_v3 = vstv %s2621_s29  ;;  %v2054_v11 = vstv %s2622_s7  ;;  %s3814_s12 = sld [smem:[#allocation6 + $0x18]] }
 0x3a6   : > { %5363 = vst [vmem:[#allocation44_spill] sm:$0xff] %v3754_v30  ;;  %v1908_v63 = vsel %vm373_vm1, %v1897_v26, %v1895_v5  ;;  %v1918_v38 = vmul.f32 %v1914_v14, %v3579_v35  ;;  %v1920_v60 = vmul.f32 %v1914_v14, %v3587_v20  ;;  %v1894_v62 = vmul.f32 %v1893_v6, %v3621_v54  ;;  %s3849_s29 = sld [smem:[#allocation6 + $0x54]] }
 0x3a7   : > { %v3764_v49 = vsel %vm375_vm2, %v1899_v1, %v1908_v63  ;;  %v1896_v39 = vmul.f32 %v1893_v6, %v3619_v2  ;;  %v1898_v47 = vmul.f32 %v1893_v6, %v3623_v31  ;;  %v1915_v45 = vmul.f32 %v1914_v14, %v3569_v46  ;;  %s3858_s7 = sld [smem:[#allocation6 + $0x5b]] }
 0x3a8   : > { %5364 = vst [vmem:[#allocation45_spill] sm:$0xff] %v3764_v49  ;;  %v1929_v55 = vsel %vm373_vm1, %v1918_v38, %v1916_v50  ;;  %v1917_v15 = vmul.f32 %v1914_v14, %v3577_v41  ;;  %v1919_v27 = vmul.f32 %v1914_v14, %v3584_v10  ;;  %v2035_v59 = vmul.f32 %v2033_v3, %v3614_v18  ;;  %5374 = sst [smem:[#allocation55_spill]] %s3837_s10 }
 0x3a9   : > { %1201 = vrot.lane.b32.xlu1 %v3684_v33, %s2951_s17  ;;  %1199 = vrot.lane.b32.xlu0 %v3693_v34, %s2951_s17  ;;  %v3772_v28 = vsel %vm375_vm2, %v1920_v60, %v1929_v55  ;;  %v1906_v0 = vsel %vm373_vm1, %v1896_v39, %v1894_v62  ;;  %v2037_v57 = vmul.f32 %v2033_v3, %v3612_v7  ;;  %s3816_s17 = sld [smem:[#allocation6 + $0x31]]  ;;  %v2173_v39 = vstv %s3776_s25 }
 0x3aa   : > { %5365 = vst [vmem:[#allocation46_spill] sm:$0xff] %v3772_v28  ;;  %v3786_v29 = vsel %vm375_vm2, %v1898_v47, %v1906_v0  ;;  %v1927_v25 = vsel %vm373_vm1, %v1917_v15, %v1915_v45  ;;  %v2039_v51 = vmul.f32 %v2033_v3, %v3616_v22  ;;  %v2056_v6 = vmul.f32 %v2054_v11, %v3572_v17  ;;  %5376 = sst [smem:[#allocation57_spill]] %s3844_s16 }
 0x3ab   : > { %5366 = vst [vmem:[#allocation47_spill] sm:$0xff] %v3786_v29  ;;  %v3793_v23 = vsel %vm375_vm2, %v1919_v27, %v1927_v25  ;;  %v2048_v58 = vsel %vm373_vm1, %v2037_v57, %v2035_v59  ;;  %v2058_v32 = vmul.f32 %v2054_v11, %v3579_v35  ;;  %v2060_v61 = vmul.f32 %v2054_v11, %v3587_v20  ;;  %s3870_s25 = sld [smem:[#allocation6 + $0x32]] }
 0x3ac   : > { %5367 = vst [vmem:[#allocation48_spill] sm:$0xff] %v3793_v23  ;;  %v3805_v5 = vsel %vm375_vm2, %v2039_v51, %v2048_v58  ;;  %v2034_v14 = vmul.f32 %v2033_v3, %v3621_v54  ;;  %v2036_v37 = vmul.f32 %v2033_v3, %v3619_v2  ;;  %v2038_v1 = vmul.f32 %v2033_v3, %v3623_v31  ;;  %5377 = sst [smem:[#allocation58_spill]] %s3849_s29 }
 0x3ad   : > { %1281 = vrot.lane.b32.xlu1 %v3602_v40, %s2953_s13  ;;  %1279 = vrot.lane.b32.xlu0 %v3606_v19, %s2953_s13  ;;  %5368 = vst [vmem:[#allocation49_spill] sm:$0xff] %v3805_v5  ;;  %v2069_v26 = vsel %vm373_vm1, %v2058_v32, %v2056_v6  ;;  %v2055_v63 = vmul.f32 %v2054_v11, %v3569_v46  ;;  %v2194_v27 = vstv %s3790_s8  ;;  %5379 = sst [smem:[#allocation60_spill]] %s3858_s7 }
 0x3ae   : > { %v3819_v50 = vsel %vm375_vm2, %v2060_v61, %v2069_v26  ;;  %v2046_v38 = vsel %vm373_vm1, %v2036_v37, %v2034_v14  ;;  %v2057_v60 = vmul.f32 %v2054_v11, %v3577_v41  ;;  %v2059_v55 = vmul.f32 %v2054_v11, %v3584_v10  ;;  %s3875_s8 = sld [smem:[#allocation6]] }
 0x3af   : > { %5369 = sst [smem:[#allocation50_spill]] %s3816_s17  ;;  %5370 = vst [vmem:[#allocation51_spill] sm:$0xff] %v3819_v50  ;;  %v3826_v62 = vsel %vm375_vm2, %v2038_v1, %v2046_v38  ;;  %v2175_v3 = vmul.f32 %v2173_v39, %v3614_v18  ;;  %v2177_v45 = vmul.f32 %v2173_v39, %v3612_v7  ;;  %v2179_v0 = vmul.f32 %v2173_v39, %v3616_v22 }
 0x3b0   : > { %5372 = vst [vmem:[#allocation53_spill] sm:$0xff] %v3826_v62  ;;  %v2067_v47 = vsel %vm373_vm1, %v2057_v60, %v2055_v63  ;;  %v2198_v59 = vmul.f32 %v2194_v27, %v3579_v35  ;;  %v2200_v25 = vmul.f32 %v2194_v27, %v3587_v20  ;;  %v2174_v57 = vmul.f32 %v2173_v39, %v3621_v54  ;;  %s4071_s29 = sld [smem:[#allocation6 + $0x5d]] }
 0x3b1   : > { %1231 = vrot.lane.b32.xlu1 %v3684_v33, %s2952_s15  ;;  %1229 = vrot.lane.b32.xlu0 %v3693_v34, %s2952_s15  ;;  %s3832_s15 = sld [smem:[#allocation6 + $0x3f]]  ;;  %v3840_v15 = vsel %vm375_vm2, %v2059_v55, %v2067_v47  ;;  %v2176_v6 = vmul.f32 %v2173_v39, %v3619_v2  ;;  %v2178_v58 = vmul.f32 %v2173_v39, %v3623_v31  ;;  %v1775_v37 = vstv %s3814_s12 }
 0x3b2   : > { %5375 = vst [vmem:[#allocation56_spill] sm:$0xff] %v3840_v15  ;;  %v2195_v61 = vmul.f32 %v2194_v27, %v3569_v46  ;;  %v2197_v14 = vmul.f32 %v2194_v27, %v3577_v41  ;;  %5382 = sst [smem:[#allocation63_spill]] %s3870_s25  ;;  %v1776_v63 = vmul.f32 %v1775_v37, %v3621_v54  ;;  %v1777_v60 = vmul.f32 %v1775_v37, %v3614_v18 }
 0x3b3   : > { %v1778_v55 = vmul.f32 %v1775_v37, %v3619_v2  ;;  %v1779_v39 = vmul.f32 %v1775_v37, %v3612_v7  ;;  %v1780_v47 = vmul.f32 %v1775_v37, %v3623_v31  ;;  %s3894_s12 = sld [smem:[#allocation6 + $0x15]] }
 0x3b4   : > { %5383 = sst [smem:[#allocation64_spill]] %s3875_s8  ;;  %v2207_v1 = vsel %vm373_vm1, %v2197_v14, %v2195_v61  ;;  %v2539_v61 = vld [vmem:[%s5436_s3 + $0x4] ss:$8 sm:$0x3] }
 0x3b5   : > { %1261 = vrot.lane.b32.xlu1 %v3684_v33, %s2953_s13  ;;  %1259 = vrot.lane.b32.xlu0 %v3693_v34, %s2953_s13  ;;  %s3863_s13 = sld [smem:[#allocation6 + $0x47]]  ;;  %v1788_v54 = vsel %vm373_vm1, %v1778_v55, %v1776_v63  ;;  %v1790_v18 = vsel %vm373_vm1, %v1779_v39, %v1777_v60 }
 0x3b6   : > { %5443 = sst [smem:[#allocation119_spill]] %s4071_s29 }
 0x3b7   : > { %5373 = sst [smem:[#allocation54_spill]] %s3832_s15 }
 0x3b8   : > { %s4077_s15 = sld [smem:[#allocation6 + $0x28]] }
 0x3b9   : > { %1291 = vrot.lane.b32.xlu1 %v3684_v33, %s2954_s28  ;;  %1289 = vrot.lane.b32.xlu0 %v3693_v34, %s2954_s28  ;;  %v2188_v33 = vsel %vm373_vm1, %v2177_v45, %v2175_v3  ;;  %v2196_v34 = vmul.f32 %v2194_v27, %v3572_v17  ;;  %v1781_v3 = vmul.f32 %v1775_v37, %v3616_v22  ;;  %5388 = sst [smem:[#allocation69_spill]] %s3894_s12  ;;  %v1796_v45 = vstv %s3809_s9 }
 0x3ba   : > { %v3852_v11 = vsel %vm375_vm2, %v2179_v0, %v2188_v33  ;;  %v3901_v0 = vsel %vm375_vm2, %v1780_v47, %v1788_v54  ;;  %v1797_v2 = vmul.f32 %v1796_v45, %v3569_v46  ;;  %v1798_v22 = vmul.f32 %v1796_v45, %v3572_v17  ;;  %s3917_s9 = sld [smem:[#allocation6 + $0x1]] }
 0x3bb   : > { %5378 = vst [vmem:[#allocation59_spill] sm:$0xff] %v3852_v11  ;;  %v2209_v51 = vsel %vm373_vm1, %v2198_v59, %v2196_v34  ;;  %5380 = sst [smem:[#allocation61_spill]] %s3863_s13  ;;  %5390 = vst [vmem:[#allocation71_spill] sm:$0xff] %v3901_v0  ;;  %v3908_v7 = vsel %vm375_vm2, %v1781_v3, %v1790_v18  ;;  %v1799_v31 = vmul.f32 %v1796_v45, %v3577_v41 }
 0x3bc   : > { %v3866_v32 = vsel %vm375_vm2, %v2200_v25, %v2209_v51  ;;  %5392 = vst [vmem:[#allocation73_spill] sm:$0xff] %v3908_v7  ;;  %v1801_v33 = vmul.f32 %v1796_v45, %v3584_v10  ;;  %v1802_v34 = vmul.f32 %v1796_v45, %v3587_v20  ;;  %v2538_v20 = vld [vmem:[%s5436_s3 + $0x2] ss:$8 sm:$0x3]  ;;  %v5438_v25 = vld [vmem:[#allocation25_spill] sm:$0xff]  ;;  %s4113_s25 = sld [smem:[#allocation6 + $0x48]] }
 0x3bd   : > { %1311 = vrot.lane.b32.xlu1 %v3602_v40, %s2954_s28  ;;  %1309 = vrot.lane.b32.xlu0 %v3606_v19, %s2954_s28  ;;  %5381 = vst [vmem:[#allocation62_spill] sm:$0xff] %v3866_v32  ;;  %v2186_v40 = vsel %vm373_vm1, %v2176_v6, %v2174_v57  ;;  %v2199_v19 = vmul.f32 %v2194_v27, %v3584_v10  ;;  %s3882_s28 = sld [smem:[#allocation6 + $0x7]]  ;;  %v2537_v10 = vld [vmem:[%s5436_s3 + $0x1] ss:$8 sm:$0x3] }
 0x3be   : > { %v3878_v26 = vsel %vm375_vm2, %v2178_v58, %v2186_v40  ;;  %v1800_v27 = vmul.f32 %v1796_v45, %v3579_v35  ;;  %v1809_v46 = vsel %vm373_vm1, %v1799_v31, %v1797_v2  ;;  %v1114_v35 = vld [vmem:[%s5436_s3] ss:$8 sm:$0x3]  ;;  %v4045_v60 = vrot.slane %v2537_v10, %v5438_v25  ;;  %v2540_v31 = vld [vmem:[%s5436_s3 + $0x5] ss:$8 sm:$0x3] }
 0x3bf   : > { %5384 = vst [vmem:[#allocation65_spill] sm:$0xff] %v3878_v26  ;;  %v3885_v38 = vsel %vm375_vm2, %v2199_v19, %v2207_v1  ;;  %v3923_v59 = vsel %vm375_vm2, %v1801_v33, %v1809_v46  ;;  %v4025_v57 = vrot.slane %v1114_v35, %v5438_v25  ;;  %v5439_v51 = vld [vmem:[#allocation26_spill] sm:$0xff]  ;;  %v4054_v47 = vrot.slane %v2538_v20, %v5438_v25  ;;  %s5466_s10 = sld [smem:[#allocation100_spill]] }
 0x3c0   : > { %5386 = vst [vmem:[#allocation67_spill] sm:$0xff] %v3885_v38  ;;  %5394 = sst [smem:[#allocation75_spill]] %s3917_s9  ;;  %5396 = vst [vmem:[#allocation77_spill] sm:$0xff] %v3923_v59  ;;  %v1811_v17 = vsel %vm373_vm1, %v1800_v27, %v1798_v22  ;;  %v4028_v6 = vrot.slane %v1114_v35, %v5439_v51  ;;  %v4048_v55 = vrot.slane %v2537_v10, %v5439_v51  ;;  %v5503_v27 = vstv %s5496_s5 }
 0x3c1   : > { %v3929_v41 = vsel %vm375_vm2, %v1802_v34, %v1811_v17  ;;  %v4057_v3 = vrot.slane %v2538_v20, %v5439_v51  ;;  %v4063_v45 = vrot.slane %v2539_v61, %v5438_v25  ;;  %v5447_v17 = vld [vmem:[#allocation23_spill] sm:$0xff]  ;;  %v4081_v35 = vrot.slane %v2539_v61, %v5439_v51  ;;  %s5469_s13 = sld [smem:[#allocation101_spill]] }
 0x3c2   : > { %5398 = vst [vmem:[#allocation79_spill] sm:$0xff] %v3929_v41  ;;  %vm1131_vm8 = vcmp.lt.s32.totalorder %v5447_v17, 3  ;;  %v2541_v34 = vld [vmem:[%s5436_s3 + $0x6] ss:$8 sm:$0x3]  ;;  %v4094_v22 = vrot.slane %v2540_v31, %v5438_v25  ;;  %v4097_v61 = vrot.slane %v2540_v31, %v5439_v51  ;;  %5465 = sst [smem:[#allocation122_spill]] %s4113_s25 }
 0x3c3   : > { %5385 = sst [smem:[#allocation66_spill]] %s3882_s28  ;;  %v4108_v33 = vrot.slane %v2541_v34, %v5438_v25  ;;  %v4116_v20 = vrot.slane %v2541_v34, %v5439_v51  ;;  %vm1173_vm9 = vcmp.lt.s32.totalorder %v5447_v17, 2  ;;  %vm1203_vm10 = vcmp.lt.s32.totalorder %v5447_v17, 1 }
 0x3c4   : > { %s4121_s28 = sld [smem:[#allocation6 + $0x5a]]  ;;  %vm1233_vm11 = vcmp.lt.s32.totalorder %v5447_v17, 127  ;;  %v5504_v34 = vmov %v5503_v27  ;;  %vm1263_vm12 = vcmp.lt.s32.totalorder %v5447_v17, 126  ;;  %vm1293_vm13 = vcmp.lt.s32.totalorder %v5447_v17, 125 }
 0x3c5   : > { %s5472_s25 = sld [smem:[#allocation105_spill]]  ;;  %vm1579_vm14 = vcmp.lt.s32.totalorder %v5447_v17, 32  ;;  %vm1439_vm15 = vcmp.lt.s32.totalorder %v5447_v17, 48  ;;  %vm1719_vm0 = vcmp.lt.s32.totalorder %v5447_v17, 16  ;;  %vm1977_vm1 = vcmp.lt.s32.totalorder %v5447_v17, 112 }
 0x3c6   : > { %s4128_s29 = sld [smem:[#allocation6 + $0x2c]]  ;;  %vm2117_vm2 = vcmp.lt.s32.totalorder %v5447_v17, 96  ;;  %vm2257_vm3 = vcmp.lt.s32.totalorder %v5447_v17, 80 }
 0x3c7   : > { %s4134_s8 = sld [smem:[#allocation6 + $0x60]] }
 0x3c8   : > { %s5484_s7 = sld [smem:[#allocation115_spill]] }
 0x3c9   : > { %5485 = sst [smem:[#allocation105_spill]] %s4147_s4 }
 0x3ca   : > { %5468 = sst [smem:[#allocation100_spill]] %s4121_s28 }
 0x3cb   : > { %s5478_s28 = sld [smem:[#allocation107_spill]] }
 0x3cc   : > { %5474 = sst [smem:[#allocation101_spill]] %s4128_s29 }
 0x3cd   : > { %5477 = sst [smem:[#allocation103_spill]] %s4134_s8 }
 0x3ce   : > { %s4141_s29 = sld [smem:[#allocation6 + $0x2e]] }
 0x3cf   : > { %s4153_s16 = sld [smem:[#allocation6 + $0x30]] }
 0x3d0   : > { %s5490_s3 = sld [smem:[#allocation121_spill]] }
 0x3d1   : > { %s5493_s12 = sld [smem:[#allocation100_spill]] }
 0x3d2   : > { %s5494_s1 = sld [smem:[#allocation101_spill]] }
 0x3d3   : > { %s5495_s17 = sld [smem:[#allocation50_spill]] }
 0x3d4   : > { %s5497_s6 = sld [smem:[#allocation54_spill]] }
 0x3d5   : > { %5487 = sst [smem:[#allocation107_spill]] %s4153_s16 }
 0x3d6   : > { %s5498_s9 = sld [smem:[#allocation55_spill]] }
 0x3d7   : > { %s5499_s0 = sld [smem:[#allocation57_spill]] }
 0x3d8   : > { %s5502_s8 = sld [smem:[#allocation58_spill]] }
 0x3d9   : > { %v5500_v40 = vstv %s5495_s17  ;;  %s5507_s16 = sld [smem:[#allocation60_spill]] }
 0x3da   : > { %v5506_v53 = vstv %s5497_s6  ;;  %s5509_s17 = sld [smem:[#allocation63_spill]] }
 0x3db   : > { %s5511_s5 = sld [smem:[#allocation85_spill]] }
 0x3dc   : > { %s5529_s6 = sld [smem:[#allocation91_spill]] }
 0x3dd   : > { %s5549_s4 = sld [smem:[#allocation95_spill]] }
 0x3e1   : > { %v5532_v32 = vstv %s5511_s5 }
 0x403   : > { %v1162_v54 = vpop.permute.xlu1 %1161  ;;  %v1160_v46 = vpop.permute.xlu0 %1159 }
 0x404   : > { %v1164_v31 = vsel %vm1131_vm8, %v1162_v54, %v1160_v46  ;;  %v1163_v10 = vsel %vm1131_vm8, %v1160_v46, %v1162_v54 }
 0x405   : > { %v1165_v39 = vmul.f32 %v1164_v31, %v4025_v57  ;;  %v1166_v2 = vmul.f32 %v1163_v10, %v4028_v6 }
 0x407   : > { %v1192_v1 = vpop.permute.xlu1 %1191  ;;  %v1190_v37 = vpop.permute.xlu0 %1189  ;;  %v4196_v19 = vmul.f32 %v5500_v40, %v1165_v39  ;;  %v4209_v4 = vmul.f32 %v5503_v27, %v1165_v39  ;;  %v4213_v58 = vmul.f32 %v5504_v34, %v1166_v2  ;;  %v4220_v56 = vmul.f32 %v5506_v53, %v1165_v39 }
 0x408   : > { %v1193_v14 = vsel %vm1173_vm9, %v1190_v37, %v1192_v1  ;;  %v1194_v46 = vsel %vm1173_vm9, %v1192_v1, %v1190_v37  ;;  %v5501_v37 = vmov %v5500_v40  ;;  %v5513_v34 = vstv %s5498_s9  ;;  %s5523_s9 = sld [smem:[#allocation89_spill]] }
 0x409   : > { %v4205_v1 = vmul.f32 %v5501_v37, %v1166_v2  ;;  %v4216_v40 = vmul.f32 %v1193_v14, %v4048_v55  ;;  %v4227_v37 = vmul.f32 %v1194_v46, %v4045_v60  ;;  %v1745_v14 = vmul.f32 %v5513_v34, %v1165_v39 }
 0x40a   : > { %v5514_v31 = vmov %v5513_v34 }
 0x40b   : > { %v1222_v54 = vpop.permute.xlu1 %1221  ;;  %v1220_v10 = vpop.permute.xlu0 %1219  ;;  %5505 = vst [vmem:[#allocation23_spill] sm:$0xff] %v4216_v40  ;;  %5510 = vst [vmem:[#allocation123_spill] sm:$0xff] %v4227_v37  ;;  %v1746_v42 = vmul.f32 %v5514_v31, %v1166_v2 }
 0x40c   : > { %v1223_v18 = vsel %vm1203_vm10, %v1220_v10, %v1222_v54  ;;  %v1224_v63 = vsel %vm1203_vm10, %v1222_v54, %v1220_v10  ;;  %v5508_v54 = vmov %v5506_v53  ;;  %v5516_v53 = vstv %s5499_s0  ;;  %s5539_s0 = sld [smem:[#allocation99_spill]] }
 0x40d   : > { %v4224_v10 = vmul.f32 %v5508_v54, %v1166_v2  ;;  %v4230_v27 = vmul.f32 %v1223_v18, %v4057_v3  ;;  %v4238_v13 = vmul.f32 %v5516_v53, %v1165_v39  ;;  %v4241_v54 = vmul.f32 %v1224_v63, %v4054_v47 }
 0x40e   : > { %v5519_v25 = vmov %v5516_v53  ;;  %v5521_v18 = vstv %s5502_s8  ;;  %v5526_v63 = vstv %s5507_s16  ;;  %s5534_s8 = sld [smem:[#allocation94_spill]]  ;;  %v5542_v15 = vstv %s5523_s9 }
 0x40f   : > { %5512 = vst [vmem:[#allocation124_spill] sm:$0xff] %v4230_v27  ;;  %5517 = vst [vmem:[#allocation125_spill] sm:$0xff] %v4238_v13  ;;  %v1252_v51 = vpop.permute.xlu1 %1251  ;;  %v1250_v46 = vpop.permute.xlu0 %1249  ;;  %v4245_v41 = vmul.f32 %v5519_v25, %v1166_v2  ;;  %v4249_v59 = vmul.f32 %v5521_v18, %v1165_v39  ;;  %v5524_v53 = vmov %v5521_v18  ;;  %v4261_v0 = vmul.f32 %v5526_v63, %v1165_v39  ;;  %s5537_s16 = sld [smem:[#allocation97_spill]] }
 0x410   : > { %5518 = vst [vmem:[#allocation126_spill] sm:$0xff] %v4241_v54  ;;  %v1253_v31 = vsel %vm1233_vm11, %v1250_v46, %v1252_v51  ;;  %v1254_v34 = vsel %vm1233_vm11, %v1252_v51, %v1250_v46  ;;  %v4257_v7 = vmul.f32 %v5524_v53, %v1166_v2  ;;  %v5528_v25 = vmov %v5526_v63  ;;  %s5563_s9 = sld [smem:[#allocation64_spill]] }
 0x411   : > { %5520 = vst [vmem:[#allocation127_spill] sm:$0xff] %v4245_v41  ;;  %5522 = vst [vmem:[#allocation128_spill] sm:$0xff] %v4249_v59  ;;  %v4265_v38 = vmul.f32 %v5528_v25, %v1166_v2  ;;  %v5531_v18 = vstv %s5509_s17  ;;  %v4275_v11 = vmul.f32 %v5532_v32, %v4230_v27  ;;  %v5535_v39 = vstv %s5515_s22  ;;  %s5543_s22 = sld [smem:[#allocation86_spill]] }
 0x412   : > { %5525 = vst [vmem:[#allocation129_spill] sm:$0xff] %v4257_v7  ;;  %5527 = vst [vmem:[#allocation130_spill] sm:$0xff] %v4261_v0  ;;  %v4270_v26 = vmul.f32 %v5531_v18, %v4216_v40  ;;  %v5533_v51 = vmov %v5531_v18  ;;  %v4285_v53 = vmul.f32 %v5535_v39, %v4216_v40  ;;  %v5536_v2 = vmov %v5535_v39  ;;  %s5544_s17 = sld [smem:[#allocation90_spill]] }
 0x413   : > { %5530 = vst [vmem:[#allocation131_spill] sm:$0xff] %v4265_v38  ;;  %v4280_v46 = vmul.f32 %v5533_v51, %v4227_v37  ;;  %v4290_v63 = vmul.f32 %v5536_v2, %v4227_v37  ;;  %v4293_v25 = vmul.f32 %v1253_v31, %v4063_v45  ;;  %v4296_v32 = vmul.f32 %v1254_v34, %v4081_v35  ;;  %v1130_v18 = vpop.permute.xlu1 %1129  ;;  %v1128_v51 = vpop.permute.xlu0 %1127 }
 0x414   : > { %v5541_v0 = vstv %s5511_s5  ;;  %v4306_v2 = vmul.f32 %v5542_v15, %v4230_v27  ;;  %v1132_v31 = vsel %vm1131_vm8, %v1128_v51, %v1130_v18  ;;  %v1133_v34 = vsel %vm1131_vm8, %v1130_v18, %v1128_v51  ;;  %s5547_s5 = sld [smem:[#allocation69_spill]] }
 0x415   : > { %5538 = vst [vmem:[#allocation132_spill] sm:$0xff] %v4293_v25  ;;  %5540 = vst [vmem:[#allocation133_spill] sm:$0xff] %v4296_v32  ;;  %v4301_v39 = vmul.f32 %v5541_v0, %v4241_v54  ;;  %v5545_v62 = vmov %v5542_v15  ;;  %v5546_v0 = vstv %s5529_s6  ;;  %v1145_v15 = vmul.f32 %v4025_v57, %v1133_v34  ;;  %s5581_s6 = sld [smem:[#allocation66_spill]] }
 0x416   : > { %v4315_v38 = vmul.f32 %v5545_v62, %v4241_v54  ;;  %v4320_v50 = vmul.f32 %v5546_v0, %v4216_v40  ;;  %v1146_v5 = vmul.f32 %v4028_v6, %v1132_v31  ;;  %v5548_v23 = vstv %s5534_s8  ;;  %s5589_s8 = sld [smem:[#allocation72_spill]] }
 0x417   : > { %v4327_v18 = vmul.f32 %v5548_v23, %v4230_v27  ;;  %v5551_v51 = vmov %v5546_v0  ;;  %v5553_v29 = vmov %v5548_v23  ;;  %v5555_v57 = vstv %s5537_s16  ;;  %v1170_v28 = vpop.permute.xlu0 %1169  ;;  %s5590_s16 = sld [smem:[#allocation75_spill]] }
 0x418   : > { %v4332_v62 = vmul.f32 %v5551_v51, %v4227_v37  ;;  %v4337_v0 = vmul.f32 %v5553_v29, %v4241_v54  ;;  %v4342_v34 = vmul.f32 %v5555_v57, %v4216_v40  ;;  %v5557_v6 = vstv %s5539_s0  ;;  %v1172_v51 = vpop.permute.xlu1 %1171 }
 0x419   : > { %5550 = vst [vmem:[#allocation134_spill] sm:$0xff] %v4327_v18  ;;  %v4347_v23 = vmul.f32 %v5557_v6, %v4230_v27  ;;  %v5559_v31 = vmov %v5555_v57  ;;  %v5561_v29 = vstv %s5543_s22  ;;  %v5564_v6 = vstv %s5544_s17  ;;  %s5595_s22 = sld [smem:[#allocation74_spill]] }
 0x41a   : > { %5552 = vst [vmem:[#allocation135_spill] sm:$0xff] %v4332_v62  ;;  %5554 = vst [vmem:[#allocation136_spill] sm:$0xff] %v4337_v0  ;;  %v4352_v59 = vmul.f32 %v5559_v31, %v4227_v37  ;;  %v4357_v49 = vmul.f32 %v5561_v29, %v4296_v32  ;;  %v5562_v57 = vmov %v5561_v29  ;;  %v5565_v31 = vstv %s5539_s0  ;;  %s5591_s0 = sld [smem:[#allocation80_spill]] }
 0x41b   : > { %5556 = vst [vmem:[#allocation137_spill] sm:$0xff] %v4342_v34  ;;  %5558 = vst [vmem:[#allocation138_spill] sm:$0xff] %v4347_v23  ;;  %v4362_v30 = vmul.f32 %v5562_v57, %v4293_v25  ;;  %v4367_v23 = vmul.f32 %v5564_v6, %v4296_v32  ;;  %v4372_v7 = vmul.f32 %v5565_v31, %v4241_v54  ;;  %v5569_v29 = vmov %v5564_v6  ;;  %s5609_s17 = sld [smem:[#allocation78_spill]] }
 0x41c   : > { %5560 = vst [vmem:[#allocation139_spill] sm:$0xff] %v4352_v59  ;;  %v5567_v59 = vstv %s5547_s5  ;;  %v4381_v12 = vmul.f32 %v5569_v29, %v4293_v25  ;;  %v5571_v13 = vstv %s5549_s4  ;;  %v5575_v31 = vstv %s5469_s13  ;;  %s5583_s4 = sld [smem:[#allocation68_spill]] }
 0x41d   : > { %5566 = vst [vmem:[#allocation140_spill] sm:$0xff] %v4372_v7  ;;  %v1740_v36 = vmul.f32 %v5567_v59, %v1145_v15  ;;  %v5568_v34 = vmov %v5567_v59  ;;  %v4386_v57 = vmul.f32 %v5571_v13, %v4296_v32  ;;  %v5573_v6 = vmov %v5571_v13  ;;  %s5588_s13 = sld [smem:[#allocation70_spill]] }
 0x41e   : > { %v1741_v0 = vmul.f32 %v5568_v34, %v1146_v5  ;;  %5570 = vst [vmem:[#allocation141_spill] sm:$0xff] %v4381_v12  ;;  %v4391_v24 = vmul.f32 %v5573_v6, %v4293_v25  ;;  %v4396_v54 = vmul.f32 %v5575_v31, %v4296_v32  ;;  %v5577_v59 = vmov %v5575_v31  ;;  %s5613_s5 = sld [smem:[#allocation88_spill]] }
 0x41f   : > { %5572 = vst [vmem:[#allocation142_spill] sm:$0xff] %v4386_v57  ;;  %v4401_v34 = vmul.f32 %v5577_v59, %v4293_v25  ;;  %v5579_v29 = vstv %s5478_s28  ;;  %v1747_v13 = vadd.f32 %v1745_v14, %v1740_v36  ;;  %v5582_v41 = vstv %s5479_s27  ;;  %v1202_v36 = vpop.permute.xlu1 %1201 }
 0x420   : > { %5574 = vst [vmem:[#allocation143_spill] sm:$0xff] %v4391_v24  ;;  %5576 = vst [vmem:[#allocation144_spill] sm:$0xff] %v4396_v54  ;;  %v4406_v7 = vmul.f32 %v5579_v29, %v4216_v40  ;;  %v1748_v57 = vadd.f32 %v1746_v42, %v1741_v0  ;;  %v4411_v6 = vmul.f32 %v5582_v41, %v4230_v27  ;;  %v5585_v31 = vstv %s5483_s26  ;;  %v1200_v41 = vpop.permute.xlu0 %1199 }
 0x421   : > { %5578 = vst [vmem:[#allocation145_spill] sm:$0xff] %v4401_v34  ;;  %v4416_v54 = vmul.f32 %v5585_v31, %v4296_v32  ;;  %v5587_v24 = vstv %s5563_s9  ;;  %v1174_v29 = vsel %vm1173_vm9, %v1170_v28, %v1172_v51  ;;  %v1175_v42 = vsel %vm1173_vm9, %v1172_v51, %v1170_v28  ;;  %s5618_s9 = sld [smem:[#allocation81_spill]] }
 0x422   : > { %5580 = vst [vmem:[#allocation146_spill] sm:$0xff] %v4406_v7  ;;  %5584 = vst [vmem:[#allocation147_spill] sm:$0xff] %v4411_v6  ;;  %v1320_v59 = vmul.f32 %v5587_v24, %v1145_v15  ;;  %v5592_v14 = vstv %s5478_s28  ;;  %v1321_v31 = vmul.f32 %v5587_v24, %v1146_v5  ;;  %v4433_v32 = vmul.f32 %v4045_v60, %v1175_v42  ;;  %s5606_s28 = sld [smem:[#allocation76_spill]] }
 0x423   : > { %5586 = vst [vmem:[#allocation148_spill] sm:$0xff] %v4416_v54  ;;  %v4428_v0 = vmul.f32 %v5592_v14, %v4227_v37  ;;  %v4436_v25 = vmul.f32 %v4048_v55, %v1174_v29  ;;  %v1204_v28 = vsel %vm1203_vm10, %v1200_v41, %v1202_v36  ;;  %v5594_v51 = vstv %s5581_s6  ;;  %s5621_s6 = sld [smem:[#allocation93_spill]] }
 0x424   : > { %v1460_v27 = vmul.f32 %v5594_v51, %v1145_v15  ;;  %v5596_v54 = vmov %v5594_v51  ;;  %v5597_v14 = vstv %s5583_s4  ;;  %v1205_v60 = vsel %vm1203_vm10, %v1202_v36, %v1200_v41  ;;  %s5622_s4 = sld [smem:[#allocation82_spill]] }
 0x425   : > { %5593 = vst [vmem:[#allocation149_spill] sm:$0xff] %v4428_v0  ;;  %v1461_v40 = vmul.f32 %v5596_v54, %v1146_v5  ;;  %v4446_v37 = vmul.f32 %v5597_v14, %v1145_v15  ;;  %v5598_v42 = vmov %v5597_v14  ;;  %v5599_v29 = vstv %s5588_s13  ;;  %s5630_s13 = sld [smem:[#allocation96_spill]] }
 0x426   : > { %v4452_v55 = vmul.f32 %v5598_v42, %v1146_v5  ;;  %v4456_v24 = vmul.f32 %v5599_v29, %v1145_v15  ;;  %v5601_v34 = vmov %v5599_v29  ;;  %v5603_v51 = vstv %s5589_s8  ;;  %v1282_v29 = vpop.permute.xlu1 %1281  ;;  %s5636_s8 = sld [smem:[#allocation92_spill]] }
 0x427   : > { %v4460_v0 = vmul.f32 %v5601_v34, %v1146_v5  ;;  %v4464_v6 = vmul.f32 %v5603_v51, %v1145_v15  ;;  %v5605_v54 = vstv %s5590_s16  ;;  %v5607_v7 = vstv %s5591_s0  ;;  %v1280_v34 = vpop.permute.xlu0 %1279  ;;  %s5639_s16 = sld [smem:[#allocation98_spill]] }
 0x428   : > { %5600 = vst [vmem:[#allocation150_spill] sm:$0xff] %v4456_v24  ;;  %v1333_v14 = vmul.f32 %v5605_v54, %v4436_v25  ;;  %v1752_v62 = vmul.f32 %v5607_v7, %v4433_v32  ;;  %v5608_v36 = vmov %v5607_v7  ;;  %v4476_v42 = vmul.f32 %v4057_v3, %v1204_v28  ;;  %s5645_s0 = sld [smem:[#allocation109_spill]] }
 0x429   : > { %5602 = vst [vmem:[#allocation151_spill] sm:$0xff] %v4460_v0  ;;  %5604 = vst [vmem:[#allocation152_spill] sm:$0xff] %v4464_v6  ;;  %v1753_v41 = vmul.f32 %v5608_v36, %v4436_v25  ;;  %v5610_v24 = vmov %v5603_v51  ;;  %v5611_v6 = vstv %s5595_s22  ;;  %v1332_v18 = vmul.f32 %v5605_v54, %v4433_v32  ;;  %s5647_s22 = sld [smem:[#allocation102_spill]] }
 0x42a   : > { %v4480_v51 = vmul.f32 %v5610_v24, %v1146_v5  ;;  %v4484_v0 = vmul.f32 %v5611_v6, %v1145_v15  ;;  %v4490_v7 = vmul.f32 %v4054_v47, %v1205_v60  ;;  %v5614_v36 = vmov %v5611_v6 }
 0x42b   : > { %v4494_v3 = vmul.f32 %v5614_v36, %v1146_v5  ;;  %v4496_v28 = vadd.f32 %v1752_v62, %v1747_v13  ;;  %v4498_v12 = vadd.f32 %v1753_v41, %v1748_v57  ;;  %v1328_v15 = vadd.f32 %v4205_v1, %v1321_v31  ;;  %v1232_v1 = vpop.permute.xlu1 %1231  ;;  %v1230_v31 = vpop.permute.xlu0 %1229 }
 0x42c   : > { %5612 = vst [vmem:[#allocation153_spill] sm:$0xff] %v4484_v0  ;;  %v5617_v6 = vstv %s5606_s28  ;;  %v1327_v47 = vadd.f32 %v4196_v19, %v1320_v59  ;;  %v1468_v5 = vadd.f32 %v4213_v58, %v1461_v40  ;;  %v1467_v62 = vadd.f32 %v4209_v4, %v1460_v27  ;;  %s5649_s28 = sld [smem:[#allocation83_spill]] }
 0x42d   : > { %5615 = vst [vmem:[#allocation154_spill] sm:$0xff] %v4496_v28  ;;  %5616 = vst [vmem:[#allocation155_spill] sm:$0xff] %v4498_v12  ;;  %v1473_v24 = vmul.f32 %v5617_v6, %v4436_v25  ;;  %v5619_v57 = vmov %v5617_v6  ;;  %v5620_v60 = vstv %s5609_s17  ;;  %v1335_v54 = vadd.f32 %v1333_v14, %v1328_v15  ;;  %s5652_s17 = sld [smem:[#allocation110_spill]] }
 0x42e   : > { %v1472_v13 = vmul.f32 %v5619_v57, %v4433_v32  ;;  %v4514_v41 = vmul.f32 %v5620_v60, %v4433_v32  ;;  %v5623_v36 = vstv %s5613_s5  ;;  %v1234_v58 = vsel %vm1233_vm11, %v1230_v31, %v1232_v1  ;;  %s5661_s5 = sld [smem:[#allocation114_spill]] }
 0x42f   : > { %v1345_v6 = vmul.f32 %v5623_v36, %v4476_v42  ;;  %v1235_v4 = vsel %vm1233_vm11, %v1232_v1, %v1230_v31  ;;  %v1334_v19 = vadd.f32 %v1332_v18, %v1327_v47  ;;  %v5624_v40 = vmov %v5623_v36 }
 0x430   : > { %v1344_v27 = vmul.f32 %v5624_v40, %v4490_v7  ;;  %v5625_v59 = vmov %v5620_v60  ;;  %v5626_v60 = vstv %s5618_s9  ;;  %v1340_v12 = vadd.f32 %v4270_v26, %v1335_v54  ;;  %v1262_v26 = vpop.permute.xlu1 %1261  ;;  %v1260_v54 = vpop.permute.xlu0 %1259  ;;  %s5662_s9 = sld [smem:[#allocation106_spill]] }
 0x431   : > { %v4529_v57 = vmul.f32 %v5625_v59, %v4436_v25  ;;  %v4534_v14 = vmul.f32 %v5626_v60, %v4433_v32  ;;  %v5627_v15 = vmov %v5626_v60  ;;  %v1283_v18 = vsel %vm1263_vm12, %v1280_v34, %v1282_v29 }
 0x432   : > { %v4539_v36 = vmul.f32 %v5627_v15, %v4436_v25  ;;  %v1339_v47 = vadd.f32 %v4280_v46, %v1334_v19  ;;  %v1475_v1 = vadd.f32 %v1473_v24, %v1468_v5  ;;  %v5628_v31 = vstv %s5621_s6 }
 0x433   : > { %v1485_v40 = vmul.f32 %v5628_v31, %v4476_v42  ;;  %v5629_v59 = vstv %s5622_s4  ;;  %v4554_v28 = vmul.f32 %v4063_v45, %v1234_v58  ;;  %v4557_v15 = vmul.f32 %v4081_v35, %v1235_v4  ;;  %s2959_s4 = smov 96  }
 0x434   : > { %v4551_v60 = vmul.f32 %v5629_v59, %v4433_v32  ;;  %v1347_v0 = vadd.f32 %v1345_v6, %v1340_v12  ;;  %v1264_v46 = vsel %vm1263_vm12, %v1260_v54, %v1262_v26  ;;  %v1265_v24 = vsel %vm1263_vm12, %v1262_v26, %v1260_v54 }
 0x435   : > { %v1346_v5 = vadd.f32 %v1344_v27, %v1339_v47  ;;  %v1480_v19 = vadd.f32 %v4285_v53, %v1475_v1  ;;  %v5631_v45 = vmov %v5629_v59  ;;  %v1284_v35 = vsel %vm1263_vm12, %v1282_v29, %v1280_v34  ;;  %v1292_v1 = vpop.permute.xlu1 %1291  ;;  %v1290_v29 = vpop.permute.xlu0 %1289 }
 0x436   : > { %v4567_v58 = vmul.f32 %v5631_v45, %v4436_v25  ;;  %v4572_v12 = vmul.f32 %v1283_v18, %v4094_v22  ;;  %v1352_v6 = vadd.f32 %v4275_v11, %v1347_v0  ;;  %v4576_v4 = vmul.f32 %v4097_v61, %v1265_v24 }
 0x437   : > { %v1351_v31 = vadd.f32 %v4301_v39, %v1346_v5  ;;  %v1487_v27 = vadd.f32 %v1485_v40, %v1480_v19  ;;  %v1474_v53 = vadd.f32 %v1472_v13, %v1467_v62  ;;  %v4580_v47 = vmul.f32 %v4094_v22, %v1264_v46 }
 0x438   : > { %v1375_v34 = vadd.f32 %v3643_v48, %v1352_v6  ;;  %v5632_v18 = vstv %s5630_s13  ;;  %v1294_v39 = vsel %vm1293_vm13, %v1290_v29, %v1292_v1  ;;  %v1295_v62 = vsel %vm1293_vm13, %v1292_v1, %v1290_v29  ;;  %s5771_s13 = sld [smem:[#allocation122_spill]] }
 0x439   : > { %v1401_v11 = vmul.f32 %v5632_v18, %v4557_v15  ;;  %v5633_v0 = vmov %v5632_v18  ;;  %v1374_v22 = vadd.f32 %v3657_v9, %v1351_v31  ;;  %v1492_v13 = vadd.f32 %v4306_v2, %v1487_v27 }
 0x43a   : > { %v1400_v59 = vmul.f32 %v5633_v0, %v4554_v28  ;;  %v4596_v40 = vmul.f32 %v1284_v35, %v4097_v61  ;;  %v1396_v48 = vadd.f32 %v3650_v43, %v1375_v34  ;;  %v1479_v26 = vadd.f32 %v4290_v63, %v1474_v53  ;;  %v1312_v63 = vpop.permute.xlu1 %1311  ;;  %v1310_v35 = vpop.permute.xlu0 %1309 }
 0x43b   : > { %v5634_v54 = vstv %s5621_s6  ;;  %v5635_v24 = vstv %s5466_s10  ;;  %v1395_v19 = vadd.f32 %v3678_v8, %v1374_v22  ;;  %v1515_v9 = vadd.f32 %v3687_v16, %v1492_v13  ;;  %s5641_s10 = sld [smem:[#allocation104_spill]]  ;;  %s2956_s6 = smov 32  }
 0x43c   : > { %v1484_v46 = vmul.f32 %v5634_v54, %v4490_v7  ;;  %v1413_v5 = vmul.f32 %v5635_v24, %v4576_v4  ;;  %v5637_v2 = vstv %s3975_s20  ;;  %v4612_v61 = vmul.f32 %v4108_v33, %v1294_v39 }
 0x43d   : > { %v1541_v45 = vmul.f32 %v5637_v2, %v4557_v15  ;;  %v4615_v43 = vmul.f32 %v4116_v20, %v1295_v62  ;;  %v1403_v6 = vadd.f32 %v1401_v11, %v1396_v48  ;;  %v5638_v31 = vmov %v5635_v24 }
 0x43e   : > { %v1412_v8 = vmul.f32 %v5638_v31, %v4580_v47  ;;  %v1313_v16 = vsel %vm1293_vm13, %v1310_v35, %v1312_v63  ;;  %v1314_v27 = vsel %vm1293_vm13, %v1312_v63, %v1310_v35  ;;  %v1402_v53 = vadd.f32 %v1400_v59, %v1395_v19 }
 0x43f   : > { %v1536_v1 = vadd.f32 %v3696_v44, %v1515_v9  ;;  %v4626_v29 = vmul.f32 %v1314_v27, %v4116_v20  ;;  %v1408_v34 = vadd.f32 %v4357_v49, %v1403_v6  ;;  %v5640_v18 = vstv %s5636_s8  ;;  %s4909_s8 = sld [smem:[#allocation6 + $0x1a]] }
 0x440   : > { %v1418_v11 = vmul.f32 %v5640_v18, %v4596_v40  ;;  %v1486_v0 = vadd.f32 %v1484_v46, %v1479_v26  ;;  %v4633_v39 = vmul.f32 %v1313_v16, %v4108_v33  ;;  %v1407_v62 = vadd.f32 %v4362_v30, %v1402_v53 }
 0x441   : > { %v1543_v59 = vadd.f32 %v1541_v45, %v1536_v1  ;;  %v5642_v44 = vstv %s5472_s25  ;;  %v1415_v20 = vadd.f32 %v1413_v5, %v1408_v34  ;;  %v5643_v13 = vstv %s5470_s24  ;;  %s2955_s24 = smov 48  }
 0x442   : > { %v1553_v22 = vmul.f32 %v5642_v44, %v4576_v4  ;;  %v1425_v49 = vmul.f32 %v5643_v13, %v4615_v43  ;;  %v5644_v48 = vmov %v5640_v18  ;;  %v5646_v26 = vstv %s5639_s16  ;;  %s5776_s16 = sld [smem:[#allocation108_spill]] }
 0x443   : > { %v1417_v54 = vmul.f32 %v5644_v48, %v4572_v12  ;;  %v1558_v46 = vmul.f32 %v5646_v26, %v4596_v40  ;;  %v1414_v33 = vadd.f32 %v1412_v8, %v1407_v62  ;;  %v5648_v30 = vmov %v5643_v13 }
 0x444   : > { %v1424_v24 = vmul.f32 %v5648_v30, %v4612_v61  ;;  %v1548_v19 = vadd.f32 %v4367_v23, %v1543_v59  ;;  %v1491_v5 = vadd.f32 %v4315_v38, %v1486_v0  ;;  %v1420_v9 = vadd.f32 %v1418_v11, %v1415_v20 }
 0x445   : > { %v5650_v2 = vstv %s5641_s10  ;;  %v5651_v63 = vstv %s3975_s20  ;;  %v1608_v6 = vadd.f32 %v4224_v10, %v4452_v55  ;;  %v1419_v31 = vadd.f32 %v1417_v54, %v1414_v33  ;;  %s5658_s20 = sld [smem:[#allocation111_spill]] }
 0x446   : > { %v1430_v45 = vmul.f32 %v5650_v2, %v4626_v29  ;;  %v1540_v35 = vmul.f32 %v5651_v63, %v4554_v28  ;;  %v5653_v8 = vmov %v5650_v2  ;;  %v1555_v27 = vadd.f32 %v1553_v22, %v1548_v19  ;;  %s4928_s10 = sld [smem:[#allocation6 + $0x1b]] }
 0x447   : > { %v1429_v16 = vmul.f32 %v5653_v8, %v4633_v39  ;;  %v1514_v23 = vadd.f32 %v3712_v21, %v1491_v5  ;;  %v1427_v38 = vadd.f32 %v1425_v49, %v1420_v9  ;;  %v5654_v53 = vstv %s5645_s0  ;;  %v5671_v8 = vld [vmem:[#allocation151_spill] sm:$0xff] }
 0x448   : > { %v1565_v1 = vmul.f32 %v5654_v53, %v4615_v43  ;;  %v1615_v34 = vadd.f32 %v4529_v57, %v1608_v6  ;;  %v5655_v18 = vstv %s5647_s22  ;;  %v5656_v10 = vstv %s5649_s28  ;;  %v5670_v6 = vld [vmem:[#allocation135_spill] sm:$0xff] }
 0x449   : > { %v1625_v11 = vmul.f32 %v5655_v18, %v4476_v42  ;;  %v4675_v55 = vmul.f32 %v5656_v10, %v4436_v25  ;;  %v1426_v0 = vadd.f32 %v1424_v24, %v1419_v31  ;;  %v1560_v62 = vadd.f32 %v1558_v46, %v1555_v27  ;;  %v5676_v10 = vld [vmem:[#allocation22_spill] sm:$0xff] }
 0x44a   : > { %v1535_v59 = vadd.f32 %v3722_v52, %v1514_v23  ;;  %v1432_v21 = vadd.f32 %v1430_v45, %v1427_v38  ;;  %v5657_v44 = vstv %s5652_s17  ;;  %v1620_v57 = vadd.f32 %v4320_v50, %v1615_v34 }
 0x44b   : > { %v1570_v22 = vmul.f32 %v5657_v44, %v4626_v29  ;;  %v1607_v20 = vadd.f32 %v4220_v56, %v4446_v37  ;;  %v1431_v13 = vadd.f32 %v1429_v16, %v1426_v0  ;;  %v5659_v49 = vstv %s5472_s25  ;;  %v5664_v37 = vld [vmem:[#allocation141_spill] sm:$0xff]  ;;  %s5667_s25 = sld [smem:[#allocation112_spill]]  ;;  %v5672_v16 = vld [vmem:[#allocation127_spill] sm:$0xff] }
 0x44c   : > { %v1542_v25 = vadd.f32 %v1540_v35, %v1535_v59  ;;  %v1552_v48 = vmul.f32 %v5659_v49, %v4580_v47  ;;  %v5660_v54 = vmov %v5646_v26  ;;  %1437 = vrot.lane.b32.xlu1 %v1432_v21, %s2955_s24  ;;  %v1567_v26 = vadd.f32 %v1565_v1, %v1560_v62  ;;  %v5669_v35 = vld [vmem:[#allocation134_spill] sm:$0xff] }
 0x44d   : > { %v1557_v52 = vmul.f32 %v5660_v54, %v4572_v12  ;;  %v1627_v46 = vadd.f32 %v1625_v11, %v1620_v57  ;;  %v1614_v50 = vadd.f32 %v4514_v41, %v1607_v20  ;;  %v5663_v33 = vmov %v5655_v18  ;;  %1435 = vrot.lane.b32.xlu0 %v1431_v13, %s2955_s24  ;;  %v5680_v49 = vld [vmem:[#allocation150_spill] sm:$0xff] }
 0x44e   : > { %v1624_v56 = vmul.f32 %v5663_v33, %v4490_v7  ;;  %v1547_v30 = vadd.f32 %v5664_v37, %v1542_v25  ;;  %v5665_v24 = vmov %v5654_v53  ;;  %v5666_v5 = vmov %v5657_v44  ;;  %v5685_v37 = vld [vmem:[#allocation137_spill] sm:$0xff] }
 0x44f   : > { %v1564_v19 = vmul.f32 %v5665_v24, %v4612_v61  ;;  %v1569_v9 = vmul.f32 %v5666_v5, %v4633_v39  ;;  %v5668_v2 = vstv %s5658_s20  ;;  %v1572_v63 = vadd.f32 %v1570_v22, %v1567_v26  ;;  %v5682_v26 = vld [vmem:[#allocation42_spill] sm:$0xff] }
 0x450   : > { %v1681_v45 = vmul.f32 %v5668_v2, %v4557_v15  ;;  %v1632_v41 = vadd.f32 %v5669_v35, %v1627_v46  ;;  %v1619_v31 = vadd.f32 %v5670_v6, %v1614_v50  ;;  %v1866_v27 = vadd.f32 %v5672_v16, %v5671_v8  ;;  %v5683_v50 = vld [vmem:[#allocation136_spill] sm:$0xff]  ;;  %v5688_v6 = vld [vmem:[#allocation43_spill] sm:$0xff] }
 0x451   : > { %v1554_v23 = vadd.f32 %v1552_v48, %v1547_v30  ;;  %v5673_v38 = vstv %s5661_s5  ;;  %v5674_v1 = vstv %s5662_s9  ;;  %v5675_v18 = vstv %s4012_s19  ;;  %1577 = vrot.lane.b32.xlu1 %v1572_v63, %s2956_s6  ;;  %v5681_v48 = vld [vmem:[#allocation125_spill] sm:$0xff]  ;;  %s5712_s19 = sld [smem:[#allocation118_spill]] }
 0x452   : > { %v1693_v53 = vmul.f32 %v5673_v38, %v4576_v4  ;;  %v1698_v34 = vmul.f32 %v5674_v1, %v4596_v40  ;;  %v1705_v11 = vmul.f32 %v5675_v18, %v4615_v43  ;;  %v1655_v0 = vadd.f32 %v5676_v10, %v1632_v41 }
 0x453   : > { %v1626_v62 = vadd.f32 %v1624_v56, %v1619_v31  ;;  %v1873_v59 = vadd.f32 %v4539_v36, %v1866_v27  ;;  %v5677_v21 = vstv %s5667_s25  ;;  %v1559_v22 = vadd.f32 %v1557_v52, %v1554_v23 }
 0x454   : > { %v1883_v44 = vmul.f32 %v5677_v21, %v4476_v42  ;;  %v5678_v57 = vstv %s4034_s11  ;;  %v5679_v13 = vmov %v5668_v2  ;;  %v1865_v54 = vadd.f32 %v5681_v48, %v5680_v49  ;;  %s2958_s11 = smov 112  }
 0x455   : > { %v1710_v20 = vmul.f32 %v5678_v57, %v4626_v29  ;;  %v1680_v25 = vmul.f32 %v5679_v13, %v4554_v28  ;;  %v1676_v46 = vadd.f32 %v5682_v26, %v1655_v0  ;;  %v1631_v33 = vadd.f32 %v5683_v50, %v1626_v62  ;;  %v5694_v62 = vld [vmem:[#allocation44_spill] sm:$0xff]  ;;  %v5699_v50 = vld [vmem:[#allocation45_spill] sm:$0xff] }
 0x456   : > { %v5684_v36 = vmov %v5673_v38  ;;  %v1878_v30 = vadd.f32 %v5685_v37, %v1873_v59  ;;  %v1566_v52 = vadd.f32 %v1564_v19, %v1559_v22  ;;  %v5686_v24 = vmov %v5674_v1  ;;  %v5691_v1 = vld [vmem:[#allocation139_spill] sm:$0xff] }
 0x457   : > { %v1692_v56 = vmul.f32 %v5684_v36, %v4580_v47  ;;  %v1697_v5 = vmul.f32 %v5686_v24, %v4572_v12  ;;  %v1872_v2 = vadd.f32 %v4534_v14, %v1865_v54  ;;  %v5687_v63 = vmov %v5677_v21  ;;  %v5692_v14 = vld [vmem:[#allocation129_spill] sm:$0xff]  ;;  %v5695_v21 = vld [vmem:[#allocation138_spill] sm:$0xff] }
 0x458   : > { %v1882_v35 = vmul.f32 %v5687_v63, %v4490_v7  ;;  %v1683_v41 = vadd.f32 %v1681_v45, %v1676_v46  ;;  %v1654_v31 = vadd.f32 %v5688_v6, %v1631_v33  ;;  %v5689_v8 = vmov %v5675_v18  ;;  %v5693_v45 = vld [vmem:[#allocation142_spill] sm:$0xff]  ;;  %v5703_v63 = vld [vmem:[#allocation140_spill] sm:$0xff] }
 0x459   : > { %v1704_v16 = vmul.f32 %v5689_v8, %v4612_v61  ;;  %v1885_v27 = vadd.f32 %v1883_v44, %v1878_v30  ;;  %v1571_v23 = vadd.f32 %v1569_v9, %v1566_v52  ;;  %v5690_v19 = vmov %v5678_v57 }
 0x45a   : > { %v1709_v38 = vmul.f32 %v5690_v19, %v4633_v39  ;;  %v1877_v18 = vadd.f32 %v5691_v1, %v1872_v2  ;;  %v2006_v10 = vadd.f32 %v5692_v14, %v4480_v51  ;;  %v1688_v0 = vadd.f32 %v5693_v45, %v1683_v41  ;;  %v5709_v1 = vld [vmem:[#allocation47_spill] sm:$0xff] }
 0x45b   : > { %v1675_v59 = vadd.f32 %v5694_v62, %v1654_v31  ;;  %v1890_v22 = vadd.f32 %v5695_v21, %v1885_v27  ;;  %v5696_v44 = vstv %s4017_s21  ;;  %1575 = vrot.lane.b32.xlu0 %v1571_v23, %s2956_s6  ;;  %v5697_v57 = vstv %s4040_s18  ;;  %v5706_v31 = vld [vmem:[#allocation46_spill] sm:$0xff]  ;;  %s5721_s21 = sld [smem:[#allocation116_spill]] }
 0x45c   : > { %v1939_v9 = vmul.f32 %v5696_v44, %v4557_v15  ;;  %v1951_v13 = vmul.f32 %v5697_v57, %v4576_v4  ;;  %v1884_v49 = vadd.f32 %v1882_v35, %v1877_v18  ;;  %v2013_v48 = vadd.f32 %v4567_v58, %v2006_v10  ;;  %v5704_v35 = vld [vmem:[#allocation146_spill] sm:$0xff]  ;;  %v5707_v27 = vld [vmem:[#allocation152_spill] sm:$0xff] }
 0x45d   : > { %v5698_v54 = vstv %s4007_s30  ;;  %v1695_v26 = vadd.f32 %v1693_v53, %v1688_v0  ;;  %v1682_v46 = vadd.f32 %v1680_v25, %v1675_v59  ;;  %v1913_v33 = vadd.f32 %v5699_v50, %v1890_v22  ;;  %v5705_v53 = vld [vmem:[#allocation143_spill] sm:$0xff]  ;;  %v5708_v23 = vld [vmem:[#allocation128_spill] sm:$0xff]  ;;  %s2957_s30 = smov 16  }
 0x45e   : > { %v2023_v51 = vmul.f32 %v5698_v54, %v4476_v42  ;;  %v5700_v36 = vstv %s5484_s7  ;;  %v5701_v30 = vstv %s4060_s23  ;;  %v5702_v24 = vstv %s4089_s2  ;;  %s5731_s7 = sld [smem:[#allocation117_spill]] }
 0x45f   : > { %v1956_v37 = vmul.f32 %v5700_v36, %v4596_v40  ;;  %v1963_v52 = vmul.f32 %v5701_v30, %v4615_v43  ;;  %v1968_v2 = vmul.f32 %v5702_v24, %v4626_v29  ;;  %v1889_v58 = vadd.f32 %v5703_v63, %v1884_v49  ;;  %v5720_v63 = vld [vmem:[#allocation49_spill] sm:$0xff] }
 0x460   : > { %v2018_v41 = vadd.f32 %v5704_v35, %v2013_v48  ;;  %v1700_v6 = vadd.f32 %v1698_v34, %v1695_v26  ;;  %v1687_v25 = vadd.f32 %v5705_v53, %v1682_v46  ;;  %v1934_v8 = vadd.f32 %v5706_v31, %v1913_v33  ;;  %v5716_v46 = vld [vmem:[#allocation147_spill] sm:$0xff]  ;;  %v5723_v53 = vld [vmem:[#allocation126_spill] sm:$0xff] }
 0x461   : > { %v2005_v19 = vadd.f32 %v5708_v23, %v5707_v27  ;;  %v1912_v18 = vadd.f32 %v5709_v1, %v1889_v58  ;;  %v5710_v14 = vmov %v5696_v44  ;;  %v5711_v0 = vmov %v5698_v54  ;;  %v5713_v44 = vld [vmem:[#allocation48_spill] sm:$0xff]  ;;  %v5726_v23 = vld [vmem:[#allocation51_spill] sm:$0xff] }
 0x462   : > { %v1938_v10 = vmul.f32 %v5710_v14, %v4554_v28  ;;  %v2025_v45 = vadd.f32 %v2023_v51, %v2018_v41  ;;  %v2022_v62 = vmul.f32 %v5711_v0, %v4490_v7  ;;  %v1707_v59 = vadd.f32 %v1705_v11, %v1700_v6  ;;  %v5728_v14 = vld [vmem:[#allocation131_spill] sm:$0xff] }
 0x463   : > { %v1694_v34 = vadd.f32 %v1692_v56, %v1687_v25  ;;  %v1941_v21 = vadd.f32 %v1939_v9, %v1934_v8  ;;  %v2012_v22 = vadd.f32 %v4551_v60, %v2005_v19  ;;  %v1933_v57 = vadd.f32 %v5713_v44, %v1912_v18  ;;  %v5718_v56 = vld [vmem:[#allocation149_spill] sm:$0xff] }
 0x464   : > { %v5714_v49 = vstv %s4040_s18  ;;  %v5715_v54 = vmov %v5700_v36  ;;  %v2030_v51 = vadd.f32 %v5716_v46, %v2025_v45  ;;  %v1712_v50 = vadd.f32 %v1710_v20, %v1707_v59  ;;  %v5717_v36 = vld [vmem:[#allocation144_spill] sm:$0xff]  ;;  %v5725_v8 = vld [vmem:[#allocation145_spill] sm:$0xff]  ;;  %s4855_s18 = sld [smem:[#allocation6 + $0x19]] }
 0x465   : > { %v1950_v48 = vmul.f32 %v5714_v49, %v4580_v47  ;;  %v1955_v26 = vmul.f32 %v5715_v54, %v4572_v12  ;;  %v1699_v33 = vadd.f32 %v1697_v5, %v1694_v34  ;;  %v1946_v11 = vadd.f32 %v5717_v36, %v1941_v21 }
 0x466   : > { %v2017_v9 = vadd.f32 %v5718_v56, %v2012_v22  ;;  %v1940_v30 = vadd.f32 %v1938_v10, %v1933_v57  ;;  %v5719_v60 = vstv %s4060_s23  ;;  %v2053_v58 = vadd.f32 %v5720_v63, %v2030_v51  ;;  %1717 = vrot.lane.b32.xlu1 %v1712_v50, %s2957_s30  ;;  %s5763_s23 = sld [smem:[#allocation103_spill]] }
 0x467   : > { %v1962_v24 = vmul.f32 %v5719_v60, %v4612_v61  ;;  %v5722_v35 = vstv %s5712_s19  ;;  %v1706_v20 = vadd.f32 %v1704_v16, %v1699_v33  ;;  %v1953_v5 = vadd.f32 %v1951_v13, %v1946_v11  ;;  %v5729_v13 = vld [vmem:[#allocation23_spill] sm:$0xff]  ;;  %v5738_v33 = vld [vmem:[#allocation148_spill] sm:$0xff]  ;;  %v5741_v60 = vld [vmem:[#allocation56_spill] sm:$0xff] }
 0x468   : > { %v2079_v41 = vmul.f32 %v5722_v35, %v4557_v15  ;;  %v2024_v6 = vadd.f32 %v2022_v62, %v2017_v9  ;;  %v5724_v25 = vstv %s5479_s27  ;;  %v1945_v27 = vadd.f32 %v5725_v8, %v1940_v30  ;;  %s5734_s27 = sld [smem:[#allocation119_spill]] }
 0x469   : > { %v2027_v31 = vmul.f32 %v5724_v25, %v5723_v53  ;;  %v2074_v19 = vadd.f32 %v5726_v23, %v2053_v58  ;;  %v5727_v1 = vstv %s4077_s15  ;;  %v2146_v10 = vadd.f32 %v5728_v14, %v4494_v3  ;;  %v5748_v23 = vld [vmem:[#allocation153_spill] sm:$0xff]  ;;  %s4879_s15 = sld [smem:[#allocation6 + $0x4a]] }
 0x46a   : > { %v2091_v18 = vmul.f32 %v5727_v1, %v4576_v4  ;;  %v1711_v45 = vadd.f32 %v1709_v38, %v1706_v20  ;;  %v1958_v16 = vadd.f32 %v1956_v37, %v1953_v5  ;;  %v5730_v62 = vstv %s5721_s21  ;;  %v5735_v38 = vld [vmem:[#allocation53_spill] sm:$0xff] }
 0x46b   : > { %v2029_v0 = vadd.f32 %v2027_v31, %v2024_v6  ;;  %v2156_v59 = vmul.f32 %v5730_v62, %v5729_v13  ;;  %v1952_v34 = vadd.f32 %v1950_v48, %v1945_v27  ;;  %v2081_v21 = vadd.f32 %v2079_v41, %v2074_v19  ;;  %v5742_v41 = vld [vmem:[#allocation124_spill] sm:$0xff]  ;;  %v5752_v62 = vld [vmem:[#allocation123_spill] sm:$0xff] }
 0x46c   : > { %v2153_v22 = vadd.f32 %v4675_v55, %v2146_v10  ;;  %v5732_v44 = vstv %s5494_s1  ;;  %v5733_v49 = vstv %s5649_s28  ;;  %1715 = vrot.lane.b32.xlu0 %v1711_v45, %s2957_s30  ;;  %v1965_v3 = vadd.f32 %v1963_v52, %v1958_v16  ;;  %v5745_v6 = vld [vmem:[#allocation132_spill] sm:$0xff]  ;;  %s5760_s1 = sld [smem:[#allocation105_spill]] }
 0x46d   : > { %v2163_v57 = vmul.f32 %v5732_v44, %v4476_v42  ;;  %v2150_v54 = vmul.f32 %v5733_v49, %v4433_v32  ;;  %v2052_v37 = vadd.f32 %v5735_v38, %v2029_v0  ;;  %v5736_v46 = vmov %v5722_v35  ;;  %s5793_s28 = sld [smem:[#allocation159_spill]] }
 0x46e   : > { %v2078_v51 = vmul.f32 %v5736_v46, %v4554_v28  ;;  %v1957_v48 = vadd.f32 %v1955_v26, %v1952_v34  ;;  %v5737_v50 = vstv %s4089_s2  ;;  %v2086_v36 = vadd.f32 %v5738_v33, %v2081_v21  ;;  %s5744_s2 = sld [smem:[#allocation61_spill]] }
 0x46f   : > { %v1967_v55 = vmul.f32 %v5737_v50, %v4633_v39  ;;  %v2158_v11 = vadd.f32 %v2156_v59, %v2153_v22  ;;  %v1970_v56 = vadd.f32 %v1968_v2, %v1965_v3  ;;  %v5739_v32 = vstv %s5731_s7  ;;  %v5756_v3 = vld [vmem:[#allocation59_spill] sm:$0xff] }
 0x470   : > { %v2096_v9 = vmul.f32 %v5739_v32, %v4596_v40  ;;  %v5740_v52 = vstv %s5490_s3  ;;  %v2073_v63 = vadd.f32 %v5741_v60, %v2052_v37  ;;  %v1964_v58 = vadd.f32 %v1962_v24, %v1957_v48  ;;  %v5749_v24 = vld [vmem:[#allocation130_spill] sm:$0xff]  ;;  %s5766_s3 = sld [smem:[#allocation107_spill]] }
 0x471   : > { %v2103_v30 = vmul.f32 %v5740_v52, %v4615_v43  ;;  %v2093_v35 = vadd.f32 %v2091_v18, %v2086_v36  ;;  %v2165_v26 = vadd.f32 %v2163_v57, %v2158_v11  ;;  %v5743_v20 = vstv %s5734_s27  ;;  %1975 = vrot.lane.b32.xlu1 %v1970_v56, %s2958_s11  ;;  %s5796_s27 = sld [smem:[#allocation21_spill]] }
 0x472   : > { %v2168_v5 = vmul.f32 %v5743_v20, %v5742_v41  ;;  %v2080_v2 = vadd.f32 %v2078_v51, %v2073_v63  ;;  %v5746_v25 = vstv %s5483_s26  ;;  %v5747_v8 = vmov %v5727_v1  ;;  %s5751_s26 = sld [smem:[#allocation84_spill]] }
 0x473   : > { %v2083_v31 = vmul.f32 %v5746_v25, %v5745_v6  ;;  %v2090_v27 = vmul.f32 %v5747_v8, %v4580_v47  ;;  %v2145_v19 = vadd.f32 %v5749_v24, %v5748_v23  ;;  %v1969_v1 = vadd.f32 %v1967_v55, %v1964_v58 }
 0x474   : > { %v2098_v18 = vadd.f32 %v2096_v9, %v2093_v35  ;;  %v5750_v14 = vstv %s5493_s12  ;;  %v2170_v45 = vadd.f32 %v2168_v5, %v2165_v26  ;;  %v5753_v59 = vstv %s5721_s21  ;;  %s4903_s12 = sld [smem:[#allocation6 + $0x4b]] }
 0x475   : > { %v2108_v10 = vmul.f32 %v5750_v14, %v4626_v29  ;;  %v2085_v16 = vadd.f32 %v2083_v31, %v2080_v2  ;;  %v2152_v0 = vadd.f32 %v2150_v54, %v2145_v19  ;;  %v2155_v34 = vmul.f32 %v5753_v59, %v5752_v62  ;;  %1973 = vrot.lane.b32.xlu0 %v1969_v1, %s2958_s11  ;;  %v5769_v2 = vld [vmem:[#allocation133_spill] sm:$0xff]  ;;  %s5808_s11 = sld [smem:[#allocation20_spill]] }
 0x476   : > { %v5754_v21 = vmov %v5732_v44  ;;  %v5755_v44 = vstv %s5744_s2  ;;  %v2105_v49 = vadd.f32 %v2103_v30, %v2098_v18  ;;  %v2193_v38 = vadd.f32 %v5756_v3, %v2170_v45  ;;  %v5775_v45 = vld [vmem:[#allocation154_spill] sm:$0xff]  ;;  %s5806_s2 = sld [smem:[#allocation15_spill]] }
 0x477   : > { %v2162_v22 = vmul.f32 %v5754_v21, %v4490_v7  ;;  %v1757_v57 = vmul.f32 %v5755_v44, %v5752_v62  ;;  %v5757_v37 = vstv %s4141_s29  ;;  %v2092_v54 = vadd.f32 %v2090_v27, %v2085_v16  ;;  %s4940_s29 = sld [smem:[#allocation6 + $0x4c]] }
 0x478   : > { %v2219_v46 = vmul.f32 %v5757_v37, %v4557_v15  ;;  %v5758_v51 = vmov %v5739_v32  ;;  %v5759_v50 = vmov %v5740_v52  ;;  %v2157_v33 = vadd.f32 %v2155_v34, %v2152_v0  ;;  %v5764_v52 = vld [vmem:[#allocation62_spill] sm:$0xff]  ;;  %v5777_v0 = vld [vmem:[#allocation155_spill] sm:$0xff]  ;;  %v5778_v34 = vld [vmem:[#allocation65_spill] sm:$0xff] }
 0x479   : > { %v2095_v48 = vmul.f32 %v5758_v51, %v4572_v12  ;;  %v2102_v55 = vmul.f32 %v5759_v50, %v4612_v61  ;;  %v5761_v36 = vmov %v5755_v44  ;;  %v5762_v56 = vstv %s5751_s26 }
 0x47a   : > { %v1758_v11 = vmul.f32 %v5761_v36, %v5729_v13  ;;  %v1764_v32 = vmul.f32 %v5762_v56, %v4490_v7  ;;  %v2110_v9 = vadd.f32 %v2108_v10, %v2105_v49  ;;  %v2214_v30 = vadd.f32 %v5764_v52, %v2193_v38 }
 0x47b   : > { %v2097_v60 = vadd.f32 %v2095_v48, %v2092_v54  ;;  %v5765_v63 = vmov %v5750_v14  ;;  %v2164_v35 = vadd.f32 %v2162_v22, %v2157_v33  ;;  %v5767_v26 = vmov %v5743_v20  ;;  %s5815_s26 = smul.u32 192, %s5808_s11 }
 0x47c   : > { %v2107_v58 = vmul.f32 %v5765_v63, %v4633_v39  ;;  %v2167_v20 = vmul.f32 %v5767_v26, %v5723_v53  ;;  %v5768_v5 = vmov %v5762_v56  ;;  %2115 = vrot.lane.b32.xlu1 %v2110_v9, %s2959_s4  ;;  %v2221_v7 = vadd.f32 %v2219_v46, %v2214_v30  ;;  %v5786_v63 = vld [vmem:[#allocation71_spill] sm:$0xff] }
 0x47d   : > { %v1765_v13 = vmul.f32 %v5768_v5, %v4476_v42  ;;  %v5770_v25 = vstv %s5491_s14  ;;  %v5772_v8 = vstv %s5760_s1  ;;  %v2104_v23 = vadd.f32 %v2102_v55, %v2097_v60  ;;  %s2960_s14 = smov 80   ;;  %s5058_s1 = scalar_lea.vmem [#allocation7], %s5815_s26 }
 0x47e   : > { %v2224_v31 = vmul.f32 %v5770_v25, %v5769_v2  ;;  %v2231_v27 = vmul.f32 %v5772_v8, %v4576_v4  ;;  %v5773_v24 = vstv %s5763_s23  ;;  %v2169_v1 = vadd.f32 %v2167_v20, %v2164_v35  ;;  %v5787_v35 = vld [vmem:[#allocation73_spill] sm:$0xff]  ;;  %s5816_s23 = sld [smem:[#allocation18_spill]] }
 0x47f   : > { %v2236_v19 = vmul.f32 %v5773_v24, %v4596_v40  ;;  %v1819_v42 = vstv %s4855_s18  ;;  %v5774_v14 = vstv %s5766_s3  ;;  %v1759_v16 = vadd.f32 %v1757_v57, %v5775_v45  ;;  %v5782_v57 = vld [vmem:[#allocation67_spill] sm:$0xff]  ;;  %s2656_s18 = smul.u32 3072, %s5806_s2 }
 0x480   : > { %v2226_v18 = vadd.f32 %v2224_v31, %v2221_v7  ;;  %v2243_v10 = vmul.f32 %v5774_v14, %v4615_v43  ;;  %v1760_v62 = vadd.f32 %v1758_v11, %v5777_v0  ;;  %v2109_v59 = vadd.f32 %v2107_v58, %v2104_v23  ;;  %v5790_v23 = vld [vmem:[#allocation79_spill] sm:$0xff] }
 0x481   : > { %v2192_v21 = vadd.f32 %v5778_v34, %v2169_v1  ;;  %v5779_v22 = vmov %v5757_v37  ;;  %v5780_v49 = vstv %s5771_s13  ;;  %v1766_v37 = vadd.f32 %v1764_v32, %v1759_v16  ;;  %s5817_s13 = sld [smem:[#allocation161_spill]] }
 0x482   : > { %v2218_v44 = vmul.f32 %v5779_v22, %v4554_v28  ;;  %v1769_v3 = vmul.f32 %v5780_v49, %v5723_v53  ;;  %v2233_v38 = vadd.f32 %v2231_v27, %v2226_v18  ;;  %v1767_v46 = vadd.f32 %v1765_v13, %v1760_v62  ;;  %2113 = vrot.lane.b32.xlu0 %v2109_v59, %s2959_s4  ;;  %v5789_v27 = vld [vmem:[#allocation77_spill] sm:$0xff] }
 0x483   : > { %v5781_v54 = vmov %v5780_v49  ;;  %v2213_v48 = vadd.f32 %v5782_v57, %v2192_v21  ;;  %v1824_v50 = vstv %s4879_s15  ;;  %v5783_v33 = vstv %s5776_s16  ;;  %s2442_s15 = sshll.u32 %s5058_s1, 4  ;;  %s5084_s15 = int_to_ptr.vmem [resolvable:$true] %s2442_s15 }
 0x484   : > { %v1770_v51 = vmul.f32 %v5781_v54, %v5742_v41  ;;  %v2238_v55 = vadd.f32 %v2236_v19, %v2233_v38  ;;  %v2248_v36 = vmul.f32 %v5783_v33, %v4626_v29  ;;  %v1771_v53 = vadd.f32 %v1769_v3, %v1766_v37  ;;  %s2873_s16 = scalar_lea.vmem %s5084_s15, 3072  ;;  %p5818_p0 = scmp.ne.s32.totalorder %s5816_s23, 0 }
 0x485   : > { %v2220_v56 = vadd.f32 %v2218_v44, %v2213_v48  ;;  %v5784_v32 = vmov %v5770_v25  ;;  %v5785_v41 = vmov %v5772_v8  ;;  %v1820_v30 = vmul.f32 %v1819_v42, %v4554_v28  ;;  %p2874_p12 = scmp.ne.s32.totalorder %s5084_s15, %s2873_s16 }
 0x486   : > { %v1772_v11 = vadd.f32 %v1770_v51, %v1767_v46  ;;  %v2223_v9 = vmul.f32 %v5784_v32, %v5745_v6  ;;  %v2230_v52 = vmul.f32 %v5785_v41, %v4580_v47  ;;  %v2245_v60 = vadd.f32 %v2243_v10, %v2238_v55 }
 0x487   : > { %v1794_v58 = vadd.f32 %v5786_v63, %v1771_v53  ;;  %v1821_v20 = vmul.f32 %v1819_v42, %v4557_v15  ;;  %v1831_v13 = vstv %s4909_s8  ;;  %v1836_v7 = vstv %s4903_s12  ;;  %s5082_s12 = scalar_lea.hbm %s5817_s13, %s2656_s18  ;;  %s2428_s8 = scalar_lea.sflag [#allocation4], %s5808_s11 }
 0x488   : > { %v1795_v26 = vadd.f32 %v5787_v35, %v1772_v11  ;;  %v2225_v5 = vadd.f32 %v2223_v9, %v2220_v56  ;;  %v2250_v25 = vadd.f32 %v2248_v36, %v2245_v60  ;;  %v5788_v31 = vmov %v5773_v24  ;;  %v5794_v56 = vld [vmem:[#allocation25_spill] sm:$0xff]  ;;  %v5795_v9 = vld [vmem:[#allocation26_spill] sm:$0xff]  ;;  %p2875_p2 = pnand %p2874_p12, %p5818_p0 }
 0x489   : > { %v2235_v8 = vmul.f32 %v5788_v31, %v4572_v12  ;;  %v1815_v28 = vadd.f32 %v5789_v27, %v1794_v58  ;;  %v5791_v1 = vmov %v5774_v14  ;;  %v1825_v14 = vmul.f32 %v1824_v50, %v5745_v6 }
 0x48a   : > { %v1816_v24 = vadd.f32 %v5790_v23, %v1795_v26  ;;  %v2232_v19 = vadd.f32 %v2230_v52, %v2225_v5  ;;  %v2242_v18 = vmul.f32 %v5791_v1, %v4612_v61  ;;  %v1826_v15 = vmul.f32 %v1824_v50, %v5769_v2  ;;  %2255 = vrot.lane.b32.xlu1 %v2250_v25, %s2960_s14  ;;  %p2876_p7 = pneg %p2875_p2 }
 0x48b   : > { %v1822_v42 = vadd.f32 %v1820_v30, %v1815_v28  ;;  %v1832_v45 = vmul.f32 %v1831_v13, %v4580_v47  ;;  %v1833_v16 = vmul.f32 %v1831_v13, %v4576_v4  ;;  %v5792_v62 = vmov %v5783_v33 }
 0x48c   : > { %v1823_v10 = vadd.f32 %v1821_v20, %v1816_v24  ;;  %v2237_v0 = vadd.f32 %v2235_v8, %v2232_v19  ;;  %v2247_v59 = vmul.f32 %v5792_v62, %v4633_v39  ;;  %v1843_v34 = vstv %s4928_s10  ;;  %v2614_v19 = vld [vmem:[%s5793_s28 + $0x13] ss:$8 sm:$0x3]  ;;  %s2962_s10 = smov [#allocation7]  }
 0x48d   : > { %v1827_v21 = vadd.f32 %v1825_v14, %v1822_v42  ;;  %v1837_v6 = vmul.f32 %v1836_v7, %v4572_v12  ;;  %v1838_v2 = vmul.f32 %v1836_v7, %v4596_v40  ;;  %v1848_v49 = vstv %s4940_s29  ;;  %s2877_s29 = sshll.u32 %s2962_s10, 4  ;;  %s2878_s29 = int_to_ptr.vmem [resolvable:$false] %s2877_s29 }
 0x48e   : > { %v1828_v22 = vadd.f32 %v1826_v15, %v1823_v10  ;;  %v2244_v44 = vadd.f32 %v2242_v18, %v2237_v0  ;;  %v1844_v37 = vmul.f32 %v1843_v34, %v4612_v61  ;;  %v1845_v47 = vmul.f32 %v1843_v34, %v4615_v43  ;;  %v2570_v61 = vld [vmem:[%s5793_s28 + $0x10] ss:$8 sm:$0x3]  ;;  %v2629_v15 = vld [vmem:[%s5793_s28 + $0x14] ss:$8 sm:$0x3]  ;;  %p2880_p8 = scmp.lt.s32.totalorder %s5084_s15, %s2878_s29 }
 0x48f   : > { %v1834_v3 = vadd.f32 %v1832_v45, %v1827_v21  ;;  %v1849_v51 = vmul.f32 %v1848_v49, %v4633_v39  ;;  %v1850_v57 = vmul.f32 %v1848_v49, %v4626_v29  ;;  %v2555_v29 = vld [vmem:[%s5793_s28 + $0x7] ss:$8 sm:$0x3]  ;;  %v2585_v39 = vld [vmem:[%s5793_s28 + $0x11] ss:$8 sm:$0x3]  ;;  %v1586_v32 = vrot.slane %v2570_v61, %v5794_v56 }
 0x490   : > { %v1835_v38 = vadd.f32 %v1833_v16, %v1828_v22  ;;  %v2249_v4 = vadd.f32 %v2247_v59, %v2244_v44  ;;  %v1590_v41 = vrot.slane %v2570_v61, %v5795_v9  ;;  %v1446_v60 = vrot.slane %v2555_v29, %v5794_v56 }
 0x491   : > { %v1839_v46 = vadd.f32 %v1837_v6, %v1834_v3  ;;  %v1450_v63 = vrot.slane %v2555_v29, %v5795_v9  ;;  %v1726_v58 = vrot.slane %v2585_v39, %v5794_v56  ;;  %v1730_v35 = vrot.slane %v2585_v39, %v5795_v9  ;;  %v2644_v6 = vld [vmem:[%s5793_s28 + $0x15] ss:$8 sm:$0x3] }
 0x492   : > { %v1840_v54 = vadd.f32 %v1838_v2, %v1835_v38  ;;  %2253 = vrot.lane.b32.xlu0 %v2249_v4, %s2960_s14  ;;  %v1984_v14 = vrot.slane %v2614_v19, %v5794_v56  ;;  %v1988_v45 = vrot.slane %v2614_v19, %v5795_v9  ;;  %v2124_v34 = vrot.slane %v2629_v15, %v5794_v56  ;;  %v2818_v19 = vld [vmem:[%s5796_s27 + $0x20] sm:$0xff]  ;;  %s2879_s14 = scalar_lea.vmem %s2878_s29, 6144 }
 0x493   : > { %v1846_v48 = vadd.f32 %v1844_v37, %v1839_v46  ;;  %v2128_v21 = vrot.slane %v2629_v15, %v5795_v9  ;;  %v2264_v46 = vrot.slane %v2644_v6, %v5794_v56  ;;  %p2881_p9 = scmp.lt.s32.totalorder %s2879_s14, %s2873_s16 }
 0x494   : > { %v1847_v50 = vadd.f32 %v1845_v47, %v1840_v54  ;;  %v2268_v54 = vrot.slane %v2644_v6, %v5795_v9  ;;  %v2408_v6 = vld [vmem:[%s5796_s27 + $0xb8] sm:$0xff] }
 0x495   : > { %v1851_v12 = vadd.f32 %v1849_v51, %v1846_v48  ;;  %p2882_p10 = por %p2881_p9, %p2880_p8 }
 0x496   : > { %v1852_v55 = vadd.f32 %v1850_v57, %v1847_v50 }
 0x497   : > { %p2883_p1 = pnand %p2882_p10, %p2876_p7 }
 0x4be   : > { %v1438_v40 = vpop.permute.xlu1 %1437 }
 0x4bf   : > { %v1436_v33 = vpop.permute.xlu0 %1435 }
 0x4c0   : > { %v1440_v26 = vsel %vm1439_vm15, %v1436_v33, %v1438_v40  ;;  %v1441_v20 = vsel %vm1439_vm15, %v1438_v40, %v1436_v33 }
 0x4c1   : > { %v1453_v27 = vmul.f32 %v1446_v60, %v1441_v20  ;;  %v1454_v28 = vmul.f32 %v1450_v63, %v1440_v26  ;;  %v5797_v63 = vld [vmem:[#allocation24_spill] sm:$0xff] }
 0x4c2   : > { %v2814_v20 = vld [vmem:[%s5796_s27 + $0x10] sm:$0xff] }
 0x4c3   : > { %v1578_v36 = vpop.permute.xlu1 %1577 }
 0x4cd   : > { %v1576_v53 = vpop.permute.xlu0 %1575 }
 0x4ce   : > { %v1580_v52 = vsel %vm1579_vm14, %v1576_v53, %v1578_v36  ;;  %v1581_v30 = vsel %vm1579_vm14, %v1578_v36, %v1576_v53 }
 0x4cf   : > { %v1593_v7 = vmul.f32 %v1586_v32, %v1581_v30  ;;  %v1594_v25 = vmul.f32 %v1590_v41, %v1580_v52  ;;  %v2961_v41 = vmov 1966171168  }
 0x4d0   : > { %v2291_v52 = vunpack.c.l.s4 %v2961_v41 }
 0x4d1   : > { %v1595_v1 = vadd.f32 %v1593_v7, %v1453_v27  ;;  %v1596_v18 = vadd.f32 %v1594_v25, %v1454_v28  ;;  %v2815_v7 = vld [vmem:[%s5796_s27 + $0x18] sm:$0xff] }
 0x4d2   : > { %v2292_v30 = vunpack.c.0.s8 %v2291_v52  ;;  %v2817_v28 = vld [vmem:[%s5796_s27 + $0x58] sm:$0xff] }
 0x4d8   : > { %v1718_v43 = vpop.permute.xlu1 %1717 }
 0x4de   : > { %v1716_v11 = vpop.permute.xlu0 %1715 }
 0x4df   : > { %v1720_v5 = vsel %vm1719_vm0, %v1716_v11, %v1718_v43  ;;  %v1721_v13 = vsel %vm1719_vm0, %v1718_v43, %v1716_v11 }
 0x4e0   : > { %v1733_v23 = vmul.f32 %v1726_v58, %v1721_v13  ;;  %v1734_v24 = vmul.f32 %v1730_v35, %v1720_v5  ;;  %v2295_v58 = vsub.s32 %v2292_v30, %v5797_v63  ;;  %v5798_v5 = vld [vmem:[#allocation27_spill] sm:$0xff]  ;;  %v5809_v30 = vld [vmem:[#allocation28_spill] sm:$0xff]  ;;  %v5810_v63 = vld [vmem:[#allocation29_spill] sm:$0xff] }
 0x4e1   : > { %v2361_v13 = vmul.f32 %v2814_v20, %v5798_v5  ;;  %v2362_v25 = vmul.f32 %v2815_v7, %v5798_v5  ;;  %v5811_v20 = vld [vmem:[#allocation30_spill] sm:$0xff]  ;;  %v5812_v7 = vld [vmem:[#allocation31_spill] sm:$0xff] }
 0x4e2   : > { %v1735_v42 = vadd.f32 %v1733_v23, %v1595_v1  ;;  %v1736_v10 = vadd.f32 %v1734_v24, %v1596_v18  ;;  %v5800_v1 = vld [vmem:[#allocation35_spill] sm:$0xff] }
 0x4e3   : > { %v1976_v31 = vpop.permute.xlu1 %1975  ;;  %v2385_v18 = vmul.f32 %v2818_v19, %v5800_v1 }
 0x4e4   : > { %v1853_v2 = vadd.f32 %v1851_v12, %v1735_v42  ;;  %v1854_v49 = vadd.f32 %v1852_v55, %v1736_v10  ;;  %v2820_v42 = vld [vmem:[%s5796_s27 + $0x90] sm:$0xff] }
 0x4e5   : > { %v5801_v10 = vld [vmem:[#allocation36_spill] sm:$0xff] }
 0x4e7   : > { %v1974_v8 = vpop.permute.xlu0 %1973 }
 0x4e8   : > { %v1978_v62 = vsel %vm1977_vm1, %v1974_v8, %v1976_v31  ;;  %v1979_v59 = vsel %vm1977_vm1, %v1976_v31, %v1974_v8  ;;  %v2816_v31 = vld [vmem:[%s5796_s27 + $0x50] sm:$0xff]  ;;  %v5799_v8 = vld [vmem:[#allocation34_spill] sm:$0xff] }
 0x4e9   : > { %v1991_v3 = vmul.f32 %v1984_v14, %v1978_v62  ;;  %v1992_v38 = vmul.f32 %v1988_v45, %v1979_v59  ;;  %v2363_v27 = vmul.f32 %v2816_v31, %v5799_v8  ;;  %v2364_v23 = vmul.f32 %v2817_v28, %v5799_v8  ;;  %v2819_v14 = vld [vmem:[%s5796_s27 + $0x28] sm:$0xff]  ;;  %v2822_v62 = vld [vmem:[%s5796_s27 + $0xa0] sm:$0xff]  ;;  %v5802_v59 = vld [vmem:[#allocation37_spill] sm:$0xff] }
 0x4ea   : > { %v2386_v15 = vmul.f32 %v2819_v14, %v5800_v1  ;;  %v2365_v45 = vmul.f32 %v2820_v42, %v5801_v10  ;;  %v5813_v8 = vld [vmem:[#allocation32_spill] sm:$0xff] }
 0x4eb   : > { %v1993_v51 = vadd.f32 %v1991_v3, %v1853_v2  ;;  %v1994_v57 = vadd.f32 %v1992_v38, %v1854_v49  ;;  %v2824_v3 = vld [vmem:[%s5796_s27 + $0x60] sm:$0xff] }
 0x4ec   : > { %v5803_v38 = vld [vmem:[#allocation38_spill] sm:$0xff] }
 0x4ee   : > { %v2116_v16 = vpop.permute.xlu1 %2115 }
 0x4f4   : > { %v2114_v0 = vpop.permute.xlu0 %2113 }
 0x4f5   : > { %v2118_v22 = vsel %vm2117_vm2, %v2114_v0, %v2116_v16  ;;  %v2119_v44 = vsel %vm2117_vm2, %v2116_v16, %v2114_v0  ;;  %v2821_v16 = vld [vmem:[%s5796_s27 + $0x98] sm:$0xff] }
 0x4f6   : > { %v2131_v37 = vmul.f32 %v2124_v34, %v2118_v22  ;;  %v2132_v47 = vmul.f32 %v2128_v21, %v2119_v44  ;;  %v2366_v0 = vmul.f32 %v2821_v16, %v5801_v10  ;;  %v2389_v34 = vmul.f32 %v2822_v62, %v5802_v59  ;;  %v2823_v21 = vld [vmem:[%s5796_s27 + $0xa8] sm:$0xff]  ;;  %v2407_v44 = vld [vmem:[%s5796_s27 + $0xb0] sm:$0xff] }
 0x4f7   : > { %v2390_v22 = vmul.f32 %v2823_v21, %v5802_v59 }
 0x4f8   : > { %v2133_v33 = vadd.f32 %v2131_v37, %v1993_v51  ;;  %v2134_v36 = vadd.f32 %v2132_v47, %v1994_v57  ;;  %v2387_v37 = vmul.f32 %v2824_v3, %v5803_v38  ;;  %v2825_v47 = vld [vmem:[%s5796_s27 + $0x68] sm:$0xff]  ;;  %v2827_v57 = vld [vmem:[%s5796_s27 + $0x78] sm:$0xff] }
 0x4fc   : > { %v2256_v4 = vpop.permute.xlu1 %2255 }
 0x504   : > { %v2254_v48 = vpop.permute.xlu0 %2253 }
 0x505   : > { %v2258_v50 = vsel %vm2257_vm3, %v2254_v48, %v2256_v4  ;;  %v2259_v40 = vsel %vm2257_vm3, %v2256_v4, %v2254_v48  ;;  %v2388_v4 = vmul.f32 %v2825_v47, %v5803_v38 }
 0x506   : > { %v2271_v12 = vmul.f32 %v2264_v46, %v2258_v50  ;;  %v2272_v55 = vmul.f32 %v2268_v54, %v2259_v40  ;;  %v2826_v46 = vld [vmem:[%s5796_s27 + $0x70] sm:$0xff]  ;;  %v5804_v54 = vld [vmem:[#allocation39_spill] sm:$0xff] }
 0x507   : > { %v2411_v51 = vmul.f32 %v2826_v46, %v5804_v54  ;;  %v2412_v48 = vmul.f32 %v2827_v57, %v5804_v54 }
 0x508   : > { %v2273_v53 = vadd.f32 %v2271_v12, %v2133_v33  ;;  %v2274_v61 = vadd.f32 %v2272_v55, %v2134_v36  ;;  %v2828_v12 = vld [vmem:[%s5796_s27 + $0x30] sm:$0xff] }
 0x509   : > { %v5805_v55 = vld [vmem:[#allocation40_spill] sm:$0xff] }
 0x50a   : > { %v2645_v43 = vmul.f32 -1.442695, %v2273_v53  ;;  %v2646_v17 = vmul.f32 -1.442695, %v2274_v61  ;;  %v2409_v53 = vmul.f32 %v2828_v12, %v5805_v55  ;;  %v2829_v61 = vld [vmem:[%s5796_s27 + $0x38] sm:$0xff] }
 0x50c   : > { %2806 = vpow2.f32 %v2645_v43  ;;  %v2410_v43 = vmul.f32 %v2829_v61, %v5805_v55 }
 0x50d   : > { %2808 = vpow2.f32 %v2646_v17  ;;  %v5807_v17 = vld [vmem:[#allocation41_spill] sm:$0xff] }
 0x519   : > { %v2807_v11 = vpop.eup %2806 }
 0x51a   : > { %v2809_v29 = vpop.eup %2808  ;;  %v2281_v39 = vadd.f32 1.0, %v2807_v11  ;;  %v2413_v11 = vmul.f32 %v2407_v44, %v5807_v17 }
 0x51b   : > { %v2282_v32 = vadd.f32 1.0, %v2809_v29  ;;  %v2414_v29 = vmul.f32 %v2408_v6, %v5807_v17 }
 0x51c   : > { %2810 = vrcp.f32 %v2281_v39 }
 0x51d   : > { %2812 = vrcp.f32 %v2282_v32 }
 0x529   : > { %v2811_v60 = vpop.eup %2810 }
 0x52a   : > { %v2813_v35 = vpop.eup %2812 }
 0x52b   : > { %v2289_v26 = vcombine.low %v2811_v60, %v2813_v35 }
 0x52d   : > { %v2296_v24 = vrot.slane %v2289_v26, %v2295_v58 }
 0x52f   : > { %v2297_v2 = vcombine.high %v2296_v24, %v2296_v24  ;;  %v2304_v49 = vrot.slane %v2296_v24, %v2295_v58  ;;  %v5814_v24 = vld [vmem:[#allocation33_spill] sm:$0xff] }
 0x531   : > { %v2311_v50 = vrot.slane %v2297_v2, %v2295_v58  ;;  %v2312_v40 = vcombine.high %v2304_v49, %v2304_v49  ;;  %v2316_v33 = vrot.slane %v2304_v49, %v5794_v56  ;;  %v2320_v36 = vrot.slane %v2304_v49, %v5795_v9 }
 0x533   : > { %v2324_v39 = vrot.slane %v2311_v50, %v5794_v56  ;;  %v2328_v32 = vrot.slane %v2311_v50, %v5795_v9  ;;  %v2332_v41 = vrot.slane %v2312_v40, %v5794_v56  ;;  %v2336_v52 = vrot.slane %v2312_v40, %v5795_v9 }
 0x534   : > { %v2343_v60 = vmul.f32 %v2316_v33, %v5809_v30  ;;  %v2344_v58 = vmul.f32 %v2320_v36, %v5810_v63  ;;  %v2367_v35 = vmul.f32 %v2361_v13, %v2316_v33  ;;  %v2368_v26 = vmul.f32 %v2362_v25, %v2320_v36 }
 0x535   : > { %v2345_v5 = vmul.f32 %v2324_v39, %v5811_v20  ;;  %v2346_v31 = vmul.f32 %v2328_v32, %v5812_v7  ;;  %v2347_v28 = vmul.f32 %v2332_v41, %v5813_v8  ;;  %v2348_v19 = vmul.f32 %v2336_v52, %v5814_v24 }
 0x536   : > { %2349 = vst [vmem:[%s5058_s1] sm:$0xff] %v2343_v60  ;;  %2350 = vst [vmem:[%s5058_s1 + $0x8] sm:$0xff] %v2344_v58  ;;  %v2369_v56 = vmul.f32 %v2363_v27, %v2324_v39  ;;  %v2370_v9 = vmul.f32 %v2364_v23, %v2328_v32  ;;  %v2371_v13 = vmul.f32 %v2365_v45, %v2332_v41 }
 0x537   : > { %v2372_v25 = vmul.f32 %v2366_v0, %v2336_v52  ;;  %2373 = vst [vmem:[%s5058_s1 + $0x10] sm:$0xff] %v2367_v35  ;;  %2374 = vst [vmem:[%s5058_s1 + $0x18] sm:$0xff] %v2368_v26  ;;  %v2391_v1 = vmul.f32 %v2385_v18, %v2316_v33  ;;  %v2392_v14 = vmul.f32 %v2386_v15, %v2320_v36 }
 0x538   : > { %2351 = vst [vmem:[%s5058_s1 + $0x40] sm:$0xff] %v2345_v5  ;;  %2352 = vst [vmem:[%s5058_s1 + $0x48] sm:$0xff] %v2346_v31  ;;  %v2393_v27 = vmul.f32 %v2387_v37, %v2324_v39  ;;  %v2394_v42 = vmul.f32 %v2388_v4, %v2328_v32  ;;  %v2395_v23 = vmul.f32 %v2389_v34, %v2332_v41 }
 0x539   : > { %2353 = vst [vmem:[%s5058_s1 + $0x80] sm:$0xff] %v2347_v28  ;;  %2354 = vst [vmem:[%s5058_s1 + $0x88] sm:$0xff] %v2348_v19  ;;  %v2396_v10 = vmul.f32 %v2390_v22, %v2336_v52  ;;  %v2415_v45 = vmul.f32 %v2409_v53, %v2316_v33  ;;  %v2416_v16 = vmul.f32 %v2410_v43, %v2320_v36 }
 0x53a   : > { %2375 = vst [vmem:[%s5058_s1 + $0x50] sm:$0xff] %v2369_v56  ;;  %2376 = vst [vmem:[%s5058_s1 + $0x58] sm:$0xff] %v2370_v9  ;;  %v2417_v18 = vmul.f32 %v2411_v51, %v2324_v39  ;;  %v2418_v15 = vmul.f32 %v2412_v48, %v2328_v32  ;;  %v2419_v0 = vmul.f32 %v2413_v11, %v2332_v41 }
 0x53b   : > { %2377 = vst [vmem:[%s5058_s1 + $0x90] sm:$0xff] %v2371_v13  ;;  %2378 = vst [vmem:[%s5058_s1 + $0x98] sm:$0xff] %v2372_v25  ;;  %v2420_v62 = vmul.f32 %v2414_v29, %v2336_v52 }
 0x53c   : > { %2397 = vst [vmem:[%s5058_s1 + $0x20] sm:$0xff] %v2391_v1  ;;  %2398 = vst [vmem:[%s5058_s1 + $0x28] sm:$0xff] %v2392_v14 }
 0x53d   : > { %2399 = vst [vmem:[%s5058_s1 + $0x60] sm:$0xff] %v2393_v27  ;;  %2400 = vst [vmem:[%s5058_s1 + $0x68] sm:$0xff] %v2394_v42 }
 0x53e   : > { %2401 = vst [vmem:[%s5058_s1 + $0xa0] sm:$0xff] %v2395_v23  ;;  %2402 = vst [vmem:[%s5058_s1 + $0xa8] sm:$0xff] %v2396_v10 }
 0x53f   : > { %2421 = vst [vmem:[%s5058_s1 + $0x30] sm:$0xff] %v2415_v45  ;;  %2422 = vst [vmem:[%s5058_s1 + $0x38] sm:$0xff] %v2416_v16 }
 0x540   : > { %2423 = vst [vmem:[%s5058_s1 + $0x70] sm:$0xff] %v2417_v18  ;;  %2424 = vst [vmem:[%s5058_s1 + $0x78] sm:$0xff] %v2418_v15 }
 0x541   : > { %2425 = vst [vmem:[%s5058_s1 + $0xb0] sm:$0xff] %v2419_v0  ;;  %2426 = vst [vmem:[%s5058_s1 + $0xb8] sm:$0xff] %v2420_v62 }
 0x542   : > { %2886 = shalt.err (!%p2883_p1)
}
 0x543   : > { %s2887_s0 = scalar_lea.hbm %s5082_s12, 3072  ;;  %s2891_s17 = scalar_lea.hbm %s5817_s13, 6144 }
 0x544   : > { %p2888_p4 = scmp.ne.s32.totalorder %s5082_s12, %s2887_s0  ;;  %p2892_p6 = scmp.lt.s32.totalorder %s5082_s12, %s5817_s13 }
 0x545   : > { %p2893_p13 = scmp.lt.s32.totalorder %s2891_s17, %s2887_s0 }
 0x546   : > { %p2889_p11 = pnand %p2888_p4, %p5818_p0 }
 0x547   : > { %p2894_p3 = por %p2893_p13, %p2892_p6 }
 0x548   : > { %p2890_p5 = pneg %p2889_p11 }
 0x54a   : > { %p2895_p12 = pnand %p2894_p3, %p2890_p5 }
 0x54c   : > { %2898 = shalt.err (!%p2895_p12)
}
 0x54d   : > { %s2963_s5 = smov 256  }
 0x54e   : > { %2733 = dma.vmem_to_hbm [thread:$0]  (%p5818_p0), %s5084_s15, 3072, %s5082_s12, %s2428_s8, %s2963_s5, %s2963_s5, %s2957_s30  }
 0x54f PF: > { %s5819_s9 = sld [smem:[#allocation11_spill]] }
 0x550   : > { %s5820_s25 = sld [smem:[#allocation19_spill]] }
 0x551   : > { %s5821_s6 = sld [smem:[#allocation14_spill]] }
 0x555   : > { %s2457_s19 = sand.u32 1, %s5819_s9  }
 0x556   : > { %p5822_p2 = scmp.ne.s32.totalorder %s5820_s25, 0  ;;  %s2458_s21 = scalar_lea.sflag [#allocation4], %s2457_s19 }
 0x557   : > { %p5823_p7 = scmp.ge.s32.totalorder %s5821_s6, 2 }
 0x559   : > { %p2744_p8 = pnand %p5823_p7, %p5822_p2 }
 0x55b   : > { %p2745_p9 = pneg %p2744_p8 }
 0x55d   : > { %2924 = dma.done.wait (%p2745_p9), %s2458_s21, 3072  }
 0x55e   : > { %2926 = vsyncadd (%p2745_p9), %s2458_s21, 4294964224  ;;  %s5824_s21 = sld [smem:[#allocation16_spill]] }
 0x55f   : > { %s5825_s18 = sld [smem:[#allocation12_spill]] }
 0x560   : > { %s5826_s19 = sld [smem:[#allocation13_spill]] }
 0x561   : > { %s5827_s20 = sld [smem:[#allocation17_spill]] }
 0x564   : > { %p19_p10 = scmp.ge.s32.totalorder %s5824_s21, 4  }
 0x566   :  { %21 = sbr.rel (!%p19_p10) target bundleno = 13 (0xd), region = 101 }
 0x56b   :  { %2463 = vsyncpa [#allocation3], 1 }
 0x56c   :  { %2465 = vsyncpa [#allocation3 + $0x1], 1 }
 0x56d   :  { %2466 = vsyncpa [#allocation4], 1 }
 0x56e   :  { %2468 = vsyncpa [#allocation4 + $0x1], 1 }
 0x56f   :  { %2469 = vsyncpa [#allocation5], 1 }
 0x570   :  { %2471 = vsyncpa [#allocation5 + $0x1], 1 }

</bundles_post_ra>
